<compile_context>
chip_gen: v7x
topology: tpu7x:2x2x1
jax: 0.10.0
libtpu: 0.0.40
codegen_flags: <defaults>
</compile_context>

<pallas_src>
import jax
import jax.numpy as jnp
from jax.experimental import pallas as pl
from jax.experimental.pallas import tpu as pltpu


# ----------------------------- Pallas kernel -------------------------------

def _lstm_fc_kernel(x_ref, h0_ref, c0_ref,
                    wih0_ref, whh0_ref, b0_ref,
                    wih1_ref, whh1_ref, b1_ref,
                    wfc_ref, bfc_ref,
                    logits_ref, hn_ref, cn_ref,
                    gx_ref):
    S, B, E = x_ref.shape
    H = h0_ref.shape[-1]

    # ---- Hoisted input projection: one big MXU matmul for ALL timesteps ----
    # (S,B,E) -> (S*B,E) is a leading-dim merge (lane dim unchanged): no relayout.
    x_all = x_ref[...].reshape(S * B, E)                               # bf16
    gx = jnp.dot(x_all, wih0_ref[...], preferred_element_type=jnp.float32)
    gx_ref[...] = (gx + b0_ref[...]).reshape(S, B, 4 * H)              # bias folded in once

    # Loop-invariant weights / broadcasts hoisted out of the unrolled loop.
    whh0 = whh0_ref[...]                                               # (H, 4H) bf16
    wih1 = wih1_ref[...]                                               # (H, 4H) bf16
    whh1 = whh1_ref[...]                                               # (H, 4H) bf16
    b1 = jnp.broadcast_to(b1_ref[...], (B, 4 * H))                     # (B, 4H) f32

    def gates_to_hc(gates, c):
        # Gate column order is [i | f | o | g] (reordered offline in make_params):
        # one contiguous sigmoid slab (B, 3H) and one tanh slab (B, H).
        sfo = jax.nn.sigmoid(gates[:, :3 * H])
        g = jnp.tanh(gates[:, 3 * H:])
        i = sfo[:, 0 * H:1 * H]
        f = sfo[:, 1 * H:2 * H]
        o = sfo[:, 2 * H:3 * H]
        c_new = f * c + i * g
        h_new = o * jnp.tanh(c_new)
        return h_new, c_new

    def step(t, carry):
        h0, c0, h1, c1 = carry
        # Layer 0: only the K=128 recurrent matmul is on the serial path.
        g0 = gx_ref[t] + jnp.dot(h0.astype(jnp.bfloat16), whh0,
                                 preferred_element_type=jnp.float32)
        h0n, c0n = gates_to_hc(g0, c0)
        # TODO(synk): inter-layer dropout (p=0.5) omitted (eval-mode semantics).
        # Layer 1: two separate K=128 dots; the h1 term depends only on step t-1,
        # so it overlaps with layer-0 compute of step t in the unrolled schedule.
        g1 = (jnp.dot(h0n.astype(jnp.bfloat16), wih1,
                      preferred_element_type=jnp.float32)
              + jnp.dot(h1.astype(jnp.bfloat16), whh1,
                        preferred_element_type=jnp.float32)
              + b1)
        h1n, c1n = gates_to_hc(g1, c1)
        return (h0n, c0n, h1n, c1n)

    carry0 = (h0_ref[0], c0_ref[0], h0_ref[1], c0_ref[1])
    # Full unroll only for short sequences; bounded unroll keeps i-mem / compile time sane.
    unroll = True if S <= 16 else 8
    h0f, c0f, h1f, c1f = jax.lax.fori_loop(0, S, step, carry0, unroll=unroll)

    # FC projection of the last-timestep top-layer output, plus h_n / c_n.
    logits_ref[...] = (jnp.dot(h1f.astype(jnp.bfloat16), wfc_ref[...],
                               preferred_element_type=jnp.float32)
                       + bfc_ref[...])
    hn_ref[0] = h0f
    hn_ref[1] = h1f
    cn_ref[0] = c0f
    cn_ref[1] = c1f


def _lstm_fc_pallas(x_emb_tmaj, h_init, c_init, params):
    S, B, E = x_emb_tmaj.shape
    H = h_init.shape[-1]
    V = params["w_fc"].shape[-1]

    full = lambda shape: pl.BlockSpec(shape, lambda i: (0,) * len(shape))

    grid_spec = pltpu.PrefetchScalarGridSpec(
        num_scalar_prefetch=0,
        grid=(1,),                        # single invocation; time loop is in-kernel
        in_specs=[
            full((S, B, E)),              # embedded input (bf16, time-major)
            full((2, B, H)),              # h_init
            full((2, B, H)),              # c_init
            full((E, 4 * H)),             # W_ih layer 0 (bf16)   [i|f|o|g]
            full((H, 4 * H)),             # W_hh layer 0 (bf16)
            full((1, 4 * H)),             # b layer 0 (b_ih + b_hh)
            full((H, 4 * H)),             # W_ih layer 1 (bf16)
            full((H, 4 * H)),             # W_hh layer 1 (bf16)
            full((1, 4 * H)),             # b layer 1
            full((H, V)),                 # w_fc (bf16)
            full((1, V)),                 # b_fc
        ],
        out_specs=[
            full((B, V)),                 # logits (last step)
            full((2, B, H)),              # h_n
            full((2, B, H)),              # c_n
        ],
        scratch_shapes=[
            pltpu.VMEM((S, B, 4 * H), jnp.float32),   # precomputed x @ W_ih0 + b0
        ],
    )

    return pl.pallas_call(
        _lstm_fc_kernel,
        out_shape=(
            jax.ShapeDtypeStruct((B, V), jnp.float32),
            jax.ShapeDtypeStruct((2, B, H), jnp.float32),
            jax.ShapeDtypeStruct((2, B, H), jnp.float32),
        ),
        grid_spec=grid_spec,
        compiler_params=pltpu.CompilerParams(
            dimension_semantics=("arbitrary",),
            vmem_limit_bytes=32 * 1024 * 1024,   # explicit budget (v7x: 64 MiB physical)
        ),
    )(x_emb_tmaj, h_init, c_init,
      params["w_ih0"], params["w_hh0"], params["b0"],
      params["w_ih1"], params["w_hh1"], params["b1"],
      params["w_fc"], params["b_fc"])


# ------------------------------- Wrapper ------------------------------------

@jax.jit
def rnn_forward(tokens, hidden, params):
    """Pallas equivalent of RNN.forward(nn_input, hidden).

    tokens: (B, S) int32; hidden: tuple of (2, B, H) f32 arrays (h_0, c_0).
    Returns (logits_last_step (B, V), (h_n, c_n)).
    """
    h0, c0 = hidden
    # Embedding lookup directly in time-major; table is bf16 so the DMA into the
    # kernel is half the bytes and no in-kernel cast of x is needed.
    x_emb_tmaj = params["embedding"][tokens.T]          # (S, B, E) bf16
    logits, h_n, c_n = _lstm_fc_pallas(x_emb_tmaj, h0, c0, params)
    return logits, (h_n, c_n)


def make_params(key, vocab_size, embedding_dim, hidden_dim, output_size):
    ks = jax.random.split(key, 12)
    k = 1.0 / jnp.sqrt(hidden_dim)
    u = lambda kk, shape, lim: jax.random.uniform(kk, shape, jnp.float32, -lim, lim)
    H, E, V = hidden_dim, embedding_dim, output_size
    # LSTM weights stored transposed relative to PyTorch: (in_dim, 4H).
    # Gate column order is [i | f | o | g] (reordered so the kernel applies sigmoid to one
    # contiguous 3H slab and tanh to one H slab). Biases are pre-summed (b_ih + b_hh).
    return {
        "embedding": jax.random.normal(ks[0], (vocab_size, E), jnp.float32).astype(jnp.bfloat16),
        "w_ih0": u(ks[1], (E, 4 * H), k).astype(jnp.bfloat16),
        "w_hh0": u(ks[2], (H, 4 * H), k).astype(jnp.bfloat16),
        "b0": u(ks[3], (1, 4 * H), k) + u(ks[4], (1, 4 * H), k),
        "w_ih1": u(ks[5], (H, 4 * H), k).astype(jnp.bfloat16),
        "w_hh1": u(ks[6], (H, 4 * H), k).astype(jnp.bfloat16),
        "b1": u(ks[7], (1, 4 * H), k) + u(ks[8], (1, 4 * H), k),
        "w_fc": u(ks[9], (H, V), k).astype(jnp.bfloat16),
        "b_fc": u(ks[10], (1, V), k),
    }


# ------------------------- Pure-JAX reference (check) ------------------------

def rnn_forward_ref(tokens, hidden, params):
    """Identical math (same bf16 MXU operands, f32 accumulation, [i|f|o|g] gate order)."""
    h0, c0 = hidden
    x = params["embedding"][tokens]            # (B, S, E) bf16
    H = h0.shape[-1]

    def gates_to_hc(gates, c):
        sfo = jax.nn.sigmoid(gates[:, :3 * H])
        g = jnp.tanh(gates[:, 3 * H:])
        i, f, o = sfo[:, :H], sfo[:, H:2 * H], sfo[:, 2 * H:]
        c_new = f * c + i * g
        return o * jnp.tanh(c_new), c_new

    def step(carry, x_t):
        h0_, c0_, h1_, c1_ = carry
        g0 = (jnp.dot(x_t, params["w_ih0"], preferred_element_type=jnp.float32)
              + params["b0"]
              + jnp.dot(h0_.astype(jnp.bfloat16), params["w_hh0"],
                        preferred_element_type=jnp.float32))
        h0n, c0n = gates_to_hc(g0, c0_)
        g1 = (jnp.dot(h0n.astype(jnp.bfloat16), params["w_ih1"],
                      preferred_element_type=jnp.float32)
              + jnp.dot(h1_.astype(jnp.bfloat16), params["w_hh1"],
                        preferred_element_type=jnp.float32)
              + params["b1"])
        h1n, c1n = gates_to_hc(g1, c1_)
        return (h0n, c0n, h1n, c1n), h1n

    carry0 = (h0[0], c0[0], h0[1], c0[1])
    (h0n, c0n, h1n, c1n), ys = jax.lax.scan(step, carry0, jnp.transpose(x, (1, 0, 2)))
    logits = jnp.dot(ys[-1].astype(jnp.bfloat16), params["w_fc"],
                     preferred_element_type=jnp.float32) + params["b_fc"]
    return logits, (jnp.stack([h0n, h1n]), jnp.stack([c0n, c1n]))


# --------------------------------- Main --------------------------------------

if __name__ == "__main__":
    # Small shapes consistent with the module (vocab == output_size, 2-layer LSTM).
    # H and E chosen as 128 so gates / states are lane-aligned.
    B, S = 8, 8
    VOCAB = 256
    EMB = 128
    HID = 128
    N_LAYERS = 2

    key = jax.random.PRNGKey(0)
    k_params, k_tok, k_h, k_c = jax.random.split(key, 4)

    params = make_params(k_params, VOCAB, EMB, HID, VOCAB)
    tokens = jax.random.randint(k_tok, (B, S), 0, VOCAB, dtype=jnp.int32)
    # (PyTorch init_hidden uses zeros; random small values exercise the h/c plumbing harder.)
    h_init = 0.1 * jax.random.normal(k_h, (N_LAYERS, B, HID), jnp.float32)
    c_init = 0.1 * jax.random.normal(k_c, (N_LAYERS, B, HID), jnp.float32)

    logits, (h_n, c_n) = rnn_forward(tokens, (h_init, c_init), params)
    jax.block_until_ready((logits, h_n, c_n))

    # Sanity check against a pure-JAX reference with identical bf16 operand rounding.
    logits_r, (h_r, c_r) = rnn_forward_ref(tokens, (h_init, c_init), params)
    assert jnp.allclose(logits, logits_r, atol=1e-3, rtol=1e-3)
    assert jnp.allclose(h_n, h_r, atol=1e-3, rtol=1e-3)
    assert jnp.allclose(c_n, c_r, atol=1e-3, rtol=1e-3)
    assert logits.shape == (B, VOCAB)
    assert h_n.shape == (N_LAYERS, B, HID) and c_n.shape == (N_LAYERS, B, HID)

    print("KERNEL_OK")
</pallas_src>

<mosaic_0001>
module attributes {stable_mosaic.version = 11 : i64} {
  func.func @_lstm_fc_kernel(%arg0: i32, %arg1: memref<8x8x128xbf16, #tpu.memory_space<vmem>>, %arg2: memref<2x8x128xf32, #tpu.memory_space<vmem>>, %arg3: memref<2x8x128xf32, #tpu.memory_space<vmem>>, %arg4: memref<128x512xbf16, #tpu.memory_space<vmem>>, %arg5: memref<128x512xbf16, #tpu.memory_space<vmem>>, %arg6: memref<1x512xf32, #tpu.memory_space<vmem>>, %arg7: memref<128x512xbf16, #tpu.memory_space<vmem>>, %arg8: memref<128x512xbf16, #tpu.memory_space<vmem>>, %arg9: memref<1x512xf32, #tpu.memory_space<vmem>>, %arg10: memref<128x256xbf16, #tpu.memory_space<vmem>>, %arg11: memref<1x256xf32, #tpu.memory_space<vmem>>, %arg12: memref<8x256xf32, #tpu.memory_space<vmem>>, %arg13: memref<2x8x128xf32, #tpu.memory_space<vmem>>, %arg14: memref<2x8x128xf32, #tpu.memory_space<vmem>>, %arg15: memref<8x8x512xf32, #tpu.memory_space<vmem>>) attributes {dimension_semantics = [#tpu.dimension_semantics<arbitrary>], iteration_bounds = array<i64: 1>, scalar_prefetch = 0 : i64, scratch_operands = 1 : i64, tpu.core_type = #tpu.core_type<tc>, window_params = [{pipeline_mode = #tpu.pipeline_mode<synchronous>, transform_indices = @transform_0, window_bounds = array<i64: 8, 8, 128>}, {pipeline_mode = #tpu.pipeline_mode<synchronous>, transform_indices = @transform_1, window_bounds = array<i64: 2, 8, 128>}, {pipeline_mode = #tpu.pipeline_mode<synchronous>, transform_indices = @transform_2, window_bounds = array<i64: 2, 8, 128>}, {pipeline_mode = #tpu.pipeline_mode<synchronous>, transform_indices = @transform_3, window_bounds = array<i64: 128, 512>}, {pipeline_mode = #tpu.pipeline_mode<synchronous>, transform_indices = @transform_4, window_bounds = array<i64: 128, 512>}, {pipeline_mode = #tpu.pipeline_mode<synchronous>, transform_indices = @transform_5, window_bounds = array<i64: 1, 512>}, {pipeline_mode = #tpu.pipeline_mode<synchronous>, transform_indices = @transform_6, window_bounds = array<i64: 128, 512>}, {pipeline_mode = #tpu.pipeline_mode<synchronous>, transform_indices = @transform_7, window_bounds = array<i64: 128, 512>}, {pipeline_mode = #tpu.pipeline_mode<synchronous>, transform_indices = @transform_8, window_bounds = array<i64: 1, 512>}, {pipeline_mode = #tpu.pipeline_mode<synchronous>, transform_indices = @transform_9, window_bounds = array<i64: 128, 256>}, {pipeline_mode = #tpu.pipeline_mode<synchronous>, transform_indices = @transform_10, window_bounds = array<i64: 1, 256>}, {pipeline_mode = #tpu.pipeline_mode<synchronous>, transform_indices = @transform_11, window_bounds = array<i64: 8, 256>}, {pipeline_mode = #tpu.pipeline_mode<synchronous>, transform_indices = @transform_12, window_bounds = array<i64: 2, 8, 128>}, {pipeline_mode = #tpu.pipeline_mode<synchronous>, transform_indices = @transform_13, window_bounds = array<i64: 2, 8, 128>}]} {
    %c0 = arith.constant 0 : index
    %c0_0 = arith.constant 0 : index
    %c0_1 = arith.constant 0 : index
    %0 = vector.load %arg1[%c0, %c0_0, %c0_1] : memref<8x8x128xbf16, #tpu.memory_space<vmem>>, vector<8x8x128xbf16>
    %1 = vector.shape_cast %0 : vector<8x8x128xbf16> to vector<64x128xbf16>
    %c0_2 = arith.constant 0 : index
    %c0_3 = arith.constant 0 : index
    %2 = vector.load %arg4[%c0_2, %c0_3] : memref<128x512xbf16, #tpu.memory_space<vmem>>, vector<128x512xbf16>
    %cst = arith.constant dense<0.000000e+00> : vector<64x512xf32>
    %3 = tpu.matmul %1, %2, %cst {dimension_numbers = #tpu.dot_dimension_numbers<[1], [0], [0], [1], [0, 0, 1, 1], [], []>} : vector<64x128xbf16>, vector<128x512xbf16>, vector<64x512xf32> -> vector<64x512xf32>
    %c0_4 = arith.constant 0 : index
    %c0_5 = arith.constant 0 : index
    %4 = vector.load %arg6[%c0_4, %c0_5] : memref<1x512xf32, #tpu.memory_space<vmem>>, vector<1x512xf32>
    %5 = vector.broadcast %4 : vector<1x512xf32> to vector<64x512xf32>
    %6 = arith.addf %3, %5 : vector<64x512xf32>
    %7 = vector.shape_cast %6 : vector<64x512xf32> to vector<8x8x512xf32>
    %c0_6 = arith.constant 0 : index
    %c0_7 = arith.constant 0 : index
    %c0_8 = arith.constant 0 : index
    %8 = vector.load %arg15[%c0_6, %c0_7, %c0_8] : memref<8x8x512xf32, #tpu.memory_space<vmem>>, vector<8x8x512xf32>
    tpu.vector_store %arg15[%c0_6, %c0_7, %c0_8], %7 {strides = array<i32>} : memref<8x8x512xf32, #tpu.memory_space<vmem>>, vector<8x8x512xf32>,
    %c0_9 = arith.constant 0 : index
    %c0_10 = arith.constant 0 : index
    %9 = vector.load %arg5[%c0_9, %c0_10] : memref<128x512xbf16, #tpu.memory_space<vmem>>, vector<128x512xbf16>
    %c0_11 = arith.constant 0 : index
    %c0_12 = arith.constant 0 : index
    %10 = vector.load %arg7[%c0_11, %c0_12] : memref<128x512xbf16, #tpu.memory_space<vmem>>, vector<128x512xbf16>
    %c0_13 = arith.constant 0 : index
    %c0_14 = arith.constant 0 : index
    %11 = vector.load %arg8[%c0_13, %c0_14] : memref<128x512xbf16, #tpu.memory_space<vmem>>, vector<128x512xbf16>
    %c0_15 = arith.constant 0 : index
    %c0_16 = arith.constant 0 : index
    %12 = vector.load %arg9[%c0_15, %c0_16] : memref<1x512xf32, #tpu.memory_space<vmem>>, vector<1x512xf32>
    %13 = vector.shape_cast %12 : vector<1x512xf32> to vector<1x512xf32>
    %14 = vector.broadcast %13 : vector<1x512xf32> to vector<8x512xf32>
    %c0_17 = arith.constant 0 : index
    %c0_18 = arith.constant 0 : index
    %c0_19 = arith.constant 0 : index
    %15 = vector.load %arg2[%c0_17, %c0_18, %c0_19] : memref<2x8x128xf32, #tpu.memory_space<vmem>>, vector<1x8x128xf32>
    %16 = vector.shape_cast %15 : vector<1x8x128xf32> to vector<8x128xf32>
    %c0_20 = arith.constant 0 : index
    %c0_21 = arith.constant 0 : index
    %c0_22 = arith.constant 0 : index
    %17 = vector.load %arg3[%c0_20, %c0_21, %c0_22] : memref<2x8x128xf32, #tpu.memory_space<vmem>>, vector<1x8x128xf32>
    %18 = vector.shape_cast %17 : vector<1x8x128xf32> to vector<8x128xf32>
    %c1 = arith.constant 1 : index
    %c0_23 = arith.constant 0 : index
    %c0_24 = arith.constant 0 : index
    %19 = vector.load %arg2[%c1, %c0_23, %c0_24] : memref<2x8x128xf32, #tpu.memory_space<vmem>>, vector<1x8x128xf32>
    %20 = vector.shape_cast %19 : vector<1x8x128xf32> to vector<8x128xf32>
    %c1_25 = arith.constant 1 : index
    %c0_26 = arith.constant 0 : index
    %c0_27 = arith.constant 0 : index
    %21 = vector.load %arg3[%c1_25, %c0_26, %c0_27] : memref<2x8x128xf32, #tpu.memory_space<vmem>>, vector<1x8x128xf32>
    %22 = vector.shape_cast %21 : vector<1x8x128xf32> to vector<8x128xf32>
    %c0_i32 = arith.constant 0 : i32
    %23 = arith.index_cast %c0_i32 : i32 to index
    %c0_28 = arith.constant 0 : index
    %c0_29 = arith.constant 0 : index
    %24 = vector.load %arg15[%23, %c0_28, %c0_29] : memref<8x8x512xf32, #tpu.memory_space<vmem>>, vector<1x8x512xf32>
    %25 = vector.shape_cast %24 : vector<1x8x512xf32> to vector<8x512xf32>
    %26 = arith.truncf %16 : vector<8x128xf32> to vector<8x128xbf16>
    %cst_30 = arith.constant dense<0.000000e+00> : vector<8x512xf32>
    %27 = tpu.matmul %26, %9, %cst_30 {dimension_numbers = #tpu.dot_dimension_numbers<[1], [0], [0], [1], [0, 0, 1, 1], [], []>} : vector<8x128xbf16>, vector<128x512xbf16>, vector<8x512xf32> -> vector<8x512xf32>
    %28 = arith.addf %25, %27 : vector<8x512xf32>
    %29 = vector.extract_strided_slice %28 {offsets = [0, 0], sizes = [8, 384], strides = [1, 1]} : vector<8x512xf32> to vector<8x384xf32>
    %30 = arith.negf %29 : vector<8x384xf32>
    %31 = math.exp %30 : vector<8x384xf32>
    %cst_31 = arith.constant 1.000000e+00 : f32
    %32 = vector.broadcast %cst_31 : f32 to vector<8x384xf32>
    %33 = arith.addf %32, %31 : vector<8x384xf32>
    %34 = arith.divf %32, %33 : vector<8x384xf32>
    %35 = vector.extract_strided_slice %28 {offsets = [0, 384], sizes = [8, 128], strides = [1, 1]} : vector<8x512xf32> to vector<8x128xf32>
    %36 = math.tanh %35 : vector<8x128xf32>
    %37 = vector.extract_strided_slice %34 {offsets = [0, 0], sizes = [8, 128], strides = [1, 1]} : vector<8x384xf32> to vector<8x128xf32>
    %38 = vector.extract_strided_slice %34 {offsets = [0, 128], sizes = [8, 128], strides = [1, 1]} : vector<8x384xf32> to vector<8x128xf32>
    %39 = vector.extract_strided_slice %34 {offsets = [0, 256], sizes = [8, 128], strides = [1, 1]} : vector<8x384xf32> to vector<8x128xf32>
    %40 = arith.mulf %38, %18 : vector<8x128xf32>
    %41 = arith.mulf %37, %36 : vector<8x128xf32>
    %42 = arith.addf %40, %41 : vector<8x128xf32>
    %43 = math.tanh %42 : vector<8x128xf32>
    %44 = arith.mulf %39, %43 : vector<8x128xf32>
    %45 = arith.truncf %44 : vector<8x128xf32> to vector<8x128xbf16>
    %cst_32 = arith.constant dense<0.000000e+00> : vector<8x512xf32>
    %46 = tpu.matmul %45, %10, %cst_32 {dimension_numbers = #tpu.dot_dimension_numbers<[1], [0], [0], [1], [0, 0, 1, 1], [], []>} : vector<8x128xbf16>, vector<128x512xbf16>, vector<8x512xf32> -> vector<8x512xf32>
    %47 = arith.truncf %20 : vector<8x128xf32> to vector<8x128xbf16>
    %cst_33 = arith.constant dense<0.000000e+00> : vector<8x512xf32>
    %48 = tpu.matmul %47, %11, %cst_33 {dimension_numbers = #tpu.dot_dimension_numbers<[1], [0], [0], [1], [0, 0, 1, 1], [], []>} : vector<8x128xbf16>, vector<128x512xbf16>, vector<8x512xf32> -> vector<8x512xf32>
    %49 = arith.addf %46, %48 : vector<8x512xf32>
    %50 = arith.addf %49, %14 : vector<8x512xf32>
    %51 = vector.extract_strided_slice %50 {offsets = [0, 0], sizes = [8, 384], strides = [1, 1]} : vector<8x512xf32> to vector<8x384xf32>
    %52 = arith.negf %51 : vector<8x384xf32>
    %53 = math.exp %52 : vector<8x384xf32>
    %cst_34 = arith.constant 1.000000e+00 : f32
    %54 = vector.broadcast %cst_34 : f32 to vector<8x384xf32>
    %55 = arith.addf %54, %53 : vector<8x384xf32>
    %56 = arith.divf %54, %55 : vector<8x384xf32>
    %57 = vector.extract_strided_slice %50 {offsets = [0, 384], sizes = [8, 128], strides = [1, 1]} : vector<8x512xf32> to vector<8x128xf32>
    %58 = math.tanh %57 : vector<8x128xf32>
    %59 = vector.extract_strided_slice %56 {offsets = [0, 0], sizes = [8, 128], strides = [1, 1]} : vector<8x384xf32> to vector<8x128xf32>
    %60 = vector.extract_strided_slice %56 {offsets = [0, 128], sizes = [8, 128], strides = [1, 1]} : vector<8x384xf32> to vector<8x128xf32>
    %61 = vector.extract_strided_slice %56 {offsets = [0, 256], sizes = [8, 128], strides = [1, 1]} : vector<8x384xf32> to vector<8x128xf32>
    %62 = arith.mulf %60, %22 : vector<8x128xf32>
    %63 = arith.mulf %59, %58 : vector<8x128xf32>
    %64 = arith.addf %62, %63 : vector<8x128xf32>
    %65 = math.tanh %64 : vector<8x128xf32>
    %66 = arith.mulf %61, %65 : vector<8x128xf32>
    %c1_i32 = arith.constant 1 : i32
    %67 = arith.index_cast %c1_i32 : i32 to index
    %c0_35 = arith.constant 0 : index
    %c0_36 = arith.constant 0 : index
    %68 = vector.load %arg15[%67, %c0_35, %c0_36] : memref<8x8x512xf32, #tpu.memory_space<vmem>>, vector<1x8x512xf32>
    %69 = vector.shape_cast %68 : vector<1x8x512xf32> to vector<8x512xf32>
    %70 = arith.truncf %44 : vector<8x128xf32> to vector<8x128xbf16>
    %cst_37 = arith.constant dense<0.000000e+00> : vector<8x512xf32>
    %71 = tpu.matmul %70, %9, %cst_37 {dimension_numbers = #tpu.dot_dimension_numbers<[1], [0], [0], [1], [0, 0, 1, 1], [], []>} : vector<8x128xbf16>, vector<128x512xbf16>, vector<8x512xf32> -> vector<8x512xf32>
    %72 = arith.addf %69, %71 : vector<8x512xf32>
    %73 = vector.extract_strided_slice %72 {offsets = [0, 0], sizes = [8, 384], strides = [1, 1]} : vector<8x512xf32> to vector<8x384xf32>
    %74 = arith.negf %73 : vector<8x384xf32>
    %75 = math.exp %74 : vector<8x384xf32>
    %cst_38 = arith.constant 1.000000e+00 : f32
    %76 = vector.broadcast %cst_38 : f32 to vector<8x384xf32>
    %77 = arith.addf %76, %75 : vector<8x384xf32>
    %78 = arith.divf %76, %77 : vector<8x384xf32>
    %79 = vector.extract_strided_slice %72 {offsets = [0, 384], sizes = [8, 128], strides = [1, 1]} : vector<8x512xf32> to vector<8x128xf32>
    %80 = math.tanh %79 : vector<8x128xf32>
    %81 = vector.extract_strided_slice %78 {offsets = [0, 0], sizes = [8, 128], strides = [1, 1]} : vector<8x384xf32> to vector<8x128xf32>
    %82 = vector.extract_strided_slice %78 {offsets = [0, 128], sizes = [8, 128], strides = [1, 1]} : vector<8x384xf32> to vector<8x128xf32>
    %83 = vector.extract_strided_slice %78 {offsets = [0, 256], sizes = [8, 128], strides = [1, 1]} : vector<8x384xf32> to vector<8x128xf32>
    %84 = arith.mulf %82, %42 : vector<8x128xf32>
    %85 = arith.mulf %81, %80 : vector<8x128xf32>
    %86 = arith.addf %84, %85 : vector<8x128xf32>
    %87 = math.tanh %86 : vector<8x128xf32>
    %88 = arith.mulf %83, %87 : vector<8x128xf32>
    %89 = arith.truncf %88 : vector<8x128xf32> to vector<8x128xbf16>
    %cst_39 = arith.constant dense<0.000000e+00> : vector<8x512xf32>
    %90 = tpu.matmul %89, %10, %cst_39 {dimension_numbers = #tpu.dot_dimension_numbers<[1], [0], [0], [1], [0, 0, 1, 1], [], []>} : vector<8x128xbf16>, vector<128x512xbf16>, vector<8x512xf32> -> vector<8x512xf32>
    %91 = arith.truncf %66 : vector<8x128xf32> to vector<8x128xbf16>
    %cst_40 = arith.constant dense<0.000000e+00> : vector<8x512xf32>
    %92 = tpu.matmul %91, %11, %cst_40 {dimension_numbers = #tpu.dot_dimension_numbers<[1], [0], [0], [1], [0, 0, 1, 1], [], []>} : vector<8x128xbf16>, vector<128x512xbf16>, vector<8x512xf32> -> vector<8x512xf32>
    %93 = arith.addf %90, %92 : vector<8x512xf32>
    %94 = arith.addf %93, %14 : vector<8x512xf32>
    %95 = vector.extract_strided_slice %94 {offsets = [0, 0], sizes = [8, 384], strides = [1, 1]} : vector<8x512xf32> to vector<8x384xf32>
    %96 = arith.negf %95 : vector<8x384xf32>
    %97 = math.exp %96 : vector<8x384xf32>
    %cst_41 = arith.constant 1.000000e+00 : f32
    %98 = vector.broadcast %cst_41 : f32 to vector<8x384xf32>
    %99 = arith.addf %98, %97 : vector<8x384xf32>
    %100 = arith.divf %98, %99 : vector<8x384xf32>
    %101 = vector.extract_strided_slice %94 {offsets = [0, 384], sizes = [8, 128], strides = [1, 1]} : vector<8x512xf32> to vector<8x128xf32>
    %102 = math.tanh %101 : vector<8x128xf32>
    %103 = vector.extract_strided_slice %100 {offsets = [0, 0], sizes = [8, 128], strides = [1, 1]} : vector<8x384xf32> to vector<8x128xf32>
    %104 = vector.extract_strided_slice %100 {offsets = [0, 128], sizes = [8, 128], strides = [1, 1]} : vector<8x384xf32> to vector<8x128xf32>
    %105 = vector.extract_strided_slice %100 {offsets = [0, 256], sizes = [8, 128], strides = [1, 1]} : vector<8x384xf32> to vector<8x128xf32>
    %106 = arith.mulf %104, %64 : vector<8x128xf32>
    %107 = arith.mulf %103, %102 : vector<8x128xf32>
    %108 = arith.addf %106, %107 : vector<8x128xf32>
    %109 = math.tanh %108 : vector<8x128xf32>
    %110 = arith.mulf %105, %109 : vector<8x128xf32>
    %c2_i32 = arith.constant 2 : i32
    %111 = arith.index_cast %c2_i32 : i32 to index
    %c0_42 = arith.constant 0 : index
    %c0_43 = arith.constant 0 : index
    %112 = vector.load %arg15[%111, %c0_42, %c0_43] : memref<8x8x512xf32, #tpu.memory_space<vmem>>, vector<1x8x512xf32>
    %113 = vector.shape_cast %112 : vector<1x8x512xf32> to vector<8x512xf32>
    %114 = arith.truncf %88 : vector<8x128xf32> to vector<8x128xbf16>
    %cst_44 = arith.constant dense<0.000000e+00> : vector<8x512xf32>
    %115 = tpu.matmul %114, %9, %cst_44 {dimension_numbers = #tpu.dot_dimension_numbers<[1], [0], [0], [1], [0, 0, 1, 1], [], []>} : vector<8x128xbf16>, vector<128x512xbf16>, vector<8x512xf32> -> vector<8x512xf32>
    %116 = arith.addf %113, %115 : vector<8x512xf32>
    %117 = vector.extract_strided_slice %116 {offsets = [0, 0], sizes = [8, 384], strides = [1, 1]} : vector<8x512xf32> to vector<8x384xf32>
    %118 = arith.negf %117 : vector<8x384xf32>
    %119 = math.exp %118 : vector<8x384xf32>
    %cst_45 = arith.constant 1.000000e+00 : f32
    %120 = vector.broadcast %cst_45 : f32 to vector<8x384xf32>
    %121 = arith.addf %120, %119 : vector<8x384xf32>
    %122 = arith.divf %120, %121 : vector<8x384xf32>
    %123 = vector.extract_strided_slice %116 {offsets = [0, 384], sizes = [8, 128], strides = [1, 1]} : vector<8x512xf32> to vector<8x128xf32>
    %124 = math.tanh %123 : vector<8x128xf32>
    %125 = vector.extract_strided_slice %122 {offsets = [0, 0], sizes = [8, 128], strides = [1, 1]} : vector<8x384xf32> to vector<8x128xf32>
    %126 = vector.extract_strided_slice %122 {offsets = [0, 128], sizes = [8, 128], strides = [1, 1]} : vector<8x384xf32> to vector<8x128xf32>
    %127 = vector.extract_strided_slice %122 {offsets = [0, 256], sizes = [8, 128], strides = [1, 1]} : vector<8x384xf32> to vector<8x128xf32>
    %128 = arith.mulf %126, %86 : vector<8x128xf32>
    %129 = arith.mulf %125, %124 : vector<8x128xf32>
    %130 = arith.addf %128, %129 : vector<8x128xf32>
    %131 = math.tanh %130 : vector<8x128xf32>
    %132 = arith.mulf %127, %131 : vector<8x128xf32>
    %133 = arith.truncf %132 : vector<8x128xf32> to vector<8x128xbf16>
    %cst_46 = arith.constant dense<0.000000e+00> : vector<8x512xf32>
    %134 = tpu.matmul %133, %10, %cst_46 {dimension_numbers = #tpu.dot_dimension_numbers<[1], [0], [0], [1], [0, 0, 1, 1], [], []>} : vector<8x128xbf16>, vector<128x512xbf16>, vector<8x512xf32> -> vector<8x512xf32>
    %135 = arith.truncf %110 : vector<8x128xf32> to vector<8x128xbf16>
    %cst_47 = arith.constant dense<0.000000e+00> : vector<8x512xf32>
    %136 = tpu.matmul %135, %11, %cst_47 {dimension_numbers = #tpu.dot_dimension_numbers<[1], [0], [0], [1], [0, 0, 1, 1], [], []>} : vector<8x128xbf16>, vector<128x512xbf16>, vector<8x512xf32> -> vector<8x512xf32>
    %137 = arith.addf %134, %136 : vector<8x512xf32>
    %138 = arith.addf %137, %14 : vector<8x512xf32>
    %139 = vector.extract_strided_slice %138 {offsets = [0, 0], sizes = [8, 384], strides = [1, 1]} : vector<8x512xf32> to vector<8x384xf32>
    %140 = arith.negf %139 : vector<8x384xf32>
    %141 = math.exp %140 : vector<8x384xf32>
    %cst_48 = arith.constant 1.000000e+00 : f32
    %142 = vector.broadcast %cst_48 : f32 to vector<8x384xf32>
    %143 = arith.addf %142, %141 : vector<8x384xf32>
    %144 = arith.divf %142, %143 : vector<8x384xf32>
    %145 = vector.extract_strided_slice %138 {offsets = [0, 384], sizes = [8, 128], strides = [1, 1]} : vector<8x512xf32> to vector<8x128xf32>
    %146 = math.tanh %145 : vector<8x128xf32>
    %147 = vector.extract_strided_slice %144 {offsets = [0, 0], sizes = [8, 128], strides = [1, 1]} : vector<8x384xf32> to vector<8x128xf32>
    %148 = vector.extract_strided_slice %144 {offsets = [0, 128], sizes = [8, 128], strides = [1, 1]} : vector<8x384xf32> to vector<8x128xf32>
    %149 = vector.extract_strided_slice %144 {offsets = [0, 256], sizes = [8, 128], strides = [1, 1]} : vector<8x384xf32> to vector<8x128xf32>
    %150 = arith.mulf %148, %108 : vector<8x128xf32>
    %151 = arith.mulf %147, %146 : vector<8x128xf32>
    %152 = arith.addf %150, %151 : vector<8x128xf32>
    %153 = math.tanh %152 : vector<8x128xf32>
    %154 = arith.mulf %149, %153 : vector<8x128xf32>
    %c3_i32 = arith.constant 3 : i32
    %155 = arith.index_cast %c3_i32 : i32 to index
    %c0_49 = arith.constant 0 : index
    %c0_50 = arith.constant 0 : index
    %156 = vector.load %arg15[%155, %c0_49, %c0_50] : memref<8x8x512xf32, #tpu.memory_space<vmem>>, vector<1x8x512xf32>
    %157 = vector.shape_cast %156 : vector<1x8x512xf32> to vector<8x512xf32>
    %158 = arith.truncf %132 : vector<8x128xf32> to vector<8x128xbf16>
    %cst_51 = arith.constant dense<0.000000e+00> : vector<8x512xf32>
    %159 = tpu.matmul %158, %9, %cst_51 {dimension_numbers = #tpu.dot_dimension_numbers<[1], [0], [0], [1], [0, 0, 1, 1], [], []>} : vector<8x128xbf16>, vector<128x512xbf16>, vector<8x512xf32> -> vector<8x512xf32>
    %160 = arith.addf %157, %159 : vector<8x512xf32>
    %161 = vector.extract_strided_slice %160 {offsets = [0, 0], sizes = [8, 384], strides = [1, 1]} : vector<8x512xf32> to vector<8x384xf32>
    %162 = arith.negf %161 : vector<8x384xf32>
    %163 = math.exp %162 : vector<8x384xf32>
    %cst_52 = arith.constant 1.000000e+00 : f32
    %164 = vector.broadcast %cst_52 : f32 to vector<8x384xf32>
    %165 = arith.addf %164, %163 : vector<8x384xf32>
    %166 = arith.divf %164, %165 : vector<8x384xf32>
    %167 = vector.extract_strided_slice %160 {offsets = [0, 384], sizes = [8, 128], strides = [1, 1]} : vector<8x512xf32> to vector<8x128xf32>
    %168 = math.tanh %167 : vector<8x128xf32>
    %169 = vector.extract_strided_slice %166 {offsets = [0, 0], sizes = [8, 128], strides = [1, 1]} : vector<8x384xf32> to vector<8x128xf32>
    %170 = vector.extract_strided_slice %166 {offsets = [0, 128], sizes = [8, 128], strides = [1, 1]} : vector<8x384xf32> to vector<8x128xf32>
    %171 = vector.extract_strided_slice %166 {offsets = [0, 256], sizes = [8, 128], strides = [1, 1]} : vector<8x384xf32> to vector<8x128xf32>
    %172 = arith.mulf %170, %130 : vector<8x128xf32>
    %173 = arith.mulf %169, %168 : vector<8x128xf32>
    %174 = arith.addf %172, %173 : vector<8x128xf32>
    %175 = math.tanh %174 : vector<8x128xf32>
    %176 = arith.mulf %171, %175 : vector<8x128xf32>
    %177 = arith.truncf %176 : vector<8x128xf32> to vector<8x128xbf16>
    %cst_53 = arith.constant dense<0.000000e+00> : vector<8x512xf32>
    %178 = tpu.matmul %177, %10, %cst_53 {dimension_numbers = #tpu.dot_dimension_numbers<[1], [0], [0], [1], [0, 0, 1, 1], [], []>} : vector<8x128xbf16>, vector<128x512xbf16>, vector<8x512xf32> -> vector<8x512xf32>
    %179 = arith.truncf %154 : vector<8x128xf32> to vector<8x128xbf16>
    %cst_54 = arith.constant dense<0.000000e+00> : vector<8x512xf32>
    %180 = tpu.matmul %179, %11, %cst_54 {dimension_numbers = #tpu.dot_dimension_numbers<[1], [0], [0], [1], [0, 0, 1, 1], [], []>} : vector<8x128xbf16>, vector<128x512xbf16>, vector<8x512xf32> -> vector<8x512xf32>
    %181 = arith.addf %178, %180 : vector<8x512xf32>
    %182 = arith.addf %181, %14 : vector<8x512xf32>
    %183 = vector.extract_strided_slice %182 {offsets = [0, 0], sizes = [8, 384], strides = [1, 1]} : vector<8x512xf32> to vector<8x384xf32>
    %184 = arith.negf %183 : vector<8x384xf32>
    %185 = math.exp %184 : vector<8x384xf32>
    %cst_55 = arith.constant 1.000000e+00 : f32
    %186 = vector.broadcast %cst_55 : f32 to vector<8x384xf32>
    %187 = arith.addf %186, %185 : vector<8x384xf32>
    %188 = arith.divf %186, %187 : vector<8x384xf32>
    %189 = vector.extract_strided_slice %182 {offsets = [0, 384], sizes = [8, 128], strides = [1, 1]} : vector<8x512xf32> to vector<8x128xf32>
    %190 = math.tanh %189 : vector<8x128xf32>
    %191 = vector.extract_strided_slice %188 {offsets = [0, 0], sizes = [8, 128], strides = [1, 1]} : vector<8x384xf32> to vector<8x128xf32>
    %192 = vector.extract_strided_slice %188 {offsets = [0, 128], sizes = [8, 128], strides = [1, 1]} : vector<8x384xf32> to vector<8x128xf32>
    %193 = vector.extract_strided_slice %188 {offsets = [0, 256], sizes = [8, 128], strides = [1, 1]} : vector<8x384xf32> to vector<8x128xf32>
    %194 = arith.mulf %192, %152 : vector<8x128xf32>
    %195 = arith.mulf %191, %190 : vector<8x128xf32>
    %196 = arith.addf %194, %195 : vector<8x128xf32>
    %197 = math.tanh %196 : vector<8x128xf32>
    %198 = arith.mulf %193, %197 : vector<8x128xf32>
    %c4_i32 = arith.constant 4 : i32
    %199 = arith.index_cast %c4_i32 : i32 to index
    %c0_56 = arith.constant 0 : index
    %c0_57 = arith.constant 0 : index
    %200 = vector.load %arg15[%199, %c0_56, %c0_57] : memref<8x8x512xf32, #tpu.memory_space<vmem>>, vector<1x8x512xf32>
    %201 = vector.shape_cast %200 : vector<1x8x512xf32> to vector<8x512xf32>
    %202 = arith.truncf %176 : vector<8x128xf32> to vector<8x128xbf16>
    %cst_58 = arith.constant dense<0.000000e+00> : vector<8x512xf32>
    %203 = tpu.matmul %202, %9, %cst_58 {dimension_numbers = #tpu.dot_dimension_numbers<[1], [0], [0], [1], [0, 0, 1, 1], [], []>} : vector<8x128xbf16>, vector<128x512xbf16>, vector<8x512xf32> -> vector<8x512xf32>
    %204 = arith.addf %201, %203 : vector<8x512xf32>
    %205 = vector.extract_strided_slice %204 {offsets = [0, 0], sizes = [8, 384], strides = [1, 1]} : vector<8x512xf32> to vector<8x384xf32>
    %206 = arith.negf %205 : vector<8x384xf32>
    %207 = math.exp %206 : vector<8x384xf32>
    %cst_59 = arith.constant 1.000000e+00 : f32
    %208 = vector.broadcast %cst_59 : f32 to vector<8x384xf32>
    %209 = arith.addf %208, %207 : vector<8x384xf32>
    %210 = arith.divf %208, %209 : vector<8x384xf32>
    %211 = vector.extract_strided_slice %204 {offsets = [0, 384], sizes = [8, 128], strides = [1, 1]} : vector<8x512xf32> to vector<8x128xf32>
    %212 = math.tanh %211 : vector<8x128xf32>
    %213 = vector.extract_strided_slice %210 {offsets = [0, 0], sizes = [8, 128], strides = [1, 1]} : vector<8x384xf32> to vector<8x128xf32>
    %214 = vector.extract_strided_slice %210 {offsets = [0, 128], sizes = [8, 128], strides = [1, 1]} : vector<8x384xf32> to vector<8x128xf32>
    %215 = vector.extract_strided_slice %210 {offsets = [0, 256], sizes = [8, 128], strides = [1, 1]} : vector<8x384xf32> to vector<8x128xf32>
    %216 = arith.mulf %214, %174 : vector<8x128xf32>
    %217 = arith.mulf %213, %212 : vector<8x128xf32>
    %218 = arith.addf %216, %217 : vector<8x128xf32>
    %219 = math.tanh %218 : vector<8x128xf32>
    %220 = arith.mulf %215, %219 : vector<8x128xf32>
    %221 = arith.truncf %220 : vector<8x128xf32> to vector<8x128xbf16>
    %cst_60 = arith.constant dense<0.000000e+00> : vector<8x512xf32>
    %222 = tpu.matmul %221, %10, %cst_60 {dimension_numbers = #tpu.dot_dimension_numbers<[1], [0], [0], [1], [0, 0, 1, 1], [], []>} : vector<8x128xbf16>, vector<128x512xbf16>, vector<8x512xf32> -> vector<8x512xf32>
    %223 = arith.truncf %198 : vector<8x128xf32> to vector<8x128xbf16>
    %cst_61 = arith.constant dense<0.000000e+00> : vector<8x512xf32>
    %224 = tpu.matmul %223, %11, %cst_61 {dimension_numbers = #tpu.dot_dimension_numbers<[1], [0], [0], [1], [0, 0, 1, 1], [], []>} : vector<8x128xbf16>, vector<128x512xbf16>, vector<8x512xf32> -> vector<8x512xf32>
    %225 = arith.addf %222, %224 : vector<8x512xf32>
    %226 = arith.addf %225, %14 : vector<8x512xf32>
    %227 = vector.extract_strided_slice %226 {offsets = [0, 0], sizes = [8, 384], strides = [1, 1]} : vector<8x512xf32> to vector<8x384xf32>
    %228 = arith.negf %227 : vector<8x384xf32>
    %229 = math.exp %228 : vector<8x384xf32>
    %cst_62 = arith.constant 1.000000e+00 : f32
    %230 = vector.broadcast %cst_62 : f32 to vector<8x384xf32>
    %231 = arith.addf %230, %229 : vector<8x384xf32>
    %232 = arith.divf %230, %231 : vector<8x384xf32>
    %233 = vector.extract_strided_slice %226 {offsets = [0, 384], sizes = [8, 128], strides = [1, 1]} : vector<8x512xf32> to vector<8x128xf32>
    %234 = math.tanh %233 : vector<8x128xf32>
    %235 = vector.extract_strided_slice %232 {offsets = [0, 0], sizes = [8, 128], strides = [1, 1]} : vector<8x384xf32> to vector<8x128xf32>
    %236 = vector.extract_strided_slice %232 {offsets = [0, 128], sizes = [8, 128], strides = [1, 1]} : vector<8x384xf32> to vector<8x128xf32>
    %237 = vector.extract_strided_slice %232 {offsets = [0, 256], sizes = [8, 128], strides = [1, 1]} : vector<8x384xf32> to vector<8x128xf32>
    %238 = arith.mulf %236, %196 : vector<8x128xf32>
    %239 = arith.mulf %235, %234 : vector<8x128xf32>
    %240 = arith.addf %238, %239 : vector<8x128xf32>
    %241 = math.tanh %240 : vector<8x128xf32>
    %242 = arith.mulf %237, %241 : vector<8x128xf32>
    %c5_i32 = arith.constant 5 : i32
    %243 = arith.index_cast %c5_i32 : i32 to index
    %c0_63 = arith.constant 0 : index
    %c0_64 = arith.constant 0 : index
    %244 = vector.load %arg15[%243, %c0_63, %c0_64] : memref<8x8x512xf32, #tpu.memory_space<vmem>>, vector<1x8x512xf32>
    %245 = vector.shape_cast %244 : vector<1x8x512xf32> to vector<8x512xf32>
    %246 = arith.truncf %220 : vector<8x128xf32> to vector<8x128xbf16>
    %cst_65 = arith.constant dense<0.000000e+00> : vector<8x512xf32>
    %247 = tpu.matmul %246, %9, %cst_65 {dimension_numbers = #tpu.dot_dimension_numbers<[1], [0], [0], [1], [0, 0, 1, 1], [], []>} : vector<8x128xbf16>, vector<128x512xbf16>, vector<8x512xf32> -> vector<8x512xf32>
    %248 = arith.addf %245, %247 : vector<8x512xf32>
    %249 = vector.extract_strided_slice %248 {offsets = [0, 0], sizes = [8, 384], strides = [1, 1]} : vector<8x512xf32> to vector<8x384xf32>
    %250 = arith.negf %249 : vector<8x384xf32>
    %251 = math.exp %250 : vector<8x384xf32>
    %cst_66 = arith.constant 1.000000e+00 : f32
    %252 = vector.broadcast %cst_66 : f32 to vector<8x384xf32>
    %253 = arith.addf %252, %251 : vector<8x384xf32>
    %254 = arith.divf %252, %253 : vector<8x384xf32>
    %255 = vector.extract_strided_slice %248 {offsets = [0, 384], sizes = [8, 128], strides = [1, 1]} : vector<8x512xf32> to vector<8x128xf32>
    %256 = math.tanh %255 : vector<8x128xf32>
    %257 = vector.extract_strided_slice %254 {offsets = [0, 0], sizes = [8, 128], strides = [1, 1]} : vector<8x384xf32> to vector<8x128xf32>
    %258 = vector.extract_strided_slice %254 {offsets = [0, 128], sizes = [8, 128], strides = [1, 1]} : vector<8x384xf32> to vector<8x128xf32>
    %259 = vector.extract_strided_slice %254 {offsets = [0, 256], sizes = [8, 128], strides = [1, 1]} : vector<8x384xf32> to vector<8x128xf32>
    %260 = arith.mulf %258, %218 : vector<8x128xf32>
    %261 = arith.mulf %257, %256 : vector<8x128xf32>
    %262 = arith.addf %260, %261 : vector<8x128xf32>
    %263 = math.tanh %262 : vector<8x128xf32>
    %264 = arith.mulf %259, %263 : vector<8x128xf32>
    %265 = arith.truncf %264 : vector<8x128xf32> to vector<8x128xbf16>
    %cst_67 = arith.constant dense<0.000000e+00> : vector<8x512xf32>
    %266 = tpu.matmul %265, %10, %cst_67 {dimension_numbers = #tpu.dot_dimension_numbers<[1], [0], [0], [1], [0, 0, 1, 1], [], []>} : vector<8x128xbf16>, vector<128x512xbf16>, vector<8x512xf32> -> vector<8x512xf32>
    %267 = arith.truncf %242 : vector<8x128xf32> to vector<8x128xbf16>
    %cst_68 = arith.constant dense<0.000000e+00> : vector<8x512xf32>
    %268 = tpu.matmul %267, %11, %cst_68 {dimension_numbers = #tpu.dot_dimension_numbers<[1], [0], [0], [1], [0, 0, 1, 1], [], []>} : vector<8x128xbf16>, vector<128x512xbf16>, vector<8x512xf32> -> vector<8x512xf32>
    %269 = arith.addf %266, %268 : vector<8x512xf32>
    %270 = arith.addf %269, %14 : vector<8x512xf32>
    %271 = vector.extract_strided_slice %270 {offsets = [0, 0], sizes = [8, 384], strides = [1, 1]} : vector<8x512xf32> to vector<8x384xf32>
    %272 = arith.negf %271 : vector<8x384xf32>
    %273 = math.exp %272 : vector<8x384xf32>
    %cst_69 = arith.constant 1.000000e+00 : f32
    %274 = vector.broadcast %cst_69 : f32 to vector<8x384xf32>
    %275 = arith.addf %274, %273 : vector<8x384xf32>
    %276 = arith.divf %274, %275 : vector<8x384xf32>
    %277 = vector.extract_strided_slice %270 {offsets = [0, 384], sizes = [8, 128], strides = [1, 1]} : vector<8x512xf32> to vector<8x128xf32>
    %278 = math.tanh %277 : vector<8x128xf32>
    %279 = vector.extract_strided_slice %276 {offsets = [0, 0], sizes = [8, 128], strides = [1, 1]} : vector<8x384xf32> to vector<8x128xf32>
    %280 = vector.extract_strided_slice %276 {offsets = [0, 128], sizes = [8, 128], strides = [1, 1]} : vector<8x384xf32> to vector<8x128xf32>
    %281 = vector.extract_strided_slice %276 {offsets = [0, 256], sizes = [8, 128], strides = [1, 1]} : vector<8x384xf32> to vector<8x128xf32>
    %282 = arith.mulf %280, %240 : vector<8x128xf32>
    %283 = arith.mulf %279, %278 : vector<8x128xf32>
    %284 = arith.addf %282, %283 : vector<8x128xf32>
    %285 = math.tanh %284 : vector<8x128xf32>
    %286 = arith.mulf %281, %285 : vector<8x128xf32>
    %c6_i32 = arith.constant 6 : i32
    %287 = arith.index_cast %c6_i32 : i32 to index
    %c0_70 = arith.constant 0 : index
    %c0_71 = arith.constant 0 : index
    %288 = vector.load %arg15[%287, %c0_70, %c0_71] : memref<8x8x512xf32, #tpu.memory_space<vmem>>, vector<1x8x512xf32>
    %289 = vector.shape_cast %288 : vector<1x8x512xf32> to vector<8x512xf32>
    %290 = arith.truncf %264 : vector<8x128xf32> to vector<8x128xbf16>
    %cst_72 = arith.constant dense<0.000000e+00> : vector<8x512xf32>
    %291 = tpu.matmul %290, %9, %cst_72 {dimension_numbers = #tpu.dot_dimension_numbers<[1], [0], [0], [1], [0, 0, 1, 1], [], []>} : vector<8x128xbf16>, vector<128x512xbf16>, vector<8x512xf32> -> vector<8x512xf32>
    %292 = arith.addf %289, %291 : vector<8x512xf32>
    %293 = vector.extract_strided_slice %292 {offsets = [0, 0], sizes = [8, 384], strides = [1, 1]} : vector<8x512xf32> to vector<8x384xf32>
    %294 = arith.negf %293 : vector<8x384xf32>
    %295 = math.exp %294 : vector<8x384xf32>
    %cst_73 = arith.constant 1.000000e+00 : f32
    %296 = vector.broadcast %cst_73 : f32 to vector<8x384xf32>
    %297 = arith.addf %296, %295 : vector<8x384xf32>
    %298 = arith.divf %296, %297 : vector<8x384xf32>
    %299 = vector.extract_strided_slice %292 {offsets = [0, 384], sizes = [8, 128], strides = [1, 1]} : vector<8x512xf32> to vector<8x128xf32>
    %300 = math.tanh %299 : vector<8x128xf32>
    %301 = vector.extract_strided_slice %298 {offsets = [0, 0], sizes = [8, 128], strides = [1, 1]} : vector<8x384xf32> to vector<8x128xf32>
    %302 = vector.extract_strided_slice %298 {offsets = [0, 128], sizes = [8, 128], strides = [1, 1]} : vector<8x384xf32> to vector<8x128xf32>
    %303 = vector.extract_strided_slice %298 {offsets = [0, 256], sizes = [8, 128], strides = [1, 1]} : vector<8x384xf32> to vector<8x128xf32>
    %304 = arith.mulf %302, %262 : vector<8x128xf32>
    %305 = arith.mulf %301, %300 : vector<8x128xf32>
    %306 = arith.addf %304, %305 : vector<8x128xf32>
    %307 = math.tanh %306 : vector<8x128xf32>
    %308 = arith.mulf %303, %307 : vector<8x128xf32>
    %309 = arith.truncf %308 : vector<8x128xf32> to vector<8x128xbf16>
    %cst_74 = arith.constant dense<0.000000e+00> : vector<8x512xf32>
    %310 = tpu.matmul %309, %10, %cst_74 {dimension_numbers = #tpu.dot_dimension_numbers<[1], [0], [0], [1], [0, 0, 1, 1], [], []>} : vector<8x128xbf16>, vector<128x512xbf16>, vector<8x512xf32> -> vector<8x512xf32>
    %311 = arith.truncf %286 : vector<8x128xf32> to vector<8x128xbf16>
    %cst_75 = arith.constant dense<0.000000e+00> : vector<8x512xf32>
    %312 = tpu.matmul %311, %11, %cst_75 {dimension_numbers = #tpu.dot_dimension_numbers<[1], [0], [0], [1], [0, 0, 1, 1], [], []>} : vector<8x128xbf16>, vector<128x512xbf16>, vector<8x512xf32> -> vector<8x512xf32>
    %313 = arith.addf %310, %312 : vector<8x512xf32>
    %314 = arith.addf %313, %14 : vector<8x512xf32>
    %315 = vector.extract_strided_slice %314 {offsets = [0, 0], sizes = [8, 384], strides = [1, 1]} : vector<8x512xf32> to vector<8x384xf32>
    %316 = arith.negf %315 : vector<8x384xf32>
    %317 = math.exp %316 : vector<8x384xf32>
    %cst_76 = arith.constant 1.000000e+00 : f32
    %318 = vector.broadcast %cst_76 : f32 to vector<8x384xf32>
    %319 = arith.addf %318, %317 : vector<8x384xf32>
    %320 = arith.divf %318, %319 : vector<8x384xf32>
    %321 = vector.extract_strided_slice %314 {offsets = [0, 384], sizes = [8, 128], strides = [1, 1]} : vector<8x512xf32> to vector<8x128xf32>
    %322 = math.tanh %321 : vector<8x128xf32>
    %323 = vector.extract_strided_slice %320 {offsets = [0, 0], sizes = [8, 128], strides = [1, 1]} : vector<8x384xf32> to vector<8x128xf32>
    %324 = vector.extract_strided_slice %320 {offsets = [0, 128], sizes = [8, 128], strides = [1, 1]} : vector<8x384xf32> to vector<8x128xf32>
    %325 = vector.extract_strided_slice %320 {offsets = [0, 256], sizes = [8, 128], strides = [1, 1]} : vector<8x384xf32> to vector<8x128xf32>
    %326 = arith.mulf %324, %284 : vector<8x128xf32>
    %327 = arith.mulf %323, %322 : vector<8x128xf32>
    %328 = arith.addf %326, %327 : vector<8x128xf32>
    %329 = math.tanh %328 : vector<8x128xf32>
    %330 = arith.mulf %325, %329 : vector<8x128xf32>
    %c7_i32 = arith.constant 7 : i32
    %331 = arith.index_cast %c7_i32 : i32 to index
    %c0_77 = arith.constant 0 : index
    %c0_78 = arith.constant 0 : index
    %332 = vector.load %arg15[%331, %c0_77, %c0_78] : memref<8x8x512xf32, #tpu.memory_space<vmem>>, vector<1x8x512xf32>
    %333 = vector.shape_cast %332 : vector<1x8x512xf32> to vector<8x512xf32>
    %334 = arith.truncf %308 : vector<8x128xf32> to vector<8x128xbf16>
    %cst_79 = arith.constant dense<0.000000e+00> : vector<8x512xf32>
    %335 = tpu.matmul %334, %9, %cst_79 {dimension_numbers = #tpu.dot_dimension_numbers<[1], [0], [0], [1], [0, 0, 1, 1], [], []>} : vector<8x128xbf16>, vector<128x512xbf16>, vector<8x512xf32> -> vector<8x512xf32>
    %336 = arith.addf %333, %335 : vector<8x512xf32>
    %337 = vector.extract_strided_slice %336 {offsets = [0, 0], sizes = [8, 384], strides = [1, 1]} : vector<8x512xf32> to vector<8x384xf32>
    %338 = arith.negf %337 : vector<8x384xf32>
    %339 = math.exp %338 : vector<8x384xf32>
    %cst_80 = arith.constant 1.000000e+00 : f32
    %340 = vector.broadcast %cst_80 : f32 to vector<8x384xf32>
    %341 = arith.addf %340, %339 : vector<8x384xf32>
    %342 = arith.divf %340, %341 : vector<8x384xf32>
    %343 = vector.extract_strided_slice %336 {offsets = [0, 384], sizes = [8, 128], strides = [1, 1]} : vector<8x512xf32> to vector<8x128xf32>
    %344 = math.tanh %343 : vector<8x128xf32>
    %345 = vector.extract_strided_slice %342 {offsets = [0, 0], sizes = [8, 128], strides = [1, 1]} : vector<8x384xf32> to vector<8x128xf32>
    %346 = vector.extract_strided_slice %342 {offsets = [0, 128], sizes = [8, 128], strides = [1, 1]} : vector<8x384xf32> to vector<8x128xf32>
    %347 = vector.extract_strided_slice %342 {offsets = [0, 256], sizes = [8, 128], strides = [1, 1]} : vector<8x384xf32> to vector<8x128xf32>
    %348 = arith.mulf %346, %306 : vector<8x128xf32>
    %349 = arith.mulf %345, %344 : vector<8x128xf32>
    %350 = arith.addf %348, %349 : vector<8x128xf32>
    %351 = math.tanh %350 : vector<8x128xf32>
    %352 = arith.mulf %347, %351 : vector<8x128xf32>
    %353 = arith.truncf %352 : vector<8x128xf32> to vector<8x128xbf16>
    %cst_81 = arith.constant dense<0.000000e+00> : vector<8x512xf32>
    %354 = tpu.matmul %353, %10, %cst_81 {dimension_numbers = #tpu.dot_dimension_numbers<[1], [0], [0], [1], [0, 0, 1, 1], [], []>} : vector<8x128xbf16>, vector<128x512xbf16>, vector<8x512xf32> -> vector<8x512xf32>
    %355 = arith.truncf %330 : vector<8x128xf32> to vector<8x128xbf16>
    %cst_82 = arith.constant dense<0.000000e+00> : vector<8x512xf32>
    %356 = tpu.matmul %355, %11, %cst_82 {dimension_numbers = #tpu.dot_dimension_numbers<[1], [0], [0], [1], [0, 0, 1, 1], [], []>} : vector<8x128xbf16>, vector<128x512xbf16>, vector<8x512xf32> -> vector<8x512xf32>
    %357 = arith.addf %354, %356 : vector<8x512xf32>
    %358 = arith.addf %357, %14 : vector<8x512xf32>
    %359 = vector.extract_strided_slice %358 {offsets = [0, 0], sizes = [8, 384], strides = [1, 1]} : vector<8x512xf32> to vector<8x384xf32>
    %360 = arith.negf %359 : vector<8x384xf32>
    %361 = math.exp %360 : vector<8x384xf32>
    %cst_83 = arith.constant 1.000000e+00 : f32
    %362 = vector.broadcast %cst_83 : f32 to vector<8x384xf32>
    %363 = arith.addf %362, %361 : vector<8x384xf32>
    %364 = arith.divf %362, %363 : vector<8x384xf32>
    %365 = vector.extract_strided_slice %358 {offsets = [0, 384], sizes = [8, 128], strides = [1, 1]} : vector<8x512xf32> to vector<8x128xf32>
    %366 = math.tanh %365 : vector<8x128xf32>
    %367 = vector.extract_strided_slice %364 {offsets = [0, 0], sizes = [8, 128], strides = [1, 1]} : vector<8x384xf32> to vector<8x128xf32>
    %368 = vector.extract_strided_slice %364 {offsets = [0, 128], sizes = [8, 128], strides = [1, 1]} : vector<8x384xf32> to vector<8x128xf32>
    %369 = vector.extract_strided_slice %364 {offsets = [0, 256], sizes = [8, 128], strides = [1, 1]} : vector<8x384xf32> to vector<8x128xf32>
    %370 = arith.mulf %368, %328 : vector<8x128xf32>
    %371 = arith.mulf %367, %366 : vector<8x128xf32>
    %372 = arith.addf %370, %371 : vector<8x128xf32>
    %373 = math.tanh %372 : vector<8x128xf32>
    %374 = arith.mulf %369, %373 : vector<8x128xf32>
    %c8_i32 = arith.constant 8 : i32
    %375 = arith.truncf %374 : vector<8x128xf32> to vector<8x128xbf16>
    %c0_84 = arith.constant 0 : index
    %c0_85 = arith.constant 0 : index
    %376 = vector.load %arg10[%c0_84, %c0_85] : memref<128x256xbf16, #tpu.memory_space<vmem>>, vector<128x256xbf16>
    %cst_86 = arith.constant dense<0.000000e+00> : vector<8x256xf32>
    %377 = tpu.matmul %375, %376, %cst_86 {dimension_numbers = #tpu.dot_dimension_numbers<[1], [0], [0], [1], [0, 0, 1, 1], [], []>} : vector<8x128xbf16>, vector<128x256xbf16>, vector<8x256xf32> -> vector<8x256xf32>
    %c0_87 = arith.constant 0 : index
    %c0_88 = arith.constant 0 : index
    %378 = vector.load %arg11[%c0_87, %c0_88] : memref<1x256xf32, #tpu.memory_space<vmem>>, vector<1x256xf32>
    %379 = vector.broadcast %378 : vector<1x256xf32> to vector<8x256xf32>
    %380 = arith.addf %377, %379 : vector<8x256xf32>
    %c0_89 = arith.constant 0 : index
    %c0_90 = arith.constant 0 : index
    %381 = vector.load %arg12[%c0_89, %c0_90] : memref<8x256xf32, #tpu.memory_space<vmem>>, vector<8x256xf32>
    tpu.vector_store %arg12[%c0_89, %c0_90], %380 {strides = array<i32>} : memref<8x256xf32, #tpu.memory_space<vmem>>, vector<8x256xf32>,
    %c0_91 = arith.constant 0 : index
    %c0_92 = arith.constant 0 : index
    %c0_93 = arith.constant 0 : index
    %382 = vector.load %arg13[%c0_91, %c0_92, %c0_93] : memref<2x8x128xf32, #tpu.memory_space<vmem>>, vector<1x8x128xf32>
    %383 = vector.shape_cast %382 : vector<1x8x128xf32> to vector<8x128xf32>
    %384 = vector.shape_cast %352 : vector<8x128xf32> to vector<1x8x128xf32>
    tpu.vector_store %arg13[%c0_91, %c0_92, %c0_93], %384 {strides = array<i32>} : memref<2x8x128xf32, #tpu.memory_space<vmem>>, vector<1x8x128xf32>,
    %c1_94 = arith.constant 1 : index
    %c0_95 = arith.constant 0 : index
    %c0_96 = arith.constant 0 : index
    %385 = vector.load %arg13[%c1_94, %c0_95, %c0_96] : memref<2x8x128xf32, #tpu.memory_space<vmem>>, vector<1x8x128xf32>
    %386 = vector.shape_cast %385 : vector<1x8x128xf32> to vector<8x128xf32>
    %387 = vector.shape_cast %374 : vector<8x128xf32> to vector<1x8x128xf32>
    tpu.vector_store %arg13[%c1_94, %c0_95, %c0_96], %387 {strides = array<i32>} : memref<2x8x128xf32, #tpu.memory_space<vmem>>, vector<1x8x128xf32>,
    %c0_97 = arith.constant 0 : index
    %c0_98 = arith.constant 0 : index
    %c0_99 = arith.constant 0 : index
    %388 = vector.load %arg14[%c0_97, %c0_98, %c0_99] : memref<2x8x128xf32, #tpu.memory_space<vmem>>, vector<1x8x128xf32>
    %389 = vector.shape_cast %388 : vector<1x8x128xf32> to vector<8x128xf32>
    %390 = vector.shape_cast %350 : vector<8x128xf32> to vector<1x8x128xf32>
    tpu.vector_store %arg14[%c0_97, %c0_98, %c0_99], %390 {strides = array<i32>} : memref<2x8x128xf32, #tpu.memory_space<vmem>>, vector<1x8x128xf32>,
    %c1_100 = arith.constant 1 : index
    %c0_101 = arith.constant 0 : index
    %c0_102 = arith.constant 0 : index
    %391 = vector.load %arg14[%c1_100, %c0_101, %c0_102] : memref<2x8x128xf32, #tpu.memory_space<vmem>>, vector<1x8x128xf32>
    %392 = vector.shape_cast %391 : vector<1x8x128xf32> to vector<8x128xf32>
    %393 = vector.shape_cast %372 : vector<8x128xf32> to vector<1x8x128xf32>
    tpu.vector_store %arg14[%c1_100, %c0_101, %c0_102], %393 {strides = array<i32>} : memref<2x8x128xf32, #tpu.memory_space<vmem>>, vector<1x8x128xf32>,
    return
  }
  func.func @transform_0(%arg0: i32) -> (i32, i32, i32) {
    %c0_i32 = arith.constant 0 : i32
    %c0_i32_0 = arith.constant 0 : i32
    %c0_i32_1 = arith.constant 0 : i32
    %c0_i32_2 = arith.constant 0 : i32
    return %c0_i32, %c0_i32_0, %c0_i32_1 : i32, i32, i32
  }
  func.func @transform_1(%arg0: i32) -> (i32, i32, i32) {
    %c0_i32 = arith.constant 0 : i32
    %c0_i32_0 = arith.constant 0 : i32
    %c0_i32_1 = arith.constant 0 : i32
    %c0_i32_2 = arith.constant 0 : i32
    return %c0_i32, %c0_i32_0, %c0_i32_1 : i32, i32, i32
  }
  func.func @transform_2(%arg0: i32) -> (i32, i32, i32) {
    %c0_i32 = arith.constant 0 : i32
    %c0_i32_0 = arith.constant 0 : i32
    %c0_i32_1 = arith.constant 0 : i32
    %c0_i32_2 = arith.constant 0 : i32
    return %c0_i32, %c0_i32_0, %c0_i32_1 : i32, i32, i32
  }
  func.func @transform_3(%arg0: i32) -> (i32, i32) {
    %c0_i32 = arith.constant 0 : i32
    %c0_i32_0 = arith.constant 0 : i32
    %c0_i32_1 = arith.constant 0 : i32
    return %c0_i32, %c0_i32_0 : i32, i32
  }
  func.func @transform_4(%arg0: i32) -> (i32, i32) {
    %c0_i32 = arith.constant 0 : i32
    %c0_i32_0 = arith.constant 0 : i32
    %c0_i32_1 = arith.constant 0 : i32
    return %c0_i32, %c0_i32_0 : i32, i32
  }
  func.func @transform_5(%arg0: i32) -> (i32, i32) {
    %c0_i32 = arith.constant 0 : i32
    %c0_i32_0 = arith.constant 0 : i32
    %c0_i32_1 = arith.constant 0 : i32
    return %c0_i32, %c0_i32_0 : i32, i32
  }
  func.func @transform_6(%arg0: i32) -> (i32, i32) {
    %c0_i32 = arith.constant 0 : i32
    %c0_i32_0 = arith.constant 0 : i32
    %c0_i32_1 = arith.constant 0 : i32
    return %c0_i32, %c0_i32_0 : i32, i32
  }
  func.func @transform_7(%arg0: i32) -> (i32, i32) {
    %c0_i32 = arith.constant 0 : i32
    %c0_i32_0 = arith.constant 0 : i32
    %c0_i32_1 = arith.constant 0 : i32
    return %c0_i32, %c0_i32_0 : i32, i32
  }
  func.func @transform_8(%arg0: i32) -> (i32, i32) {
    %c0_i32 = arith.constant 0 : i32
    %c0_i32_0 = arith.constant 0 : i32
    %c0_i32_1 = arith.constant 0 : i32
    return %c0_i32, %c0_i32_0 : i32, i32
  }
  func.func @transform_9(%arg0: i32) -> (i32, i32) {
    %c0_i32 = arith.constant 0 : i32
    %c0_i32_0 = arith.constant 0 : i32
    %c0_i32_1 = arith.constant 0 : i32
    return %c0_i32, %c0_i32_0 : i32, i32
  }
  func.func @transform_10(%arg0: i32) -> (i32, i32) {
    %c0_i32 = arith.constant 0 : i32
    %c0_i32_0 = arith.constant 0 : i32
    %c0_i32_1 = arith.constant 0 : i32
    return %c0_i32, %c0_i32_0 : i32, i32
  }
  func.func @transform_11(%arg0: i32) -> (i32, i32) {
    %c0_i32 = arith.constant 0 : i32
    %c0_i32_0 = arith.constant 0 : i32
    %c0_i32_1 = arith.constant 0 : i32
    return %c0_i32, %c0_i32_0 : i32, i32
  }
  func.func @transform_12(%arg0: i32) -> (i32, i32, i32) {
    %c0_i32 = arith.constant 0 : i32
    %c0_i32_0 = arith.constant 0 : i32
    %c0_i32_1 = arith.constant 0 : i32
    %c0_i32_2 = arith.constant 0 : i32
    return %c0_i32, %c0_i32_0, %c0_i32_1 : i32, i32, i32
  }
  func.func @transform_13(%arg0: i32) -> (i32, i32, i32) {
    %c0_i32 = arith.constant 0 : i32
    %c0_i32_0 = arith.constant 0 : i32
    %c0_i32_1 = arith.constant 0 : i32
    %c0_i32_2 = arith.constant 0 : i32
    return %c0_i32, %c0_i32_0, %c0_i32_1 : i32, i32, i32
  }
}

</mosaic_0001>

<bundles_post_ra>
// kernel: rnn_forward.1
= control target key start
LH: loop header
LB: loop body
LE: loop exit
PB: predicated region body
PF: predicated region fallthrough
CT: control target
= control target key end

     0   :  { %19 = vsyncpa [#allocation4], 0  ;;  %s6995_s0 = inlined_call_operand.vmem [shape: bf16[8,8,128], index: 0, kind: input, shape index: {}]   ;;  %s6996_s1 = inlined_call_operand.hbm [shape: f32[2,8,128], index: 1, kind: input, shape index: {}]   ;;  %s6997_s2 = inlined_call_operand.hbm [shape: f32[2,8,128], index: 2, kind: input, shape index: {}]   ;;  %s6998_s3 = inlined_call_operand.vmem [shape: bf16[128,512], index: 3, kind: input, shape index: {}]   ;;  %s6999_s4 = inlined_call_operand.hbm [shape: bf16[128,512], index: 4, kind: input, shape index: {}]   ;;  %s7000_s5 = inlined_call_operand.hbm [shape: f32[1,512], index: 5, kind: input, shape index: {}]   ;;  %s7001_s6 = inlined_call_operand.hbm [shape: bf16[128,512], index: 6, kind: input, shape index: {}]   ;;  %s7002_s7 = inlined_call_operand.hbm [shape: bf16[128,512], index: 7, kind: input, shape index: {}]   ;;  %s7003_s8 = inlined_call_operand.hbm [shape: f32[1,512], index: 8, kind: input, shape index: {}]   ;;  %s7004_s9 = inlined_call_operand.vmem [shape: bf16[128,256], index: 9, kind: input, shape index: {}]   ;;  %s7005_s10 = inlined_call_operand.vmem [shape: f32[1,256], index: 10, kind: input, shape index: {}]   ;;  %s7006_s11 = inlined_call_operand.hbm [shape: f32[8,256], index: 11, kind: output, shape index: {0}]   ;;  %s7007_s12 = inlined_call_operand.hbm [shape: f32[2,8,128], index: 12, kind: output, shape index: {1}]   ;;  %s7008_s13 = inlined_call_operand.hbm [shape: f32[2,8,128], index: 13, kind: output, shape index: {2}]  }
   0x1   :  { %20 = vsyncpa [#allocation7], 0 }
   0x2   :  { %21 = vsyncpa [#allocation10], 0 }
   0x3   :  { %22 = vsyncpa [#allocation13], 0 }
   0x4   :  { %23 = vsyncpa [#allocation5], 0 }
   0x5   :  { %24 = vsyncpa [#allocation17], 0  ;;  %s4953_s25 = smov [#allocation6]   ;;  %s4954_s27 = smov [#allocation9]  }
   0x6   :  { %s44_s26 = sshll.u32 %s4953_s25, 4  ;;  %s71_s28 = sshll.u32 %s4954_s27, 4  ;;  %s45_s26 = int_to_ptr.vmem [resolvable:$true] %s44_s26  ;;  %s72_s28 = int_to_ptr.vmem [resolvable:$true] %s71_s28 }
   0x7   :  { %s4721_s14 = scalar_lea.hbm %s6997_s2, 256 }
   0x8   :  { %p4722_p0 = scmp.ne.s32.totalorder %s6997_s2, %s4721_s14  ;;  %p4725_p1 = scmp.lt.u32.totalorder %s4721_s14, %s6997_s2 }
   0xa   :  { %p4727_p2 = pnand %p4725_p1, %p4722_p0 }
   0xc   :  { %4730 = shalt.err (!%p4727_p2)
}
   0xd   :  { %s4731_s19 = scalar_lea.vmem %s45_s26, 256  ;;  %p4736_p4 = scmp.lt.s32.totalorder %s45_s26, %s45_s26 }
   0xe   :  { %p4732_p3 = scmp.ne.s32.totalorder %s45_s26, %s4731_s19  ;;  %p4737_p5 = scmp.lt.s32.totalorder %s4731_s19, %s4731_s19 }
  0x10   :  { %p4738_p6 = por %p4737_p5, %p4736_p4 }
  0x12   :  { %p4739_p7 = pnand %p4738_p6, %p4732_p3 }
  0x14   :  { %4742 = shalt.err (!%p4739_p7)
}
  0x15   :  { %s4955_s20 = smov 128   ;;  %s4956_s21 = smov 8  }
  0x16   :  { %50 = dma.hbm_to_vmem [thread:$0]  %s6997_s2, 256, %s45_s26, [#allocation7], %s4955_s20, %s4955_s20, %s4956_s21  }
  0x17   :  { %s4743_s27 = scalar_lea.hbm %s7000_s5, 64 }
  0x18   :  { %p4744_p8 = scmp.ne.s32.totalorder %s7000_s5, %s4743_s27  ;;  %p4747_p9 = scmp.lt.u32.totalorder %s4743_s27, %s7000_s5 }
  0x1a   :  { %p4749_p10 = pnand %p4747_p9, %p4744_p8 }
  0x1c   :  { %4752 = shalt.err (!%p4749_p10)
}
  0x1d   :  { %s4753_s16 = scalar_lea.vmem %s72_s28, 64  ;;  %p4758_p12 = scmp.lt.s32.totalorder %s72_s28, %s72_s28 }
  0x1e   :  { %p4754_p11 = scmp.ne.s32.totalorder %s72_s28, %s4753_s16  ;;  %p4759_p13 = scmp.lt.s32.totalorder %s4753_s16, %s4753_s16 }
  0x20   :  { %p4760_p0 = por %p4759_p13, %p4758_p12 }
  0x22   :  { %p4761_p1 = pnand %p4760_p0, %p4754_p11 }
  0x24   :  { %4764 = shalt.err (!%p4761_p1)
}
  0x25   :  { %74 = dma.hbm_to_vmem [thread:$0]  %s7000_s5, 64, %s72_s28, [#allocation10]  }
  0x26   :  { %s4957_s17 = smov [#allocation12]   ;;  %s4958_s19 = smov [#allocation3]  }
  0x27   :  { %s92_s18 = sshll.u32 %s4957_s17, 4  ;;  %s32_s22 = sshll.u32 %s4958_s19, 4  ;;  %s93_s18 = int_to_ptr.vmem [resolvable:$true] %s92_s18  ;;  %s5065_s22 = int_to_ptr.vmem [resolvable:$true] %s32_s22 }
  0x28   :  { %s4765_s25 = scalar_lea.hbm %s7002_s7, 4096 }
  0x29   :  { %p4766_p2 = scmp.ne.s32.totalorder %s7002_s7, %s4765_s25  ;;  %p4769_p3 = scmp.lt.u32.totalorder %s4765_s25, %s7002_s7 }
  0x2b   :  { %p4771_p4 = pnand %p4769_p3, %p4766_p2 }
  0x2d   :  { %4774 = shalt.err (!%p4771_p4)
}
  0x2e   :  { %s4775_s5 = scalar_lea.vmem %s93_s18, 4096  ;;  %p4780_p6 = scmp.lt.s32.totalorder %s93_s18, %s93_s18 }
  0x2f   :  { %p4776_p5 = scmp.ne.s32.totalorder %s93_s18, %s4775_s5  ;;  %p4781_p7 = scmp.lt.s32.totalorder %s4775_s5, %s4775_s5 }
  0x31   :  { %p4782_p8 = por %p4781_p7, %p4780_p6 }
  0x33   :  { %p4783_p9 = pnand %p4782_p8, %p4776_p5 }
  0x35   :  { %4786 = shalt.err (!%p4783_p9)
}
  0x36   :  { %s4959_s28 = smov 256   ;;  %s4960_s15 = smov 16  }
  0x37   :  { %98 = dma.hbm_to_vmem [thread:$0]  %s7002_s7, 4096, %s93_s18, [#allocation13], %s4959_s28, %s4959_s28, %s4960_s15  }
  0x38   :  { %s4787_s19 = scalar_lea.hbm %s6996_s1, 256 }
  0x39   :  { %p4788_p10 = scmp.ne.s32.totalorder %s6996_s1, %s4787_s19  ;;  %p4791_p11 = scmp.lt.u32.totalorder %s4787_s19, %s6996_s1 }
  0x3b   :  { %p4793_p12 = pnand %p4791_p11, %p4788_p10 }
  0x3d   :  { %4796 = shalt.err (!%p4793_p12)
}
  0x3e   :  { %s4797_s29 = scalar_lea.vmem %s5065_s22, 256  ;;  %p4802_p0 = scmp.lt.s32.totalorder %s5065_s22, %s5065_s22 }
  0x3f   :  { %p4798_p13 = scmp.ne.s32.totalorder %s5065_s22, %s4797_s29  ;;  %p4803_p1 = scmp.lt.s32.totalorder %s4797_s29, %s4797_s29 }
  0x41   :  { %p4804_p2 = por %p4803_p1, %p4802_p0 }
  0x43   :  { %p4805_p3 = pnand %p4804_p2, %p4798_p13 }
  0x45   :  { %4808 = shalt.err (!%p4805_p3)
}
  0x46   :  { %38 = dma.hbm_to_vmem [thread:$0]  %s6996_s1, 256, %s5065_s22, [#allocation4], %s4955_s20, %s4955_s20, %s4956_s21  }
  0x47   :  { %s4961_s30 = smov [#allocation8]   ;;  %s4962_s5 = smov [#allocation11]  }
  0x48   :  { %s58_s14 = sshll.u32 %s4961_s30, 4  ;;  %s80_s16 = sshll.u32 %s4962_s5, 4  ;;  %s59_s14 = int_to_ptr.vmem [resolvable:$true] %s58_s14  ;;  %s5102_s16 = int_to_ptr.vmem [resolvable:$true] %s80_s16 }
  0x49   :  { %s4809_s17 = scalar_lea.hbm %s6999_s4, 4096 }
  0x4a   :  { %p4810_p4 = scmp.ne.s32.totalorder %s6999_s4, %s4809_s17  ;;  %p4813_p5 = scmp.lt.u32.totalorder %s4809_s17, %s6999_s4 }
  0x4c   :  { %p4815_p6 = pnand %p4813_p5, %p4810_p4 }
  0x4e   :  { %4818 = shalt.err (!%p4815_p6)
}
  0x4f   :  { %s4819_s1 = scalar_lea.vmem %s59_s14, 4096  ;;  %p4824_p8 = scmp.lt.s32.totalorder %s59_s14, %s59_s14 }
  0x50   :  { %p4820_p7 = scmp.ne.s32.totalorder %s59_s14, %s4819_s1  ;;  %p4825_p9 = scmp.lt.s32.totalorder %s4819_s1, %s4819_s1 }
  0x52   :  { %p4826_p10 = por %p4825_p9, %p4824_p8 }
  0x54   :  { %p4827_p11 = pnand %p4826_p10, %p4820_p7 }
  0x56   :  { %4830 = shalt.err (!%p4827_p11)
}
  0x57   :  { %64 = dma.hbm_to_vmem [thread:$0]  %s6999_s4, 4096, %s59_s14, [#allocation7], %s4959_s28, %s4959_s28, %s4960_s15  }
  0x58   :  { %s4831_s18 = scalar_lea.hbm %s7001_s6, 4096 }
  0x59   :  { %p4832_p12 = scmp.ne.s32.totalorder %s7001_s6, %s4831_s18  ;;  %p4835_p13 = scmp.lt.u32.totalorder %s4831_s18, %s7001_s6 }
  0x5b   :  { %p4837_p0 = pnand %p4835_p13, %p4832_p12 }
  0x5d   :  { %4840 = shalt.err (!%p4837_p0)
}
  0x5e   :  { %s4841_s17 = scalar_lea.vmem %s5102_s16, 4096  ;;  %p4846_p2 = scmp.lt.s32.totalorder %s5102_s16, %s5102_s16 }
  0x5f   :  { %p4842_p1 = scmp.ne.s32.totalorder %s5102_s16, %s4841_s17  ;;  %p4847_p3 = scmp.lt.s32.totalorder %s4841_s17, %s4841_s17 }
  0x61   :  { %p4848_p4 = por %p4847_p3, %p4846_p2 }
  0x63   :  { %p4849_p5 = pnand %p4848_p4, %p4842_p1 }
  0x65   :  { %4852 = shalt.err (!%p4849_p5)
}
  0x66   :  { %86 = dma.hbm_to_vmem [thread:$0]  %s7001_s6, 4096, %s5102_s16, [#allocation10], %s4959_s28, %s4959_s28, %s4960_s15  }
  0x67   :  { %s4963_s19 = smov [#allocation14]   ;;  %s4853_s1 = scalar_lea.hbm %s7003_s8, 64 }
  0x68   :  { %s105_s23 = sshll.u32 %s4963_s19, 4  ;;  %p4854_p6 = scmp.ne.s32.totalorder %s7003_s8, %s4853_s1  ;;  %s106_s23 = int_to_ptr.vmem [resolvable:$true] %s105_s23 }
  0x69   :  { %p4857_p7 = scmp.lt.u32.totalorder %s4853_s1, %s7003_s8 }
  0x6b   :  { %p4859_p8 = pnand %p4857_p7, %p4854_p6 }
  0x6d   :  { %4862 = shalt.err (!%p4859_p8)
}
  0x6e   :  { %s4863_s18 = scalar_lea.vmem %s106_s23, 64  ;;  %p4868_p10 = scmp.lt.s32.totalorder %s106_s23, %s106_s23 }
  0x6f   :  { %p4864_p9 = scmp.ne.s32.totalorder %s106_s23, %s4863_s18  ;;  %p4869_p11 = scmp.lt.s32.totalorder %s4863_s18, %s4863_s18 }
  0x71   :  { %p4870_p12 = por %p4869_p11, %p4868_p10 }
  0x73   :  { %p4871_p13 = pnand %p4870_p12, %p4864_p9 }
  0x75   :  { %4874 = shalt.err (!%p4871_p13)
}
  0x76   :  { %108 = dma.hbm_to_vmem [thread:$0]  %s7003_s8, 64, %s106_s23, [#allocation13]  }
  0x77   :  { %4941 = dma.done.wait [#allocation4], 256  }
  0x78   :  { %4942 = vsyncadd [#allocation4], 4294967040 }
  0x79   :  { %4943 = dma.done.wait [#allocation7], 4352  }
  0x7a   :  { %4944 = vsyncadd [#allocation7], 4294962944 }
  0x7b   :  { %4945 = dma.done.wait [#allocation10], 4160  }
  0x7c   :  { %4946 = vsyncadd [#allocation10], 4294963136 }
  0x7d   :  { %4947 = dma.done.wait [#allocation13], 4160  }
  0x7e   :  { %4948 = vsyncadd [#allocation13], 4294963136  ;;  %v7009_v0 = vmov 0   ;;  %v4053_v1 = vld [vmem:[%s6998_s3 + $0x4] ss:$16 sps:$4 sm:$0xff]   ;;  %v4114_v44 = vld [vmem:[%s6995_s0 + $0x8] sm:$0xff]  }
  0x7f   :  { %413 = vmatprep.mubr.bf16.mxu0 %v7009_v0  ;;  %486 = vmatprep.mubr.bf16.mxu1 %v7009_v0  ;;  %v4055_v2 = vld [vmem:[%s6998_s3 + $0xc] ss:$16 sps:$4 sm:$0xff]   ;;  %v4057_v3 = vld [vmem:[%s6998_s3] ss:$16 sps:$4 sm:$0xff]   ;;  %v4058_v4 = vld [vmem:[%s6998_s3 + $0x8] ss:$16 sps:$4 sm:$0xff]  }
  0x80   :  { %381 = vmatprep.subr.bf16.mxu0 %v4053_v1  ;;  %454 = vmatprep.subr.bf16.mxu1 %v4055_v2  ;;  %v4059_v5 = vld [vmem:[%s6998_s3 + $0x24] ss:$16 sps:$4 sm:$0xff]   ;;  %v4061_v6 = vld [vmem:[%s6998_s3 + $0x2c] ss:$16 sps:$4 sm:$0xff]   ;;  %v4063_v7 = vld [vmem:[%s6998_s3 + $0x20] ss:$16 sps:$4 sm:$0xff]  }
  0x81   :  { %382 = vmatpush1.bf16.msra.mxu0 %v4057_v3  ;;  %455 = vmatpush1.bf16.msra.mxu1 %v4058_v4  ;;  %v4064_v8 = vld [vmem:[%s6998_s3 + $0x28] ss:$16 sps:$4 sm:$0xff]   ;;  %v4065_v9 = vld [vmem:[%s6998_s3 + $0x44] ss:$16 sps:$4 sm:$0xff]   ;;  %v4067_v10 = vld [vmem:[%s6998_s3 + $0x4c] ss:$16 sps:$4 sm:$0xff]  }
  0x82   :  { %383 = vmatprep.subr.bf16.mxu0 %v4059_v5  ;;  %456 = vmatprep.subr.bf16.mxu1 %v4061_v6  ;;  %v4069_v11 = vld [vmem:[%s6998_s3 + $0x40] ss:$16 sps:$4 sm:$0xff]   ;;  %v4070_v12 = vld [vmem:[%s6998_s3 + $0x48] ss:$16 sps:$4 sm:$0xff]   ;;  %v4071_v13 = vld [vmem:[%s6998_s3 + $0x64] ss:$16 sps:$4 sm:$0xff]  }
  0x83   :  { %v4073_v14 = vld [vmem:[%s6998_s3 + $0x6c] ss:$16 sps:$4 sm:$0xff]   ;;  %v4075_v15 = vld [vmem:[%s6998_s3 + $0x60] ss:$16 sps:$4 sm:$0xff]   ;;  %v4076_v16 = vld [vmem:[%s6998_s3 + $0x68] ss:$16 sps:$4 sm:$0xff]  }
  0x84   :  { %v4077_v17 = vld [vmem:[%s6998_s3 + $0x84] ss:$16 sps:$4 sm:$0xff]   ;;  %v4079_v18 = vld [vmem:[%s6998_s3 + $0x8c] ss:$16 sps:$4 sm:$0xff]   ;;  %v4081_v19 = vld [vmem:[%s6998_s3 + $0x80] ss:$16 sps:$4 sm:$0xff]  }
  0x85   :  { %384 = vmatpush1.bf16.msra.mxu0 %v4063_v7  ;;  %457 = vmatpush1.bf16.msra.mxu1 %v4064_v8  ;;  %v4082_v20 = vld [vmem:[%s6998_s3 + $0x88] ss:$16 sps:$4 sm:$0xff]   ;;  %v4083_v21 = vld [vmem:[%s6998_s3 + $0xa4] ss:$16 sps:$4 sm:$0xff]   ;;  %v4085_v22 = vld [vmem:[%s6998_s3 + $0xac] ss:$16 sps:$4 sm:$0xff]  }
  0x86   :  { %385 = vmatprep.subr.bf16.mxu0 %v4065_v9  ;;  %458 = vmatprep.subr.bf16.mxu1 %v4067_v10  ;;  %v4087_v23 = vld [vmem:[%s6998_s3 + $0xa0] ss:$16 sps:$4 sm:$0xff]   ;;  %v4088_v24 = vld [vmem:[%s6998_s3 + $0xa8] ss:$16 sps:$4 sm:$0xff]   ;;  %v4089_v25 = vld [vmem:[%s6998_s3 + $0xc4] ss:$16 sps:$4 sm:$0xff]  }
  0x87   :  { %v4091_v26 = vld [vmem:[%s6998_s3 + $0xcc] ss:$16 sps:$4 sm:$0xff]   ;;  %v4093_v27 = vld [vmem:[%s6998_s3 + $0xc0] ss:$16 sps:$4 sm:$0xff]   ;;  %v4094_v28 = vld [vmem:[%s6998_s3 + $0xc8] ss:$16 sps:$4 sm:$0xff]  }
  0x88   :  { %v4095_v29 = vld [vmem:[%s6998_s3 + $0xe4] ss:$16 sps:$4 sm:$0xff]   ;;  %v4097_v30 = vld [vmem:[%s6998_s3 + $0xec] ss:$16 sps:$4 sm:$0xff]   ;;  %v4099_v31 = vld [vmem:[%s6998_s3 + $0xe0] ss:$16 sps:$4 sm:$0xff]  }
  0x89   :  { %386 = vmatpush1.bf16.msra.mxu0 %v4069_v11  ;;  %459 = vmatpush1.bf16.msra.mxu1 %v4070_v12  ;;  %v4100_v32 = vld [vmem:[%s6998_s3 + $0xe8] ss:$16 sps:$4 sm:$0xff]   ;;  %v5249_v33 = vld [vmem:[#allocation8 + $0x4] ss:$16 sps:$4 sm:$0xff]   ;;  %v5251_v34 = vld [vmem:[#allocation8 + $0xc] ss:$16 sps:$4 sm:$0xff]  }
  0x8a   :  { %387 = vmatprep.subr.bf16.mxu0 %v4071_v13  ;;  %460 = vmatprep.subr.bf16.mxu1 %v4073_v14  ;;  %v4101_v35 = vld [vmem:[%s6995_s0] sm:$0xff]   ;;  %v5258_v37 = vld [vmem:[#allocation8 + $0x8] ss:$16 sps:$4 sm:$0xff]   ;;  %v5264_v39 = vld [vmem:[#allocation8 + $0x2c] ss:$16 sps:$4 sm:$0xff]  }
  0x8b   :  { %v5256_v36 = vld [vmem:[#allocation8] ss:$16 sps:$4 sm:$0xff]   ;;  %v5262_v38 = vld [vmem:[#allocation8 + $0x24] ss:$16 sps:$4 sm:$0xff]   ;;  %v5270_v41 = vld [vmem:[#allocation8 + $0x28] ss:$16 sps:$4 sm:$0xff]  }
  0x8c   :  { %v5266_v40 = vld [vmem:[#allocation8 + $0x20] ss:$16 sps:$4 sm:$0xff]   ;;  %v5274_v42 = vld [vmem:[#allocation8 + $0x44] ss:$16 sps:$4 sm:$0xff]   ;;  %v5276_v43 = vld [vmem:[#allocation8 + $0x4c] ss:$16 sps:$4 sm:$0xff]  }
  0x8d   :  { %388 = vmatpush1.bf16.msra.mxu0 %v4075_v15  ;;  %461 = vmatpush1.bf16.msra.mxu1 %v4076_v16  ;;  %v5283_v45 = vld [vmem:[#allocation8 + $0x40] ss:$16 sps:$4 sm:$0xff]   ;;  %v5285_v46 = vld [vmem:[#allocation8 + $0x48] ss:$16 sps:$4 sm:$0xff]   ;;  %v5289_v47 = vld [vmem:[#allocation8 + $0x64] ss:$16 sps:$4 sm:$0xff]  }
  0x8e   :  { %389 = vmatprep.subr.bf16.mxu0 %v4077_v17  ;;  %462 = vmatprep.subr.bf16.mxu1 %v4079_v18  ;;  %v5293_v48 = vld [vmem:[#allocation8 + $0x6c] ss:$16 sps:$4 sm:$0xff]   ;;  %v5295_v49 = vld [vmem:[#allocation8 + $0x60] ss:$16 sps:$4 sm:$0xff]   ;;  %v5297_v50 = vld [vmem:[#allocation8 + $0x68] ss:$16 sps:$4 sm:$0xff]  }
  0x8f   :  { %v5301_v51 = vld [vmem:[#allocation8 + $0x84] ss:$16 sps:$4 sm:$0xff]   ;;  %v5305_v52 = vld [vmem:[#allocation8 + $0x8c] ss:$16 sps:$4 sm:$0xff]   ;;  %v5312_v54 = vld [vmem:[#allocation8 + $0x80] ss:$16 sps:$4 sm:$0xff]  }
  0x90   :  { %v4127_v53 = vld [vmem:[%s6995_s0 + $0x10] sm:$0xff]   ;;  %v5314_v55 = vld [vmem:[#allocation8 + $0x88] ss:$16 sps:$4 sm:$0xff]   ;;  %v5318_v57 = vld [vmem:[#allocation8 + $0xac] ss:$16 sps:$4 sm:$0xff]  }
  0x91   :  { %390 = vmatpush1.bf16.msra.mxu0 %v4081_v19  ;;  %463 = vmatpush1.bf16.msra.mxu1 %v4082_v20  ;;  %v5316_v56 = vld [vmem:[#allocation8 + $0xa4] ss:$16 sps:$4 sm:$0xff]   ;;  %v5324_v58 = vld [vmem:[#allocation8 + $0xa0] ss:$16 sps:$4 sm:$0xff]   ;;  %v5326_v59 = vld [vmem:[#allocation8 + $0xa8] ss:$16 sps:$4 sm:$0xff]  }
  0x92   :  { %391 = vmatprep.subr.bf16.mxu0 %v4083_v21  ;;  %464 = vmatprep.subr.bf16.mxu1 %v4085_v22  ;;  %v5328_v60 = vld [vmem:[#allocation8 + $0xc4] ss:$16 sps:$4 sm:$0xff]   ;;  %v5330_v61 = vld [vmem:[#allocation8 + $0xcc] ss:$16 sps:$4 sm:$0xff]   ;;  %v5341_v63 = vld [vmem:[#allocation8 + $0xc0] ss:$16 sps:$4 sm:$0xff]  }
  0x93   :  { %v4140_v62 = vld [vmem:[%s6995_s0 + $0x18] sm:$0xff]   ;;  %v5345_v2 = vld [vmem:[#allocation8 + $0xe4] ss:$16 sps:$4 sm:$0xff]   ;;  %v5353_v4 = vld [vmem:[#allocation8 + $0xe0] ss:$16 sps:$4 sm:$0xff]  }
  0x94   :  { %v5343_v1 = vld [vmem:[#allocation8 + $0xc8] ss:$16 sps:$4 sm:$0xff]   ;;  %v5347_v3 = vld [vmem:[#allocation8 + $0xec] ss:$16 sps:$4 sm:$0xff]   ;;  %v677_v6 = vld [vmem:[#allocation3] sm:$0xff] }
  0x95   :  { %392 = vmatpush1.bf16.msra.mxu0 %v4087_v23  ;;  %465 = vmatpush1.bf16.msra.mxu1 %v4088_v24  ;;  %v5355_v5 = vld [vmem:[#allocation8 + $0xe8] ss:$16 sps:$4 sm:$0xff]   ;;  %v687_v7 = vpack.c.bf16 %v677_v6, %v677_v6  ;;  %v5369_v9 = vld [vmem:[#allocation12 + $0xc] ss:$16 sps:$4 sm:$0xff]   ;;  %v5371_v10 = vld [vmem:[#allocation12] ss:$16 sps:$4 sm:$0xff]  }
  0x96   :  { %393 = vmatprep.subr.bf16.mxu0 %v4089_v25  ;;  %466 = vmatprep.subr.bf16.mxu1 %v4091_v26  ;;  %v5367_v8 = vld [vmem:[#allocation12 + $0x4] ss:$16 sps:$4 sm:$0xff]   ;;  %v5374_v11 = vld [vmem:[#allocation12 + $0x8] ss:$16 sps:$4 sm:$0xff]   ;;  %v5381_v13 = vld [vmem:[#allocation12 + $0x2c] ss:$16 sps:$4 sm:$0xff]  }
  0x97   :  { %v5379_v12 = vld [vmem:[#allocation12 + $0x24] ss:$16 sps:$4 sm:$0xff]   ;;  %v5383_v14 = vld [vmem:[#allocation12 + $0x20] ss:$16 sps:$4 sm:$0xff]   ;;  %v5386_v15 = vld [vmem:[#allocation12 + $0x28] ss:$16 sps:$4 sm:$0xff]  }
  0x98   :  { %v5391_v16 = vld [vmem:[#allocation12 + $0x44] ss:$16 sps:$4 sm:$0xff]   ;;  %v5393_v17 = vld [vmem:[#allocation12 + $0x4c] ss:$16 sps:$4 sm:$0xff]   ;;  %v5395_v18 = vld [vmem:[#allocation12 + $0x40] ss:$16 sps:$4 sm:$0xff]  }
  0x99   :  { %394 = vmatpush1.bf16.msra.mxu0 %v4093_v27  ;;  %467 = vmatpush1.bf16.msra.mxu1 %v4094_v28  ;;  %7281 = vst [vmem:[#allocation25_spill] sm:$0xff] %v5391_v16  ;;  %7282 = vst [vmem:[#allocation26_spill] sm:$0xff] %v5393_v17  ;;  %v5398_v19 = vld [vmem:[#allocation12 + $0x48] ss:$16 sps:$4 sm:$0xff]   ;;  %v5403_v20 = vld [vmem:[#allocation12 + $0x64] ss:$16 sps:$4 sm:$0xff]  }
  0x9a   :  { %395 = vmatprep.subr.bf16.mxu0 %v4095_v29  ;;  %468 = vmatprep.subr.bf16.mxu1 %v4097_v30  ;;  %7283 = vst [vmem:[#allocation27_spill] sm:$0xff] %v5395_v18  ;;  %7284 = vst [vmem:[#allocation28_spill] sm:$0xff] %v5398_v19  ;;  %v5405_v21 = vld [vmem:[#allocation12 + $0x6c] ss:$16 sps:$4 sm:$0xff]   ;;  %v5407_v22 = vld [vmem:[#allocation12 + $0x60] ss:$16 sps:$4 sm:$0xff]  }
  0x9b   :  { %7285 = vst [vmem:[#allocation29_spill] sm:$0xff] %v5403_v20  ;;  %7286 = vst [vmem:[#allocation30_spill] sm:$0xff] %v5405_v21  ;;  %v5410_v23 = vld [vmem:[#allocation12 + $0x68] ss:$16 sps:$4 sm:$0xff]   ;;  %v5415_v24 = vld [vmem:[#allocation12 + $0x84] ss:$16 sps:$4 sm:$0xff]  }
  0x9c   :  { %7287 = vst [vmem:[#allocation31_spill] sm:$0xff] %v5407_v22  ;;  %7288 = vst [vmem:[#allocation32_spill] sm:$0xff] %v5410_v23  ;;  %v5417_v25 = vld [vmem:[#allocation12 + $0x8c] ss:$16 sps:$4 sm:$0xff]   ;;  %v5419_v26 = vld [vmem:[#allocation12 + $0x80] ss:$16 sps:$4 sm:$0xff]  }
  0x9d   :  { %396 = vmatpush1.bf16.msra.mxu0 %v4099_v31  ;;  %469 = vmatpush1.bf16.msra.mxu1 %v4100_v32  ;;  %7289 = vst [vmem:[#allocation33_spill] sm:$0xff] %v5415_v24  ;;  %7290 = vst [vmem:[#allocation34_spill] sm:$0xff] %v5417_v25  ;;  %v5422_v27 = vld [vmem:[#allocation12 + $0x88] ss:$16 sps:$4 sm:$0xff]   ;;  %v5427_v28 = vld [vmem:[#allocation12 + $0xa4] ss:$16 sps:$4 sm:$0xff]  }
  0x9e   :  { %848 = vmatprep.subr.bf16.mxu0 %v5249_v33  ;;  %889 = vmatprep.subr.bf16.mxu1 %v5251_v34  ;;  %7291 = vst [vmem:[#allocation35_spill] sm:$0xff] %v5419_v26  ;;  %7292 = vst [vmem:[#allocation36_spill] sm:$0xff] %v5422_v27  ;;  %v5429_v29 = vld [vmem:[#allocation12 + $0xac] ss:$16 sps:$4 sm:$0xff]   ;;  %v5431_v30 = vld [vmem:[#allocation12 + $0xa0] ss:$16 sps:$4 sm:$0xff]  }
  0x9f   :  { %7293 = vst [vmem:[#allocation37_spill] sm:$0xff] %v5427_v28  ;;  %7294 = vst [vmem:[#allocation38_spill] sm:$0xff] %v5429_v29  ;;  %v5434_v31 = vld [vmem:[#allocation12 + $0xa8] ss:$16 sps:$4 sm:$0xff]   ;;  %v5439_v32 = vld [vmem:[#allocation12 + $0xc4] ss:$16 sps:$4 sm:$0xff]  }
  0xa0   :  { %414 = vmatmul.mubr.bf16.vlgmr.msra.gmra.mrb[0].mxu0 %v4101_v35  ;;  %487 = vmatmul.mubr.bf16.vlgmr.msra.gmra.mrb[0].mxu1 %v4101_v35  ;;  %7295 = vst [vmem:[#allocation39_spill] sm:$0xff] %v5431_v30  ;;  %7296 = vst [vmem:[#allocation40_spill] sm:$0xff] %v5434_v31  ;;  %v5441_v35 = vld [vmem:[#allocation12 + $0xcc] ss:$16 sps:$4 sm:$0xff]  }
  0xa1   :  { %849 = vmatpush1.bf16.msra.mxu0 %v5256_v36  ;;  %890 = vmatpush1.bf16.msra.mxu1 %v5258_v37  ;;  %7297 = vst [vmem:[#allocation41_spill] sm:$0xff] %v5439_v32  ;;  %7298 = vst [vmem:[#allocation42_spill] sm:$0xff] %v5441_v35  ;;  %v5453_v6 = vld [vmem:[#allocation12 + $0xec] ss:$16 sps:$4 sm:$0xff]  }
  0xa2   :  { %850 = vmatprep.subr.bf16.mxu0 %v5262_v38  ;;  %891 = vmatprep.subr.bf16.mxu1 %v5264_v39  ;;  %7302 = vst [vmem:[#allocation46_spill] sm:$0xff] %v5453_v6 }
  0xa3   :  { %423 = vmatprep.mubr.bf16.mxu0 %v7009_v0  ;;  %496 = vmatprep.mubr.bf16.mxu1 %v7009_v0 }
  0xa5   :  { %851 = vmatpush1.bf16.msra.mxu0 %v5266_v40  ;;  %892 = vmatpush1.bf16.msra.mxu1 %v5270_v41 }
  0xa6   :  { %852 = vmatprep.subr.bf16.mxu0 %v5274_v42  ;;  %893 = vmatprep.subr.bf16.mxu1 %v5276_v43 }
  0xa8   :  { %424 = vmatmul.mubr.bf16.gmra.mrb[4].mxu0 %v4114_v44  ;;  %497 = vmatmul.mubr.bf16.gmra.mrb[4].mxu1 %v4114_v44  ;;  %v5443_v44 = vld [vmem:[#allocation12 + $0xc0] ss:$16 sps:$4 sm:$0xff]  }
  0xa9   :  { %853 = vmatpush1.bf16.msra.mxu0 %v5283_v45  ;;  %894 = vmatpush1.bf16.msra.mxu1 %v5285_v46  ;;  %7299 = vst [vmem:[#allocation43_spill] sm:$0xff] %v5443_v44 }
  0xaa   :  { %854 = vmatprep.subr.bf16.mxu0 %v5289_v47  ;;  %895 = vmatprep.subr.bf16.mxu1 %v5293_v48 }
  0xab   :  { %433 = vmatprep.mubr.bf16.mxu0 %v7009_v0  ;;  %506 = vmatprep.mubr.bf16.mxu1 %v7009_v0 }
  0xad   :  { %855 = vmatpush1.bf16.msra.mxu0 %v5295_v49  ;;  %896 = vmatpush1.bf16.msra.mxu1 %v5297_v50 }
  0xae   :  { %856 = vmatprep.subr.bf16.mxu0 %v5301_v51  ;;  %897 = vmatprep.subr.bf16.mxu1 %v5305_v52 }
  0xb0   :  { %434 = vmatmul.mubr.bf16.gmra.mrb[8].mxu0 %v4127_v53  ;;  %507 = vmatmul.mubr.bf16.gmra.mrb[8].mxu1 %v4127_v53  ;;  %v5446_v53 = vld [vmem:[#allocation12 + $0xc8] ss:$16 sps:$4 sm:$0xff]  }
  0xb1   :  { %857 = vmatpush1.bf16.msra.mxu0 %v5312_v54  ;;  %898 = vmatpush1.bf16.msra.mxu1 %v5314_v55  ;;  %7300 = vst [vmem:[#allocation44_spill] sm:$0xff] %v5446_v53 }
  0xb2   :  { %858 = vmatprep.subr.bf16.mxu0 %v5316_v56  ;;  %899 = vmatprep.subr.bf16.mxu1 %v5318_v57 }
  0xb3   :  { %443 = vmatprep.mubr.bf16.mxu0 %v7009_v0  ;;  %516 = vmatprep.mubr.bf16.mxu1 %v7009_v0 }
  0xb5   :  { %859 = vmatpush1.bf16.msra.mxu0 %v5324_v58  ;;  %900 = vmatpush1.bf16.msra.mxu1 %v5326_v59 }
  0xb6   :  { %860 = vmatprep.subr.bf16.mxu0 %v5328_v60  ;;  %901 = vmatprep.subr.bf16.mxu1 %v5330_v61 }
  0xb8   :  { %444 = vmatmul.mubr.bf16.gmra.mrb[12].mxu0 %v4140_v62  ;;  %517 = vmatmul.mubr.bf16.gmra.mrb[12].mxu1 %v4140_v62  ;;  %v5451_v62 = vld [vmem:[#allocation12 + $0xe4] ss:$16 sps:$4 sm:$0xff]  }
  0xb9   :  { %861 = vmatpush1.bf16.msra.mxu0 %v5341_v63  ;;  %902 = vmatpush1.bf16.msra.mxu1 %v5343_v1  ;;  %7301 = vst [vmem:[#allocation45_spill] sm:$0xff] %v5451_v62 }
  0xba   :  { %862 = vmatprep.subr.bf16.mxu0 %v5345_v2  ;;  %903 = vmatprep.subr.bf16.mxu1 %v5347_v3 }
  0xbb   :  { %880 = vmatprep.mubr.bf16.mxu0 %v7009_v0  ;;  %921 = vmatprep.mubr.bf16.mxu1 %v7009_v0 }
  0xbd   :  { %863 = vmatpush1.bf16.msra.mxu0 %v5353_v4  ;;  %904 = vmatpush1.bf16.msra.mxu1 %v5355_v5 }
  0xbe   :  { %1120 = vmatprep.subr.bf16.mxu0 %v5367_v8  ;;  %1161 = vmatprep.subr.bf16.mxu1 %v5369_v9 }
  0xc0   :  { %881 = vmatmul.mubr.bf16.vlgmr.msra.gmra.mrb[16].mxu0 %v687_v7  ;;  %922 = vmatmul.mubr.bf16.vlgmr.msra.gmra.mrb[16].mxu1 %v687_v7  ;;  %v5455_v7 = vld [vmem:[#allocation12 + $0xe0] ss:$16 sps:$4 sm:$0xff]  }
  0xc1   :  { %1152 = vmatprep.mubr.bf16.mxu0 %v7009_v0  ;;  %1193 = vmatprep.mubr.bf16.mxu1 %v7009_v0  ;;  %7303 = vst [vmem:[#allocation47_spill] sm:$0xff] %v5455_v7  ;;  %v5458_v0 = vld [vmem:[#allocation12 + $0xe8] ss:$16 sps:$4 sm:$0xff]  }
  0xc2   :  { %1121 = vmatpush1.bf16.msra.mxu0 %v5371_v10  ;;  %1162 = vmatpush1.bf16.msra.mxu1 %v5374_v11  ;;  %7304 = vst [vmem:[#allocation48_spill] sm:$0xff] %v5458_v0 }
  0xc3   :  { %1122 = vmatprep.subr.bf16.mxu0 %v5379_v12  ;;  %1163 = vmatprep.subr.bf16.mxu1 %v5381_v13 }
  0xc6   :  { %1123 = vmatpush1.bf16.msra.mxu0 %v5383_v14  ;;  %1164 = vmatpush1.bf16.msra.mxu1 %v5386_v15 }
  0xc7   :  { %1124 = vmatprep.subr.bf16.mxu0 %v5391_v16  ;;  %1165 = vmatprep.subr.bf16.mxu1 %v5393_v17 }
  0xca   :  { %1125 = vmatpush1.bf16.msra.mxu0 %v5395_v18  ;;  %1166 = vmatpush1.bf16.msra.mxu1 %v5398_v19 }
  0xcb   :  { %1126 = vmatprep.subr.bf16.mxu0 %v5403_v20  ;;  %1167 = vmatprep.subr.bf16.mxu1 %v5405_v21 }
  0xce   :  { %1127 = vmatpush1.bf16.msra.mxu0 %v5407_v22  ;;  %1168 = vmatpush1.bf16.msra.mxu1 %v5410_v23 }
  0xcf   :  { %1128 = vmatprep.subr.bf16.mxu0 %v5415_v24  ;;  %1169 = vmatprep.subr.bf16.mxu1 %v5417_v25 }
  0xd2   :  { %1129 = vmatpush1.bf16.msra.mxu0 %v5419_v26  ;;  %1170 = vmatpush1.bf16.msra.mxu1 %v5422_v27 }
  0xd3   :  { %1130 = vmatprep.subr.bf16.mxu0 %v5427_v28  ;;  %1171 = vmatprep.subr.bf16.mxu1 %v5429_v29  ;;  %v5535_v29 = vld [vmem:[#allocation11 + $0xcc] ss:$16 sps:$4 sm:$0xff]  }
  0xd4   :  { %7331 = vst [vmem:[#allocation74_spill] sm:$0xff] %v5535_v29 }
  0xd6   :  { %1131 = vmatpush1.bf16.msra.mxu0 %v5431_v30  ;;  %1172 = vmatpush1.bf16.msra.mxu1 %v5434_v31  ;;  %v5467_v31 = vld [vmem:[#allocation11] ss:$16 sps:$4 sm:$0xff]   ;;  %v5469_v30 = vld [vmem:[#allocation11 + $0x8] ss:$16 sps:$4 sm:$0xff]  }
  0xd7   :  { %1132 = vmatprep.subr.bf16.mxu0 %v5439_v32  ;;  %1173 = vmatprep.subr.bf16.mxu1 %v5441_v35  ;;  %v680_v32 = vld [vmem:[#allocation3 + $0x8] sm:$0xff]  ;;  %7307 = vst [vmem:[#allocation51_spill] sm:$0xff] %v5467_v31  ;;  %7308 = vst [vmem:[#allocation52_spill] sm:$0xff] %v5469_v30 }
  0xd8   :  { %v5463_v35 = vld [vmem:[#allocation11 + $0x4] ss:$16 sps:$4 sm:$0xff]  }
  0xd9   :  { %7305 = vst [vmem:[#allocation49_spill] sm:$0xff] %v5463_v35 }
  0xda   :  { %1133 = vmatpush1.bf16.msra.mxu0 %v5443_v44  ;;  %1174 = vmatpush1.bf16.msra.mxu1 %v5446_v53  ;;  %v959_v44 = vpack.c.bf16 %v680_v32, %v680_v32  ;;  %v5465_v53 = vld [vmem:[#allocation11 + $0xc] ss:$16 sps:$4 sm:$0xff]  }
  0xdb   :  { %1134 = vmatprep.subr.bf16.mxu0 %v5451_v62  ;;  %1175 = vmatprep.subr.bf16.mxu1 %v5453_v6  ;;  %7306 = vst [vmem:[#allocation50_spill] sm:$0xff] %v5465_v53  ;;  %v5477_v32 = vld [vmem:[#allocation11 + $0x2c] ss:$16 sps:$4 sm:$0xff]   ;;  %v5480_v6 = vld [vmem:[#allocation11 + $0x20] ss:$16 sps:$4 sm:$0xff]  }
  0xdc   :  { %7310 = vst [vmem:[#allocation54_spill] sm:$0xff] %v5477_v32  ;;  %7312 = vst [vmem:[#allocation55_spill] sm:$0xff] %v5480_v6  ;;  %v5482_v62 = vld [vmem:[#allocation11 + $0x28] ss:$16 sps:$4 sm:$0xff]  }
  0xdd   :  { %7313 = vst [vmem:[#allocation56_spill] sm:$0xff] %v5482_v62 }
  0xde   :  { %1135 = vmatpush1.bf16.msra.mxu0 %v5455_v7  ;;  %1176 = vmatpush1.bf16.msra.mxu1 %v5458_v0  ;;  %v5475_v0 = vld [vmem:[#allocation11 + $0x24] ss:$16 sps:$4 sm:$0xff]   ;;  %v7311_v7 = vmov 0  }
  0xdf   :  { %1362 = vmatprep.subr.bf16.mxu0 %v5463_v35  ;;  %1403 = vmatprep.subr.bf16.mxu1 %v5465_v53  ;;  %7309 = vst [vmem:[#allocation53_spill] sm:$0xff] %v5475_v0  ;;  %v5495_v53 = vld [vmem:[#allocation11 + $0x48] ss:$16 sps:$4 sm:$0xff]   ;;  %v5533_v35 = vld [vmem:[#allocation11 + $0xc4] ss:$16 sps:$4 sm:$0xff]  }
  0xe0   :  { %7317 = vst [vmem:[#allocation60_spill] sm:$0xff] %v5495_v53  ;;  %7330 = vst [vmem:[#allocation73_spill] sm:$0xff] %v5533_v35 }
  0xe1   :  { %1153 = vmatmul.mubr.bf16.vlgmr.msra.gmra.mrb[20].mxu0 %v959_v44  ;;  %1194 = vmatmul.mubr.bf16.vlgmr.msra.gmra.mrb[20].mxu1 %v959_v44  ;;  %v5489_v44 = vld [vmem:[#allocation11 + $0x44] ss:$16 sps:$4 sm:$0xff]  }
  0xe2   :  { %1363 = vmatpush1.bf16.msra.mxu0 %v5467_v31  ;;  %1404 = vmatpush1.bf16.msra.mxu1 %v5469_v30  ;;  %7314 = vst [vmem:[#allocation57_spill] sm:$0xff] %v5489_v44  ;;  %v5491_v30 = vld [vmem:[#allocation11 + $0x4c] ss:$16 sps:$4 sm:$0xff]   ;;  %v5493_v31 = vld [vmem:[#allocation11 + $0x40] ss:$16 sps:$4 sm:$0xff]  }
  0xe3   :  { %1394 = vmatprep.mubr.bf16.mxu0 %v7311_v7  ;;  %1435 = vmatprep.mubr.bf16.mxu1 %v7311_v7  ;;  %7315 = vst [vmem:[#allocation58_spill] sm:$0xff] %v5491_v30  ;;  %7316 = vst [vmem:[#allocation59_spill] sm:$0xff] %v5493_v31 }
  0xe4   :  { %1364 = vmatprep.subr.bf16.mxu0 %v5475_v0  ;;  %1405 = vmatprep.subr.bf16.mxu1 %v5477_v32  ;;  %v5501_v32 = vld [vmem:[#allocation11 + $0x64] ss:$16 sps:$4 sm:$0xff]   ;;  %v5507_v0 = vld [vmem:[#allocation11 + $0x68] ss:$16 sps:$4 sm:$0xff]  }
  0xe5   :  { %7318 = vst [vmem:[#allocation61_spill] sm:$0xff] %v5501_v32  ;;  %7321 = vst [vmem:[#allocation64_spill] sm:$0xff] %v5507_v0 }
  0xe6   :  { %1365 = vmatpush1.bf16.msra.mxu0 %v5480_v6  ;;  %1406 = vmatpush1.bf16.msra.mxu1 %v5482_v62  ;;  %v5503_v6 = vld [vmem:[#allocation11 + $0x6c] ss:$16 sps:$4 sm:$0xff]   ;;  %v5505_v62 = vld [vmem:[#allocation11 + $0x60] ss:$16 sps:$4 sm:$0xff]  }
  0xe7   :  { %1366 = vmatprep.subr.bf16.mxu0 %v5489_v44  ;;  %1407 = vmatprep.subr.bf16.mxu1 %v5491_v30  ;;  %7319 = vst [vmem:[#allocation62_spill] sm:$0xff] %v5503_v6  ;;  %7320 = vst [vmem:[#allocation63_spill] sm:$0xff] %v5505_v62  ;;  %v5513_v30 = vld [vmem:[#allocation11 + $0x84] ss:$16 sps:$4 sm:$0xff]   ;;  %v5519_v44 = vld [vmem:[#allocation11 + $0x88] ss:$16 sps:$4 sm:$0xff]  }
  0xe8   :  { %7322 = vst [vmem:[#allocation65_spill] sm:$0xff] %v5513_v30  ;;  %7325 = vst [vmem:[#allocation68_spill] sm:$0xff] %v5519_v44 }
  0xea   :  { %1367 = vmatpush1.bf16.msra.mxu0 %v5493_v31  ;;  %1408 = vmatpush1.bf16.msra.mxu1 %v5495_v53  ;;  %v5515_v31 = vld [vmem:[#allocation11 + $0x8c] ss:$16 sps:$4 sm:$0xff]   ;;  %v5517_v53 = vld [vmem:[#allocation11 + $0x80] ss:$16 sps:$4 sm:$0xff]  }
  0xeb   :  { %1368 = vmatprep.subr.bf16.mxu0 %v5501_v32  ;;  %1409 = vmatprep.subr.bf16.mxu1 %v5503_v6  ;;  %7323 = vst [vmem:[#allocation66_spill] sm:$0xff] %v5515_v31  ;;  %7324 = vst [vmem:[#allocation67_spill] sm:$0xff] %v5517_v53  ;;  %v5525_v6 = vld [vmem:[#allocation11 + $0xa4] ss:$16 sps:$4 sm:$0xff]   ;;  %v5531_v32 = vld [vmem:[#allocation11 + $0xa8] ss:$16 sps:$4 sm:$0xff]  }
  0xec   :  { %7326 = vst [vmem:[#allocation69_spill] sm:$0xff] %v5525_v6  ;;  %7329 = vst [vmem:[#allocation72_spill] sm:$0xff] %v5531_v32 }
  0xee   :  { %1369 = vmatpush1.bf16.msra.mxu0 %v5505_v62  ;;  %1410 = vmatpush1.bf16.msra.mxu1 %v5507_v0  ;;  %v5527_v62 = vld [vmem:[#allocation11 + $0xac] ss:$16 sps:$4 sm:$0xff]   ;;  %v5529_v0 = vld [vmem:[#allocation11 + $0xa0] ss:$16 sps:$4 sm:$0xff]  }
  0xef   :  { %1370 = vmatprep.subr.bf16.mxu0 %v5513_v30  ;;  %1411 = vmatprep.subr.bf16.mxu1 %v5515_v31  ;;  %7327 = vst [vmem:[#allocation70_spill] sm:$0xff] %v5527_v62  ;;  %7328 = vst [vmem:[#allocation71_spill] sm:$0xff] %v5529_v0  ;;  %v5546_v31 = vld [vmem:[#allocation11 + $0xe4] ss:$16 sps:$4 sm:$0xff]   ;;  %v5549_v30 = vld [vmem:[#allocation11 + $0xec] ss:$16 sps:$4 sm:$0xff]  }
  0xf0   :  { %7334 = vst [vmem:[#allocation77_spill] sm:$0xff] %v5546_v31  ;;  %7335 = vst [vmem:[#allocation78_spill] sm:$0xff] %v5549_v30 }
  0xf2   :  { %1371 = vmatpush1.bf16.msra.mxu0 %v5517_v53  ;;  %1412 = vmatpush1.bf16.msra.mxu1 %v5519_v44  ;;  %v5540_v53 = vld [vmem:[#allocation11 + $0xc0] ss:$16 sps:$4 sm:$0xff]   ;;  %v5544_v44 = vld [vmem:[#allocation11 + $0xc8] ss:$16 sps:$4 sm:$0xff]  }
  0xf3   :  { %1372 = vmatprep.subr.bf16.mxu0 %v5525_v6  ;;  %1413 = vmatprep.subr.bf16.mxu1 %v5527_v62  ;;  %7332 = vst [vmem:[#allocation75_spill] sm:$0xff] %v5540_v53  ;;  %7333 = vst [vmem:[#allocation76_spill] sm:$0xff] %v5544_v44  ;;  %v5552_v6 = vld [vmem:[#allocation11 + $0xe0] ss:$16 sps:$4 sm:$0xff]  }
  0xf4   :  { %7336 = vst [vmem:[#allocation79_spill] sm:$0xff] %v5552_v6 }
  0xf6   :  { %1373 = vmatpush1.bf16.msra.mxu0 %v5529_v0  ;;  %1414 = vmatpush1.bf16.msra.mxu1 %v5531_v32  ;;  %v5556_v0 = vld [vmem:[#allocation11 + $0xe8] ss:$16 sps:$4 sm:$0xff]   ;;  %v175_v32 = vld [vmem:[#allocation9] sm:$0xf] }
  0xf7   :  { %1374 = vmatprep.subr.bf16.mxu0 %v5533_v35  ;;  %1415 = vmatprep.subr.bf16.mxu1 %v5535_v29  ;;  %7337 = vst [vmem:[#allocation80_spill] sm:$0xff] %v5556_v0  ;;  %v177_v29 = vlaneseq }
  0xfa   :  { %1375 = vmatpush1.bf16.msra.mxu0 %v5540_v53  ;;  %1416 = vmatpush1.bf16.msra.mxu1 %v5544_v44  ;;  %v5563_v53 = vshrl.u32 %v177_v29, 7 }
  0xfb   :  { %1376 = vmatprep.subr.bf16.mxu0 %v5546_v31  ;;  %1417 = vmatprep.subr.bf16.mxu1 %v5549_v30 }
  0xfc   :  { %7338 = vst [vmem:[#allocation81_spill] sm:$0xff] %v5563_v53  ;;  %v7077_v35 = vsub.s32 2, %v5563_v53  ;;  %v7084_v44 = vsub.s32 3, %v5563_v53  ;;  %v5568_v31 = vsub.s32 0, %v5563_v53  ;;  %v5571_v30 = vsub.s32 1, %v5563_v53 }
  0xfe   :  { %1377 = vmatpush1.bf16.msra.mxu0 %v5552_v6  ;;  %1418 = vmatpush1.bf16.msra.mxu1 %v5556_v0  ;;  %7339 = vst [vmem:[#allocation82_spill] sm:$0xff] %v5568_v31  ;;  %7340 = vst [vmem:[#allocation83_spill] sm:$0xff] %v5571_v30  ;;  %v5575_v0 = vrot.slane %v175_v32, %v7077_v35  ;;  %v5583_v29 = vrot.slane %v175_v32, %v7084_v44 }
  0xff   :  { %1477 = vmatprep.subr.bf16.mxu0 %v5249_v33  ;;  %1518 = vmatprep.subr.bf16.mxu1 %v5251_v34  ;;  %v180_v6 = vrot.slane %v175_v32, %v5568_v31  ;;  %v184_v27 = vrot.slane %v175_v32, %v5571_v30 }
 0x173   :  { %v5577_v33 = vpop.f32.mrb[0].mxu0  ;;  %v5579_v34 = vpop.f32.mrb[0].mxu1 }
 0x174   :  { %v417_v62 = vpop.f32.mrb[1].mxu0  ;;  %v490_v28 = vpop.f32.mrb[1].mxu1 }
 0x175   :  { %v419_v26 = vpop.f32.mrb[2].mxu0  ;;  %v492_v25 = vpop.f32.mrb[2].mxu1 }
 0x176   :  { %v5587_v24 = vadd.f32 %v419_v26, %v180_v6  ;;  %v421_v35 = vpop.f32.mrb[3].mxu0  ;;  %v5590_v23 = vadd.f32 %v492_v25, %v5575_v0  ;;  %v494_v22 = vpop.f32.mrb[3].mxu1 }
 0x177   :  { %v5592_v21 = vadd.f32 %v421_v35, %v184_v27  ;;  %v5595_v44 = vadd.f32 %v494_v22, %v5583_v29 }
 0x178   :  { %7341 = vst [vmem:[#allocation84_spill] sm:$0xff] %v5587_v24  ;;  %7342 = vst [vmem:[#allocation85_spill] sm:$0xff] %v5590_v23 }
 0x179   :  { %7343 = vst [vmem:[#allocation86_spill] sm:$0xff] %v5592_v21  ;;  %7344 = vst [vmem:[#allocation87_spill] sm:$0xff] %v5595_v44 }
 0x17b   :  { %v425_v53 = vpop.f32.mrb[4].mxu0  ;;  %v498_v31 = vpop.f32.mrb[4].mxu1 }
 0x17c   :  { %v5597_v20 = vadd.f32 %v425_v53, %v180_v6  ;;  %v427_v19 = vpop.f32.mrb[5].mxu0  ;;  %v5600_v32 = vadd.f32 %v498_v31, %v5575_v0  ;;  %v500_v26 = vpop.f32.mrb[5].mxu1 }
 0x17d   :  { %v5602_v24 = vadd.f32 %v427_v19, %v184_v27  ;;  %v429_v30 = vpop.f32.mrb[6].mxu0  ;;  %v5605_v25 = vadd.f32 %v500_v26, %v5583_v29  ;;  %v502_v35 = vpop.f32.mrb[6].mxu1 }
 0x17e   :  { %7345 = vst [vmem:[#allocation88_spill] sm:$0xff] %v5597_v20  ;;  %7346 = vst [vmem:[#allocation89_spill] sm:$0xff] %v5600_v32  ;;  %v5607_v21 = vadd.f32 %v429_v30, %v180_v6  ;;  %v431_v22 = vpop.f32.mrb[7].mxu0  ;;  %v5610_v44 = vadd.f32 %v502_v35, %v5575_v0  ;;  %v504_v53 = vpop.f32.mrb[7].mxu1 }
 0x17f   :  { %7347 = vst [vmem:[#allocation90_spill] sm:$0xff] %v5602_v24  ;;  %7348 = vst [vmem:[#allocation91_spill] sm:$0xff] %v5605_v25  ;;  %v5612_v20 = vadd.f32 %v431_v22, %v184_v27  ;;  %v5615_v31 = vadd.f32 %v504_v53, %v5583_v29 }
 0x180   :  { %7349 = vst [vmem:[#allocation92_spill] sm:$0xff] %v5607_v21  ;;  %7350 = vst [vmem:[#allocation93_spill] sm:$0xff] %v5610_v44 }
 0x181   :  { %7351 = vst [vmem:[#allocation94_spill] sm:$0xff] %v5612_v20  ;;  %7352 = vst [vmem:[#allocation95_spill] sm:$0xff] %v5615_v31 }
 0x183   :  { %v435_v32 = vpop.f32.mrb[8].mxu0  ;;  %v508_v19 = vpop.f32.mrb[8].mxu1 }
 0x184   :  { %v5617_v24 = vadd.f32 %v435_v32, %v180_v6  ;;  %v437_v23 = vpop.f32.mrb[9].mxu0  ;;  %v5620_v26 = vadd.f32 %v508_v19, %v5575_v0  ;;  %v510_v30 = vpop.f32.mrb[9].mxu1 }
 0x185   :  { %v5622_v21 = vadd.f32 %v437_v23, %v184_v27  ;;  %v439_v25 = vpop.f32.mrb[10].mxu0  ;;  %v5625_v35 = vadd.f32 %v510_v30, %v5583_v29  ;;  %v512_v22 = vpop.f32.mrb[10].mxu1 }
 0x186   :  { %7353 = vst [vmem:[#allocation96_spill] sm:$0xff] %v5617_v24  ;;  %7354 = vst [vmem:[#allocation97_spill] sm:$0xff] %v5620_v26  ;;  %v5627_v20 = vadd.f32 %v439_v25, %v180_v6  ;;  %v441_v53 = vpop.f32.mrb[11].mxu0  ;;  %v5630_v31 = vadd.f32 %v512_v22, %v5575_v0  ;;  %v514_v32 = vpop.f32.mrb[11].mxu1 }
 0x187   :  { %7355 = vst [vmem:[#allocation98_spill] sm:$0xff] %v5622_v21  ;;  %7356 = vst [vmem:[#allocation99_spill] sm:$0xff] %v5625_v35  ;;  %v5632_v24 = vadd.f32 %v441_v53, %v184_v27  ;;  %v5635_v19 = vadd.f32 %v514_v32, %v5583_v29 }
 0x188   :  { %7357 = vst [vmem:[#allocation100_spill] sm:$0xff] %v5627_v20  ;;  %7358 = vst [vmem:[#allocation101_spill] sm:$0xff] %v5630_v31 }
 0x189   :  { %7359 = vst [vmem:[#allocation102_spill] sm:$0xff] %v5632_v24  ;;  %7360 = vst [vmem:[#allocation103_spill] sm:$0xff] %v5635_v19 }
 0x18b   :  { %v445_v26 = vpop.f32.mrb[12].mxu0  ;;  %v518_v23 = vpop.f32.mrb[12].mxu1 }
 0x18c   :  { %v5637_v21 = vadd.f32 %v445_v26, %v180_v6  ;;  %v447_v44 = vpop.f32.mrb[13].mxu0  ;;  %v5640_v30 = vadd.f32 %v518_v23, %v5575_v0  ;;  %v520_v25 = vpop.f32.mrb[13].mxu1 }
 0x18d   :  { %v5642_v20 = vadd.f32 %v447_v44, %v184_v27  ;;  %v449_v35 = vpop.f32.mrb[14].mxu0  ;;  %v5645_v22 = vadd.f32 %v520_v25, %v5583_v29  ;;  %v522_v53 = vpop.f32.mrb[14].mxu1  ;;  %v416_v44 = vadd.f32 %v5577_v33, %v180_v6  ;;  %v418_v25 = vadd.f32 %v417_v62, %v184_v27 }
 0x18e   :  { %7361 = vst [vmem:[#allocation104_spill] sm:$0xff] %v5637_v21  ;;  %7362 = vst [vmem:[#allocation105_spill] sm:$0xff] %v5640_v30  ;;  %v5647_v24 = vadd.f32 %v449_v35, %v180_v6  ;;  %v451_v32 = vpop.f32.mrb[15].mxu0  ;;  %v5650_v19 = vadd.f32 %v522_v53, %v5575_v0  ;;  %v524_v26 = vpop.f32.mrb[15].mxu1 }
 0x18f   :  { %7363 = vst [vmem:[#allocation106_spill] sm:$0xff] %v5642_v20  ;;  %7364 = vst [vmem:[#allocation107_spill] sm:$0xff] %v5645_v22  ;;  %v5652_v21 = vadd.f32 %v451_v32, %v184_v27  ;;  %v5655_v23 = vadd.f32 %v524_v26, %v5583_v29  ;;  %v489_v20 = vadd.f32 %v5579_v34, %v5575_v0 }
 0x190   :  { %7365 = vst [vmem:[#allocation108_spill] sm:$0xff] %v5647_v24  ;;  %7366 = vst [vmem:[#allocation109_spill] sm:$0xff] %v5650_v19  ;;  %v491_v22 = vadd.f32 %v490_v28, %v5583_v29 }
 0x191   :  { %7367 = vst [vmem:[#allocation110_spill] sm:$0xff] %v5652_v21  ;;  %7368 = vst [vmem:[#allocation111_spill] sm:$0xff] %v5655_v23 }
 0x193   :  { %v882_v35 = vpop.f32.mrb[16].mxu0  ;;  %v923_v24 = vpop.f32.mrb[16].mxu1 }
 0x194   :  { %v930_v30 = vadd.f32 %v882_v35, %v416_v44  ;;  %v932_v31 = vadd.f32 %v923_v24, %v489_v20  ;;  %v884_v53 = vpop.f32.mrb[17].mxu0  ;;  %v925_v19 = vpop.f32.mrb[17].mxu1  ;;  %v7391_v44 = vld [vmem:[#allocation47_spill] sm:$0xff]  ;;  %v7393_v35 = vld [vmem:[#allocation49_spill] sm:$0xff] }
 0x195   :  { %v931_v18 = vadd.f32 %v884_v53, %v418_v25  ;;  %v933_v32 = vadd.f32 %v925_v19, %v491_v22  ;;  %v886_v21 = vpop.f32.mrb[18].mxu0  ;;  %v927_v17 = vpop.f32.mrb[18].mxu1  ;;  %v7392_v25 = vld [vmem:[#allocation48_spill] sm:$0xff]  ;;  %v7394_v53 = vld [vmem:[#allocation50_spill] sm:$0xff] }
 0x196   :  { %v3910_v26 = vmul.f32 -1.442695, %v930_v30  ;;  %v887_v23 = vpop.f32.mrb[19].mxu0  ;;  %v928_v16 = vpop.f32.mrb[19].mxu1  ;;  %v3912_v0 = vmul.f32 -1.442695, %v932_v31 }
 0x197   :  { %v3911_v6 = vmul.f32 -1.442695, %v931_v18  ;;  %v678_v21 = vld [vmem:[#allocation6] sm:$0xff] }
 0x198   :  { %4273 = vpow2.f32 %v3910_v26  ;;  %v7395_v26 = vld [vmem:[#allocation82_spill] sm:$0xff] }
 0x199   :  { %4275 = vpow2.f32 %v3911_v6 }
 0x19a   :  { %4277 = vtanh.f32 %v933_v32  ;;  %v655_v32 = vld [vmem:[#allocation14] sm:$0xf] }
 0x19b   :  { %4279 = vpow2.f32 %v3912_v0  ;;  %v5733_v6 = vrot.slane %v655_v32, %v7395_v26 }
 0x1a2   :  { %v4274_v27 = vpop.eup %4273 }
 0x1a3   :  { %v943_v62 = vadd.f32 1.0, %v4274_v27  ;;  %v4276_v28 = vpop.eup %4275 }
 0x1a4   :  { %v944_v20 = vadd.f32 1.0, %v4276_v28  ;;  %v4278_v24 = vpop.eup %4277 }
 0x1a5   :  { %4281 = vrcp.f32 %v943_v62  ;;  %v4280_v33 = vpop.eup %4279  ;;  %v7396_v62 = vld [vmem:[#allocation83_spill] sm:$0xff] }
 0x1a6   :  { %4283 = vrcp.f32 %v944_v20  ;;  %v945_v19 = vadd.f32 1.0, %v4280_v33  ;;  %v5736_v28 = vrot.slane %v655_v32, %v7396_v62 }
 0x1a8   :  { %4285 = vrcp.f32 %v945_v19 }
 0x1af   :  { %v4282_v34 = vpop.eup %4281 }
 0x1b0   :  { %v954_v17 = vmul.f32 %v4282_v34, %v4278_v24  ;;  %v4284_v29 = vpop.eup %4283 }
 0x1b1   :  { %v953_v16 = vmul.f32 %v4284_v29, %v678_v21 }
 0x1b2   :  { %v4286_v31 = vpop.eup %4285 }
 0x1b3   :  { %v5661_v18 = vadd.f32 %v954_v17, %v953_v16 }
 0x1b5   :  { %4287 = vtanh.f32 %v5661_v18 }
 0x1bf   :  { %v4288_v30 = vpop.eup %4287 }
 0x1c0   :  { %v957_v22 = vmul.f32 %v4288_v30, %v4286_v31 }
 0x1c2   :  { %v958_v23 = vpack.c.bf16 %v957_v22, %v957_v22 }
 0x1c4   :  { %1395 = vmatmul.mubr.bf16.vlgmr.msra.gmra.mrb[24].mxu0 %v958_v23  ;;  %1436 = vmatmul.mubr.bf16.vlgmr.msra.gmra.mrb[24].mxu1 %v958_v23 }
 0x1c5   :  { %1478 = vmatpush1.bf16.msra.mxu0 %v5256_v36  ;;  %1519 = vmatpush1.bf16.msra.mxu1 %v5258_v37  ;;  %v7369_v36 = vld [vmem:[#allocation25_spill] sm:$0xff]  ;;  %v7370_v37 = vld [vmem:[#allocation26_spill] sm:$0xff] }
 0x1c6   :  { %1479 = vmatprep.subr.bf16.mxu0 %v5262_v38  ;;  %1520 = vmatprep.subr.bf16.mxu1 %v5264_v39  ;;  %v7371_v38 = vld [vmem:[#allocation27_spill] sm:$0xff]  ;;  %v7372_v39 = vld [vmem:[#allocation28_spill] sm:$0xff] }
 0x1c7   :  { %1509 = vmatprep.mubr.bf16.mxu0 %v7311_v7  ;;  %1550 = vmatprep.mubr.bf16.mxu1 %v7311_v7 }
 0x1c9   :  { %1480 = vmatpush1.bf16.msra.mxu0 %v5266_v40  ;;  %1521 = vmatpush1.bf16.msra.mxu1 %v5270_v41  ;;  %v7373_v40 = vld [vmem:[#allocation29_spill] sm:$0xff]  ;;  %v7374_v41 = vld [vmem:[#allocation30_spill] sm:$0xff] }
 0x1ca   :  { %1481 = vmatprep.subr.bf16.mxu0 %v5274_v42  ;;  %1522 = vmatprep.subr.bf16.mxu1 %v5276_v43  ;;  %v7375_v42 = vld [vmem:[#allocation31_spill] sm:$0xff]  ;;  %v7376_v43 = vld [vmem:[#allocation32_spill] sm:$0xff] }
 0x1cd   :  { %1482 = vmatpush1.bf16.msra.mxu0 %v5283_v45  ;;  %1523 = vmatpush1.bf16.msra.mxu1 %v5285_v46  ;;  %v7377_v45 = vld [vmem:[#allocation33_spill] sm:$0xff]  ;;  %v7378_v46 = vld [vmem:[#allocation34_spill] sm:$0xff] }
 0x1ce   :  { %1483 = vmatprep.subr.bf16.mxu0 %v5289_v47  ;;  %1524 = vmatprep.subr.bf16.mxu1 %v5293_v48  ;;  %v1154_v47 = vpop.f32.mrb[20].mxu0  ;;  %v7379_v48 = vld [vmem:[#allocation35_spill] sm:$0xff] }
 0x1d1   :  { %1484 = vmatpush1.bf16.msra.mxu0 %v5295_v49  ;;  %1525 = vmatpush1.bf16.msra.mxu1 %v5297_v50  ;;  %v7380_v49 = vld [vmem:[#allocation36_spill] sm:$0xff]  ;;  %v1156_v50 = vpop.f32.mrb[21].mxu0 }
 0x1d2   :  { %1485 = vmatprep.subr.bf16.mxu0 %v5301_v51  ;;  %1526 = vmatprep.subr.bf16.mxu1 %v5305_v52  ;;  %v7381_v51 = vld [vmem:[#allocation37_spill] sm:$0xff]  ;;  %v7382_v52 = vld [vmem:[#allocation38_spill] sm:$0xff] }
 0x1d5   :  { %1486 = vmatpush1.bf16.msra.mxu0 %v5312_v54  ;;  %1527 = vmatpush1.bf16.msra.mxu1 %v5314_v55  ;;  %v1158_v54 = vpop.f32.mrb[22].mxu0  ;;  %v1195_v55 = vpop.f32.mrb[20].mxu1 }
 0x1d6   :  { %1487 = vmatprep.subr.bf16.mxu0 %v5316_v56  ;;  %1528 = vmatprep.subr.bf16.mxu1 %v5318_v57  ;;  %v1159_v56 = vpop.f32.mrb[23].mxu0  ;;  %v1197_v57 = vpop.f32.mrb[21].mxu1 }
 0x1d7   :  { %v7397_v56 = vld [vmem:[#allocation81_spill] sm:$0xff] }
 0x1d9   :  { %1488 = vmatpush1.bf16.msra.mxu0 %v5324_v58  ;;  %1529 = vmatpush1.bf16.msra.mxu1 %v5326_v59  ;;  %v1199_v58 = vpop.f32.mrb[22].mxu1  ;;  %v7383_v59 = vld [vmem:[#allocation39_spill] sm:$0xff] }
 0x1da   :  { %1489 = vmatprep.subr.bf16.mxu0 %v5328_v60  ;;  %1530 = vmatprep.subr.bf16.mxu1 %v5330_v61  ;;  %v7384_v60 = vld [vmem:[#allocation40_spill] sm:$0xff]  ;;  %v1200_v61 = vpop.f32.mrb[23].mxu1  ;;  %v7398_v58 = vsub.s32 2, %v7397_v56 }
 0x1dc   :  { %v5742_v61 = vrot.slane %v655_v32, %v7398_v58 }
 0x1dd   :  { %1490 = vmatpush1.bf16.msra.mxu0 %v5341_v63  ;;  %1531 = vmatpush1.bf16.msra.mxu1 %v5343_v1  ;;  %v7385_v63 = vld [vmem:[#allocation41_spill] sm:$0xff]  ;;  %v7386_v1 = vld [vmem:[#allocation42_spill] sm:$0xff] }
 0x1de   :  { %1491 = vmatprep.subr.bf16.mxu0 %v5345_v2  ;;  %1532 = vmatprep.subr.bf16.mxu1 %v5347_v3  ;;  %v7387_v2 = vld [vmem:[#allocation43_spill] sm:$0xff]  ;;  %v7388_v3 = vld [vmem:[#allocation44_spill] sm:$0xff]  ;;  %7399 = vst [vmem:[#allocation25_spill] sm:$0xff] %v5742_v61 }
 0x1e1   :  { %1492 = vmatpush1.bf16.msra.mxu0 %v5353_v4  ;;  %1533 = vmatpush1.bf16.msra.mxu1 %v5355_v5  ;;  %v7389_v4 = vld [vmem:[#allocation45_spill] sm:$0xff]  ;;  %v7390_v5 = vld [vmem:[#allocation46_spill] sm:$0xff] }
 0x1e2   :  { %1589 = vmatprep.subr.bf16.mxu0 %v5367_v8  ;;  %1630 = vmatprep.subr.bf16.mxu1 %v5369_v9 }
 0x1e4   :  { %1510 = vmatmul.mubr.bf16.vlgmr.msra.gmra.mrb[28].mxu0 %v958_v23  ;;  %1551 = vmatmul.mubr.bf16.vlgmr.msra.gmra.mrb[28].mxu1 %v958_v23 }
 0x1e5   :  { %1590 = vmatpush1.bf16.msra.mxu0 %v5371_v10  ;;  %1631 = vmatpush1.bf16.msra.mxu1 %v5374_v11 }
 0x1e6   :  { %1591 = vmatprep.subr.bf16.mxu0 %v5379_v12  ;;  %1632 = vmatprep.subr.bf16.mxu1 %v5381_v13 }
 0x1e7   :  { %1621 = vmatprep.mubr.bf16.mxu0 %v7311_v7  ;;  %1662 = vmatprep.mubr.bf16.mxu1 %v7311_v7 }
 0x1e9   :  { %1592 = vmatpush1.bf16.msra.mxu0 %v5383_v14  ;;  %1633 = vmatpush1.bf16.msra.mxu1 %v5386_v15 }
 0x1ea   :  { %1593 = vmatprep.subr.bf16.mxu0 %v7369_v36  ;;  %1634 = vmatprep.subr.bf16.mxu1 %v7370_v37 }
 0x1ed   :  { %1594 = vmatpush1.bf16.msra.mxu0 %v7371_v38  ;;  %1635 = vmatpush1.bf16.msra.mxu1 %v7372_v39 }
 0x1ee   :  { %1595 = vmatprep.subr.bf16.mxu0 %v7373_v40  ;;  %1636 = vmatprep.subr.bf16.mxu1 %v7374_v41 }
 0x1f1   :  { %1596 = vmatpush1.bf16.msra.mxu0 %v7375_v42  ;;  %1637 = vmatpush1.bf16.msra.mxu1 %v7376_v43 }
 0x1f2   :  { %1597 = vmatprep.subr.bf16.mxu0 %v7377_v45  ;;  %1638 = vmatprep.subr.bf16.mxu1 %v7378_v46 }
 0x1f5   :  { %1598 = vmatpush1.bf16.msra.mxu0 %v7379_v48  ;;  %1639 = vmatpush1.bf16.msra.mxu1 %v7380_v49 }
 0x1f6   :  { %1599 = vmatprep.subr.bf16.mxu0 %v7381_v51  ;;  %1640 = vmatprep.subr.bf16.mxu1 %v7382_v52 }
 0x1f9   :  { %1600 = vmatpush1.bf16.msra.mxu0 %v7383_v59  ;;  %1641 = vmatpush1.bf16.msra.mxu1 %v7384_v60 }
 0x1fa   :  { %1601 = vmatprep.subr.bf16.mxu0 %v7385_v63  ;;  %1642 = vmatprep.subr.bf16.mxu1 %v7386_v1 }
 0x1fd   :  { %1602 = vmatpush1.bf16.msra.mxu0 %v7387_v2  ;;  %1643 = vmatpush1.bf16.msra.mxu1 %v7388_v3 }
 0x1fe   :  { %1603 = vmatprep.subr.bf16.mxu0 %v7389_v4  ;;  %1644 = vmatprep.subr.bf16.mxu1 %v7390_v5 }
 0x201   :  { %1604 = vmatpush1.bf16.msra.mxu0 %v7391_v44  ;;  %1645 = vmatpush1.bf16.msra.mxu1 %v7392_v25 }
 0x202   :  { %1671 = vmatprep.subr.bf16.mxu0 %v7393_v35  ;;  %1712 = vmatprep.subr.bf16.mxu1 %v7394_v53 }
 0x297   :  { %v1396_v0 = vpop.f32.mrb[24].mxu0  ;;  %v1437_v27 = vpop.f32.mrb[24].mxu1 }
 0x298   :  { %v1397_v20 = vadd.f32 %v1396_v0, %v1154_v47  ;;  %v1438_v24 = vadd.f32 %v1437_v27, %v1195_v55  ;;  %v1398_v33 = vpop.f32.mrb[25].mxu0  ;;  %v1439_v34 = vpop.f32.mrb[25].mxu1  ;;  %v7400_v47 = vsub.s32 3, %v7397_v56  ;;  %v7403_v56 = vld [vmem:[#allocation85_spill] sm:$0xff] }
 0x299   :  { %v1399_v21 = vadd.f32 %v1398_v33, %v1156_v50  ;;  %v1440_v17 = vadd.f32 %v1439_v34, %v1197_v57  ;;  %v1400_v29 = vpop.f32.mrb[26].mxu0  ;;  %v1441_v19 = vpop.f32.mrb[26].mxu1 }
 0x29a   :  { %v1444_v16 = vadd.f32 %v1397_v20, %v5733_v6  ;;  %v1401_v31 = vpop.f32.mrb[27].mxu0  ;;  %v1442_v30 = vpop.f32.mrb[27].mxu1  ;;  %v5746_v50 = vrot.slane %v655_v32, %v7400_v47  ;;  %v1446_v55 = vadd.f32 %v1438_v24, %v5742_v61 }
 0x29b   :  { %v1445_v22 = vadd.f32 %v1399_v21, %v5736_v28 }
 0x29c   :  { %v3977_v23 = vmul.f32 -1.442695, %v1444_v16  ;;  %7401 = vst [vmem:[#allocation26_spill] sm:$0xff] %v5746_v50  ;;  %v1447_v57 = vadd.f32 %v1440_v17, %v5746_v50  ;;  %v3979_v0 = vmul.f32 -1.442695, %v1446_v55  ;;  %v682_v16 = vld [vmem:[#allocation6 + $0x8] sm:$0xff] }
 0x29d   :  { %v3978_v54 = vmul.f32 -1.442695, %v1445_v22  ;;  %v7402_v17 = vld [vmem:[#allocation84_spill] sm:$0xff] }
 0x29e   :  { %4289 = vpow2.f32 %v3977_v23 }
 0x29f   :  { %4291 = vpow2.f32 %v3978_v54 }
 0x2a0   :  { %4293 = vtanh.f32 %v1447_v57  ;;  %v7404_v57 = vld [vmem:[#allocation86_spill] sm:$0xff] }
 0x2a1   :  { %4295 = vpow2.f32 %v3979_v0 }
 0x2a8   :  { %v4290_v27 = vpop.eup %4289 }
 0x2a9   :  { %v1457_v20 = vadd.f32 1.0, %v4290_v27  ;;  %v4292_v33 = vpop.eup %4291  ;;  %v7405_v27 = vld [vmem:[#allocation87_spill] sm:$0xff] }
 0x2aa   :  { %v1458_v34 = vadd.f32 1.0, %v4292_v33  ;;  %v4294_v21 = vpop.eup %4293 }
 0x2ab   :  { %4297 = vrcp.f32 %v1457_v20  ;;  %v4296_v29 = vpop.eup %4295 }
 0x2ac   :  { %4299 = vrcp.f32 %v1458_v34  ;;  %v1459_v30 = vadd.f32 1.0, %v4296_v29 }
 0x2ae   :  { %4301 = vrcp.f32 %v1459_v30  ;;  %v7406_v30 = vld [vmem:[#allocation51_spill] sm:$0xff] }
 0x2b5   :  { %v4298_v19 = vpop.eup %4297 }
 0x2b6   :  { %v1468_v31 = vmul.f32 %v4298_v19, %v4294_v21  ;;  %v4300_v32 = vpop.eup %4299 }
 0x2b7   :  { %v1511_v22 = vpop.f32.mrb[28].mxu0  ;;  %v1552_v24 = vpop.f32.mrb[28].mxu1  ;;  %v1467_v23 = vmul.f32 %v4300_v32, %v682_v16 }
 0x2b8   :  { %v1559_v54 = vadd.f32 %v1511_v22, %v7402_v17  ;;  %v1561_v58 = vadd.f32 %v1552_v24, %v7403_v56  ;;  %v1513_v47 = vpop.f32.mrb[29].mxu0  ;;  %v1554_v55 = vpop.f32.mrb[29].mxu1 }
 0x2b9   :  { %v1560_v0 = vadd.f32 %v1513_v47, %v7404_v57  ;;  %v1562_v20 = vadd.f32 %v1554_v55, %v7405_v27  ;;  %v1515_v33 = vpop.f32.mrb[30].mxu0  ;;  %v1556_v34 = vpop.f32.mrb[30].mxu1  ;;  %v5754_v62 = vadd.f32 %v1468_v31, %v1467_v23  ;;  %v7410_v55 = vld [vmem:[#allocation55_spill] sm:$0xff]  ;;  %v7411_v57 = vld [vmem:[#allocation56_spill] sm:$0xff]  ;;  %v7413_v27 = vld [vmem:[#allocation58_spill] sm:$0xff] }
 0x2ba   :  { %v3980_v21 = vmul.f32 -1.442695, %v1559_v54  ;;  %v1516_v19 = vpop.f32.mrb[31].mxu0  ;;  %v1557_v29 = vpop.f32.mrb[31].mxu1  ;;  %v3982_v32 = vmul.f32 -1.442695, %v1561_v58 }
 0x2bb   :  { %v3981_v26 = vmul.f32 -1.442695, %v1560_v0  ;;  %4303 = vtanh.f32 %v5754_v62  ;;  %v4302_v16 = vpop.eup %4301  ;;  %v7407_v54 = vld [vmem:[#allocation52_spill] sm:$0xff]  ;;  %v7409_v58 = vld [vmem:[#allocation54_spill] sm:$0xff]  ;;  %v7412_v0 = vld [vmem:[#allocation57_spill] sm:$0xff] }
 0x2bc   :  { %4305 = vpow2.f32 %v3980_v21  ;;  %v7414_v21 = vld [vmem:[#allocation59_spill] sm:$0xff]  ;;  %v7415_v19 = vld [vmem:[#allocation60_spill] sm:$0xff] }
 0x2bd   :  { %4307 = vpow2.f32 %v3981_v26  ;;  %v7408_v26 = vld [vmem:[#allocation53_spill] sm:$0xff] }
 0x2be   :  { %4309 = vtanh.f32 %v1562_v20 }
 0x2bf   :  { %4311 = vpow2.f32 %v3982_v32  ;;  %v7417_v32 = vld [vmem:[#allocation62_spill] sm:$0xff] }
 0x2c5   :  { %v4304_v22 = vpop.eup %4303 }
 0x2c6   :  { %v4306_v24 = vpop.eup %4305  ;;  %v1471_v17 = vmul.f32 %v4304_v22, %v4302_v16  ;;  %v7416_v16 = vld [vmem:[#allocation61_spill] sm:$0xff] }
 0x2c7   :  { %v1572_v56 = vadd.f32 1.0, %v4306_v24  ;;  %v4308_v47 = vpop.eup %4307 }
 0x2c8   :  { %v1588_v31 = vpack.c.bf16 %v1471_v17, %v1471_v17  ;;  %v1573_v23 = vadd.f32 1.0, %v4308_v47  ;;  %v4310_v20 = vpop.eup %4309  ;;  %v7419_v47 = vld [vmem:[#allocation64_spill] sm:$0xff] }
 0x2c9   :  { %4313 = vrcp.f32 %v1572_v56  ;;  %v4312_v33 = vpop.eup %4311  ;;  %v7418_v56 = vld [vmem:[#allocation63_spill] sm:$0xff] }
 0x2ca   :  { %1622 = vmatmul.mubr.bf16.vlgmr.msra.gmra.mrb[32].mxu0 %v1588_v31  ;;  %1663 = vmatmul.mubr.bf16.vlgmr.msra.gmra.mrb[32].mxu1 %v1588_v31  ;;  %4315 = vrcp.f32 %v1573_v23  ;;  %v1574_v24 = vadd.f32 1.0, %v4312_v33  ;;  %v7420_v23 = vld [vmem:[#allocation65_spill] sm:$0xff]  ;;  %v7430_v33 = vld [vmem:[#allocation75_spill] sm:$0xff] }
 0x2cb   :  { %1672 = vmatpush1.bf16.msra.mxu0 %v7406_v30  ;;  %1713 = vmatpush1.bf16.msra.mxu1 %v7407_v54  ;;  %v7421_v30 = vld [vmem:[#allocation66_spill] sm:$0xff]  ;;  %v7422_v54 = vld [vmem:[#allocation67_spill] sm:$0xff] }
 0x2cc   :  { %1673 = vmatprep.subr.bf16.mxu0 %v7408_v26  ;;  %1714 = vmatprep.subr.bf16.mxu1 %v7409_v58  ;;  %4317 = vrcp.f32 %v1574_v24  ;;  %v7423_v26 = vld [vmem:[#allocation68_spill] sm:$0xff]  ;;  %v7424_v58 = vld [vmem:[#allocation69_spill] sm:$0xff] }
 0x2cd   :  { %1703 = vmatprep.mubr.bf16.mxu0 %v7311_v7  ;;  %1744 = vmatprep.mubr.bf16.mxu1 %v7311_v7 }
 0x2cf   :  { %1674 = vmatpush1.bf16.msra.mxu0 %v7410_v55  ;;  %1715 = vmatpush1.bf16.msra.mxu1 %v7411_v57  ;;  %v7426_v55 = vld [vmem:[#allocation71_spill] sm:$0xff]  ;;  %v7427_v57 = vld [vmem:[#allocation72_spill] sm:$0xff] }
 0x2d0   :  { %1675 = vmatprep.subr.bf16.mxu0 %v7412_v0  ;;  %1716 = vmatprep.subr.bf16.mxu1 %v7413_v27  ;;  %v7428_v0 = vld [vmem:[#allocation73_spill] sm:$0xff]  ;;  %v7429_v27 = vld [vmem:[#allocation74_spill] sm:$0xff] }
 0x2d3   :  { %v4314_v34 = vpop.eup %4313  ;;  %1676 = vmatpush1.bf16.msra.mxu0 %v7414_v21  ;;  %1717 = vmatpush1.bf16.msra.mxu1 %v7415_v19  ;;  %v7432_v19 = vld [vmem:[#allocation77_spill] sm:$0xff] }
 0x2d4   :  { %v1583_v29 = vmul.f32 %v4314_v34, %v4310_v20  ;;  %1677 = vmatprep.subr.bf16.mxu0 %v7416_v16  ;;  %1718 = vmatprep.subr.bf16.mxu1 %v7417_v32  ;;  %v4316_v22 = vpop.eup %4315  ;;  %v7431_v34 = vld [vmem:[#allocation76_spill] sm:$0xff]  ;;  %v7434_v32 = vld [vmem:[#allocation79_spill] sm:$0xff] }
 0x2d5   :  { %v1582_v17 = vmul.f32 %v4316_v22, %v5661_v18  ;;  %v7425_v18 = vld [vmem:[#allocation70_spill] sm:$0xff]  ;;  %v7435_v22 = vld [vmem:[#allocation80_spill] sm:$0xff] }
 0x2d6   :  { %v4318_v20 = vpop.eup %4317 }
 0x2d7   :  { %1678 = vmatpush1.bf16.msra.mxu0 %v7418_v56  ;;  %1719 = vmatpush1.bf16.msra.mxu1 %v7419_v47  ;;  %v5774_v31 = vadd.f32 %v1583_v29, %v1582_v17  ;;  %v7433_v29 = vld [vmem:[#allocation78_spill] sm:$0xff]  ;;  %v5798_v56 = vld [vmem:[#allocation8 + $0xc] ss:$16 sps:$4 sm:$0xff]  }
 0x2d8   :  { %1679 = vmatprep.subr.bf16.mxu0 %v7420_v23  ;;  %1720 = vmatprep.subr.bf16.mxu1 %v7421_v30  ;;  %v5795_v17 = vld [vmem:[#allocation8 + $0x4] ss:$16 sps:$4 sm:$0xff]   ;;  %v5803_v47 = vld [vmem:[#allocation8] ss:$16 sps:$4 sm:$0xff]   ;;  %v5806_v23 = vld [vmem:[#allocation8 + $0x8] ss:$16 sps:$4 sm:$0xff]  }
 0x2d9   :  { %4319 = vtanh.f32 %v5774_v31  ;;  %v5809_v30 = vld [vmem:[#allocation8 + $0x24] ss:$16 sps:$4 sm:$0xff]  }
 0x2db   :  { %1680 = vmatpush1.bf16.msra.mxu0 %v7422_v54  ;;  %1721 = vmatpush1.bf16.msra.mxu1 %v7423_v26  ;;  %v5812_v54 = vld [vmem:[#allocation8 + $0x2c] ss:$16 sps:$4 sm:$0xff]   ;;  %v5817_v26 = vld [vmem:[#allocation8 + $0x20] ss:$16 sps:$4 sm:$0xff]  }
 0x2dc   :  { %1681 = vmatprep.subr.bf16.mxu0 %v7424_v58  ;;  %1722 = vmatprep.subr.bf16.mxu1 %v7425_v18  ;;  %7436 = vst [vmem:[#allocation27_spill] sm:$0xff] %v5812_v54  ;;  %7437 = vst [vmem:[#allocation28_spill] sm:$0xff] %v5817_v26  ;;  %v5820_v58 = vld [vmem:[#allocation8 + $0x28] ss:$16 sps:$4 sm:$0xff]   ;;  %v5823_v18 = vld [vmem:[#allocation8 + $0x44] ss:$16 sps:$4 sm:$0xff]  }
 0x2dd   :  { %7438 = vst [vmem:[#allocation29_spill] sm:$0xff] %v5820_v58  ;;  %7439 = vst [vmem:[#allocation30_spill] sm:$0xff] %v5823_v18 }
 0x2df   :  { %1682 = vmatpush1.bf16.msra.mxu0 %v7426_v55  ;;  %1723 = vmatpush1.bf16.msra.mxu1 %v7427_v57  ;;  %v5826_v55 = vld [vmem:[#allocation8 + $0x4c] ss:$16 sps:$4 sm:$0xff]   ;;  %v5829_v57 = vld [vmem:[#allocation8 + $0x40] ss:$16 sps:$4 sm:$0xff]  }
 0x2e0   :  { %1683 = vmatprep.subr.bf16.mxu0 %v7428_v0  ;;  %1724 = vmatprep.subr.bf16.mxu1 %v7429_v27  ;;  %7440 = vst [vmem:[#allocation31_spill] sm:$0xff] %v5826_v55  ;;  %7441 = vst [vmem:[#allocation32_spill] sm:$0xff] %v5829_v57  ;;  %v5832_v0 = vld [vmem:[#allocation8 + $0x48] ss:$16 sps:$4 sm:$0xff]   ;;  %v5835_v27 = vld [vmem:[#allocation8 + $0x64] ss:$16 sps:$4 sm:$0xff]  }
 0x2e1   :  { %7442 = vst [vmem:[#allocation33_spill] sm:$0xff] %v5832_v0  ;;  %7443 = vst [vmem:[#allocation34_spill] sm:$0xff] %v5835_v27 }
 0x2e3   :  { %1684 = vmatpush1.bf16.msra.mxu0 %v7430_v33  ;;  %1725 = vmatpush1.bf16.msra.mxu1 %v7431_v34  ;;  %v4320_v21 = vpop.eup %4319  ;;  %v5841_v33 = vld [vmem:[#allocation8 + $0x60] ss:$16 sps:$4 sm:$0xff]   ;;  %v5844_v34 = vld [vmem:[#allocation8 + $0x68] ss:$16 sps:$4 sm:$0xff]  }
 0x2e4   :  { %1685 = vmatprep.subr.bf16.mxu0 %v7432_v19  ;;  %1726 = vmatprep.subr.bf16.mxu1 %v7433_v29  ;;  %v1586_v16 = vmul.f32 %v4320_v21, %v4318_v20  ;;  %v5838_v20 = vld [vmem:[#allocation8 + $0x6c] ss:$16 sps:$4 sm:$0xff]   ;;  %7445 = vst [vmem:[#allocation36_spill] sm:$0xff] %v5841_v33  ;;  %7446 = vst [vmem:[#allocation37_spill] sm:$0xff] %v5844_v34  ;;  %v5847_v21 = vld [vmem:[#allocation8 + $0x84] ss:$16 sps:$4 sm:$0xff]  }
 0x2e5   :  { %7444 = vst [vmem:[#allocation35_spill] sm:$0xff] %v5838_v20  ;;  %7447 = vst [vmem:[#allocation38_spill] sm:$0xff] %v5847_v21  ;;  %v5850_v19 = vld [vmem:[#allocation8 + $0x8c] ss:$16 sps:$4 sm:$0xff]   ;;  %v5853_v29 = vld [vmem:[#allocation8 + $0x80] ss:$16 sps:$4 sm:$0xff]  }
 0x2e6   :  { %v5793_v24 = vpack.c.bf16 %v1586_v16, %v1586_v16  ;;  %7448 = vst [vmem:[#allocation39_spill] sm:$0xff] %v5850_v19  ;;  %7449 = vst [vmem:[#allocation40_spill] sm:$0xff] %v5853_v29  ;;  %v5856_v16 = vld [vmem:[#allocation8 + $0x88] ss:$16 sps:$4 sm:$0xff]  }
 0x2e7   :  { %1686 = vmatpush1.bf16.msra.mxu0 %v7434_v32  ;;  %1727 = vmatpush1.bf16.msra.mxu1 %v7435_v22  ;;  %7450 = vst [vmem:[#allocation41_spill] sm:$0xff] %v5856_v16  ;;  %v5859_v32 = vld [vmem:[#allocation8 + $0xa4] ss:$16 sps:$4 sm:$0xff]   ;;  %v5862_v22 = vld [vmem:[#allocation8 + $0xac] ss:$16 sps:$4 sm:$0xff]  }
 0x2e8   :  { %1786 = vmatprep.subr.bf16.mxu0 %v5795_v17  ;;  %1827 = vmatprep.subr.bf16.mxu1 %v5798_v56  ;;  %7451 = vst [vmem:[#allocation42_spill] sm:$0xff] %v5859_v32  ;;  %7452 = vst [vmem:[#allocation43_spill] sm:$0xff] %v5862_v22 }
 0x2ea   :  { %1704 = vmatmul.mubr.bf16.vlgmr.msra.gmra.mrb[36].mxu0 %v5793_v24  ;;  %1745 = vmatmul.mubr.bf16.vlgmr.msra.gmra.mrb[36].mxu1 %v5793_v24 }
 0x2eb   :  { %1787 = vmatpush1.bf16.msra.mxu0 %v5803_v47  ;;  %1828 = vmatpush1.bf16.msra.mxu1 %v5806_v23 }
 0x2ec   :  { %1788 = vmatprep.subr.bf16.mxu0 %v5809_v30  ;;  %1829 = vmatprep.subr.bf16.mxu1 %v5812_v54 }
 0x2ed   :  { %1818 = vmatprep.mubr.bf16.mxu0 %v7311_v7  ;;  %1859 = vmatprep.mubr.bf16.mxu1 %v7311_v7 }
 0x2ef   :  { %1789 = vmatpush1.bf16.msra.mxu0 %v5817_v26  ;;  %1830 = vmatpush1.bf16.msra.mxu1 %v5820_v58 }
 0x2f0   :  { %1790 = vmatprep.subr.bf16.mxu0 %v5823_v18  ;;  %1831 = vmatprep.subr.bf16.mxu1 %v5826_v55 }
 0x2f3   :  { %1791 = vmatpush1.bf16.msra.mxu0 %v5829_v57  ;;  %1832 = vmatpush1.bf16.msra.mxu1 %v5832_v0 }
 0x2f4   :  { %1792 = vmatprep.subr.bf16.mxu0 %v5835_v27  ;;  %1833 = vmatprep.subr.bf16.mxu1 %v5838_v20 }
 0x2f7   :  { %1793 = vmatpush1.bf16.msra.mxu0 %v5841_v33  ;;  %1834 = vmatpush1.bf16.msra.mxu1 %v5844_v34 }
 0x2f8   :  { %1794 = vmatprep.subr.bf16.mxu0 %v5847_v21  ;;  %1835 = vmatprep.subr.bf16.mxu1 %v5850_v19  ;;  %v5865_v21 = vld [vmem:[#allocation8 + $0xa0] ss:$16 sps:$4 sm:$0xff]   ;;  %v5868_v19 = vld [vmem:[#allocation8 + $0xa8] ss:$16 sps:$4 sm:$0xff]  }
 0x2f9   :  { %7453 = vst [vmem:[#allocation44_spill] sm:$0xff] %v5865_v21  ;;  %7454 = vst [vmem:[#allocation45_spill] sm:$0xff] %v5868_v19 }
 0x2fb   :  { %1795 = vmatpush1.bf16.msra.mxu0 %v5853_v29  ;;  %1836 = vmatpush1.bf16.msra.mxu1 %v5856_v16  ;;  %v5871_v29 = vld [vmem:[#allocation8 + $0xc4] ss:$16 sps:$4 sm:$0xff]   ;;  %v5874_v16 = vld [vmem:[#allocation8 + $0xcc] ss:$16 sps:$4 sm:$0xff]  }
 0x2fc   :  { %1796 = vmatprep.subr.bf16.mxu0 %v5859_v32  ;;  %1837 = vmatprep.subr.bf16.mxu1 %v5862_v22  ;;  %7455 = vst [vmem:[#allocation46_spill] sm:$0xff] %v5871_v29  ;;  %7456 = vst [vmem:[#allocation47_spill] sm:$0xff] %v5874_v16  ;;  %v5877_v32 = vld [vmem:[#allocation8 + $0xc0] ss:$16 sps:$4 sm:$0xff]   ;;  %v5880_v22 = vld [vmem:[#allocation8 + $0xc8] ss:$16 sps:$4 sm:$0xff]  }
 0x2fd   :  { %7457 = vst [vmem:[#allocation48_spill] sm:$0xff] %v5877_v32  ;;  %7458 = vst [vmem:[#allocation49_spill] sm:$0xff] %v5880_v22 }
 0x2ff   :  { %1797 = vmatpush1.bf16.msra.mxu0 %v5865_v21  ;;  %1838 = vmatpush1.bf16.msra.mxu1 %v5868_v19  ;;  %v5883_v21 = vld [vmem:[#allocation8 + $0xe4] ss:$16 sps:$4 sm:$0xff]   ;;  %v5886_v19 = vld [vmem:[#allocation8 + $0xec] ss:$16 sps:$4 sm:$0xff]  }
 0x300   :  { %1798 = vmatprep.subr.bf16.mxu0 %v5871_v29  ;;  %1839 = vmatprep.subr.bf16.mxu1 %v5874_v16  ;;  %7459 = vst [vmem:[#allocation50_spill] sm:$0xff] %v5883_v21  ;;  %7460 = vst [vmem:[#allocation81_spill] sm:$0xff] %v5886_v19  ;;  %v5889_v29 = vld [vmem:[#allocation8 + $0xe0] ss:$16 sps:$4 sm:$0xff]   ;;  %v5892_v16 = vld [vmem:[#allocation8 + $0xe8] ss:$16 sps:$4 sm:$0xff]  }
 0x301   :  { %7461 = vst [vmem:[#allocation84_spill] sm:$0xff] %v5889_v29  ;;  %7462 = vst [vmem:[#allocation85_spill] sm:$0xff] %v5892_v16 }
 0x303   :  { %1799 = vmatpush1.bf16.msra.mxu0 %v5877_v32  ;;  %1840 = vmatpush1.bf16.msra.mxu1 %v5880_v22 }
 0x304   :  { %1800 = vmatprep.subr.bf16.mxu0 %v5883_v21  ;;  %1841 = vmatprep.subr.bf16.mxu1 %v5886_v19 }
 0x307   :  { %1801 = vmatpush1.bf16.msra.mxu0 %v5889_v29  ;;  %1842 = vmatpush1.bf16.msra.mxu1 %v5892_v16 }
 0x308   :  { %1898 = vmatprep.subr.bf16.mxu0 %v5367_v8  ;;  %1939 = vmatprep.subr.bf16.mxu1 %v5369_v9 }
 0x30a   :  { %1819 = vmatmul.mubr.bf16.vlgmr.msra.gmra.mrb[40].mxu0 %v5793_v24  ;;  %1860 = vmatmul.mubr.bf16.vlgmr.msra.gmra.mrb[40].mxu1 %v5793_v24 }
 0x30b   :  { %1899 = vmatpush1.bf16.msra.mxu0 %v5371_v10  ;;  %1940 = vmatpush1.bf16.msra.mxu1 %v5374_v11 }
 0x30c   :  { %1900 = vmatprep.subr.bf16.mxu0 %v5379_v12  ;;  %1941 = vmatprep.subr.bf16.mxu1 %v5381_v13 }
 0x30d   :  { %1930 = vmatprep.mubr.bf16.mxu0 %v7311_v7  ;;  %1971 = vmatprep.mubr.bf16.mxu1 %v7311_v7 }
 0x30f   :  { %1901 = vmatpush1.bf16.msra.mxu0 %v5383_v14  ;;  %1942 = vmatpush1.bf16.msra.mxu1 %v5386_v15 }
 0x310   :  { %1902 = vmatprep.subr.bf16.mxu0 %v7369_v36  ;;  %1943 = vmatprep.subr.bf16.mxu1 %v7370_v37 }
 0x313   :  { %1903 = vmatpush1.bf16.msra.mxu0 %v7371_v38  ;;  %1944 = vmatpush1.bf16.msra.mxu1 %v7372_v39 }
 0x314   :  { %1904 = vmatprep.subr.bf16.mxu0 %v7373_v40  ;;  %1945 = vmatprep.subr.bf16.mxu1 %v7374_v41 }
 0x317   :  { %1905 = vmatpush1.bf16.msra.mxu0 %v7375_v42  ;;  %1946 = vmatpush1.bf16.msra.mxu1 %v7376_v43 }
 0x318   :  { %1906 = vmatprep.subr.bf16.mxu0 %v7377_v45  ;;  %1947 = vmatprep.subr.bf16.mxu1 %v7378_v46 }
 0x31b   :  { %1907 = vmatpush1.bf16.msra.mxu0 %v7379_v48  ;;  %1948 = vmatpush1.bf16.msra.mxu1 %v7380_v49 }
 0x31c   :  { %1908 = vmatprep.subr.bf16.mxu0 %v7381_v51  ;;  %1949 = vmatprep.subr.bf16.mxu1 %v7382_v52 }
 0x31f   :  { %1909 = vmatpush1.bf16.msra.mxu0 %v7383_v59  ;;  %1950 = vmatpush1.bf16.msra.mxu1 %v7384_v60 }
 0x320   :  { %1910 = vmatprep.subr.bf16.mxu0 %v7385_v63  ;;  %1951 = vmatprep.subr.bf16.mxu1 %v7386_v1 }
 0x323   :  { %1911 = vmatpush1.bf16.msra.mxu0 %v7387_v2  ;;  %1952 = vmatpush1.bf16.msra.mxu1 %v7388_v3 }
 0x324   :  { %1912 = vmatprep.subr.bf16.mxu0 %v7389_v4  ;;  %1953 = vmatprep.subr.bf16.mxu1 %v7390_v5 }
 0x327   :  { %1913 = vmatpush1.bf16.msra.mxu0 %v7391_v44  ;;  %1954 = vmatpush1.bf16.msra.mxu1 %v7392_v25 }
 0x328   :  { %1980 = vmatprep.subr.bf16.mxu0 %v7393_v35  ;;  %2021 = vmatprep.subr.bf16.mxu1 %v7394_v53 }
 0x39d   :  { %v1623_v8 = vpop.f32.mrb[32].mxu0  ;;  %v1664_v9 = vpop.f32.mrb[32].mxu1 }
 0x39e   :  { %v1625_v10 = vpop.f32.mrb[33].mxu0  ;;  %v1666_v11 = vpop.f32.mrb[33].mxu1 }
 0x39f   :  { %v1627_v12 = vpop.f32.mrb[34].mxu0  ;;  %v1668_v13 = vpop.f32.mrb[34].mxu1 }
 0x3a0   :  { %v1628_v14 = vpop.f32.mrb[35].mxu0  ;;  %v1669_v15 = vpop.f32.mrb[35].mxu1  ;;  %v7463_v13 = vld [vmem:[#allocation88_spill] sm:$0xff] }
 0x3a1   :  { %v7464_v15 = vld [vmem:[#allocation89_spill] sm:$0xff] }
 0x3bd   :  { %v1705_v36 = vpop.f32.mrb[36].mxu0  ;;  %v1746_v37 = vpop.f32.mrb[36].mxu1 }
 0x3be   :  { %v1706_v38 = vadd.f32 %v1705_v36, %v1623_v8  ;;  %v1747_v39 = vadd.f32 %v1746_v37, %v1664_v9  ;;  %v1707_v40 = vpop.f32.mrb[37].mxu0  ;;  %v1748_v41 = vpop.f32.mrb[37].mxu1 }
 0x3bf   :  { %v1708_v42 = vadd.f32 %v1707_v40, %v1625_v10  ;;  %v1749_v43 = vadd.f32 %v1748_v41, %v1666_v11  ;;  %v1709_v45 = vpop.f32.mrb[38].mxu0  ;;  %v1750_v46 = vpop.f32.mrb[38].mxu1  ;;  %v7466_v41 = vld [vmem:[#allocation91_spill] sm:$0xff] }
 0x3c0   :  { %v1753_v48 = vadd.f32 %v1706_v38, %v5733_v6  ;;  %v1710_v49 = vpop.f32.mrb[39].mxu0  ;;  %v1751_v51 = vpop.f32.mrb[39].mxu1  ;;  %v1755_v63 = vadd.f32 %v1747_v39, %v5742_v61  ;;  %v7465_v39 = vld [vmem:[#allocation90_spill] sm:$0xff] }
 0x3c1   :  { %v1754_v52 = vadd.f32 %v1708_v42, %v5736_v28  ;;  %v1756_v1 = vadd.f32 %v1749_v43, %v5746_v50 }
 0x3c2   :  { %v3983_v59 = vmul.f32 -1.442695, %v1753_v48  ;;  %v3985_v2 = vmul.f32 -1.442695, %v1755_v63 }
 0x3c3   :  { %v3984_v60 = vmul.f32 -1.442695, %v1754_v52 }
 0x3c4   :  { %4321 = vpow2.f32 %v3983_v59 }
 0x3c5   :  { %4323 = vpow2.f32 %v3984_v60 }
 0x3c6   :  { %4325 = vtanh.f32 %v1756_v1 }
 0x3c7   :  { %4327 = vpow2.f32 %v3985_v2 }
 0x3ce   :  { %v4322_v3 = vpop.eup %4321 }
 0x3cf   :  { %v1766_v4 = vadd.f32 1.0, %v4322_v3  ;;  %v4324_v5 = vpop.eup %4323 }
 0x3d0   :  { %v1767_v44 = vadd.f32 1.0, %v4324_v5  ;;  %v4326_v25 = vpop.eup %4325 }
 0x3d1   :  { %4329 = vrcp.f32 %v1766_v4  ;;  %v4328_v35 = vpop.eup %4327 }
 0x3d2   :  { %4331 = vrcp.f32 %v1767_v44  ;;  %v1768_v9 = vadd.f32 1.0, %v4328_v35  ;;  %v5945_v44 = vld [vmem:[#allocation11] ss:$16 sps:$4 sm:$0xff]   ;;  %v5951_v35 = vld [vmem:[#allocation11 + $0x24] ss:$16 sps:$4 sm:$0xff]  }
 0x3d4   :  { %4333 = vrcp.f32 %v1768_v9  ;;  %v5965_v9 = vld [vmem:[#allocation11 + $0x44] ss:$16 sps:$4 sm:$0xff]  }
 0x3db   :  { %v4330_v53 = vpop.eup %4329 }
 0x3dc   :  { %v1777_v24 = vmul.f32 %v4330_v53, %v4326_v25  ;;  %v4332_v8 = vpop.eup %4331  ;;  %v5948_v25 = vld [vmem:[#allocation11 + $0x8] ss:$16 sps:$4 sm:$0xff]   ;;  %v5954_v53 = vld [vmem:[#allocation11 + $0x2c] ss:$16 sps:$4 sm:$0xff]  }
 0x3dd   :  { %v1820_v10 = vpop.f32.mrb[40].mxu0  ;;  %v1861_v11 = vpop.f32.mrb[40].mxu1  ;;  %v1776_v12 = vmul.f32 %v4332_v8, %v5754_v62  ;;  %v5962_v8 = vld [vmem:[#allocation11 + $0x28] ss:$16 sps:$4 sm:$0xff]  }
 0x3de   :  { %v1868_v14 = vadd.f32 %v1820_v10, %v7463_v13  ;;  %v1870_v36 = vadd.f32 %v1861_v11, %v7464_v15  ;;  %v1822_v37 = vpop.f32.mrb[41].mxu0  ;;  %v1863_v38 = vpop.f32.mrb[41].mxu1  ;;  %v5968_v10 = vld [vmem:[#allocation11 + $0x4c] ss:$16 sps:$4 sm:$0xff]   ;;  %v5974_v15 = vld [vmem:[#allocation11 + $0x48] ss:$16 sps:$4 sm:$0xff]  }
 0x3df   :  { %v1869_v40 = vadd.f32 %v1822_v37, %v7465_v39  ;;  %v1871_v42 = vadd.f32 %v1863_v38, %v7466_v41  ;;  %v1824_v43 = vpop.f32.mrb[42].mxu0  ;;  %v1865_v45 = vpop.f32.mrb[42].mxu1  ;;  %v5942_v46 = vadd.f32 %v1777_v24, %v1776_v12  ;;  %v5959_v24 = vld [vmem:[#allocation11 + $0x20] ss:$16 sps:$4 sm:$0xff]   ;;  %v5977_v37 = vld [vmem:[#allocation11 + $0x64] ss:$16 sps:$4 sm:$0xff]  }
 0x3e0   :  { %v3986_v48 = vmul.f32 -1.442695, %v1868_v14  ;;  %v1825_v49 = vpop.f32.mrb[43].mxu0  ;;  %v1866_v51 = vpop.f32.mrb[43].mxu1  ;;  %v3988_v59 = vmul.f32 -1.442695, %v1870_v36 }
 0x3e1   :  { %v3987_v52 = vmul.f32 -1.442695, %v1869_v40  ;;  %4335 = vtanh.f32 %v5942_v46  ;;  %v4334_v62 = vpop.eup %4333  ;;  %v5971_v14 = vld [vmem:[#allocation11 + $0x40] ss:$16 sps:$4 sm:$0xff]   ;;  %v5980_v38 = vld [vmem:[#allocation11 + $0x6c] ss:$16 sps:$4 sm:$0xff]  }
 0x3e2   :  { %4337 = vpow2.f32 %v3986_v48  ;;  %v5987_v43 = vld [vmem:[#allocation11 + $0x68] ss:$16 sps:$4 sm:$0xff]   ;;  %v5992_v48 = vld [vmem:[#allocation11 + $0x84] ss:$16 sps:$4 sm:$0xff]   ;;  %v5995_v49 = vld [vmem:[#allocation11 + $0x8c] ss:$16 sps:$4 sm:$0xff]  }
 0x3e3   :  { %4339 = vpow2.f32 %v3987_v52  ;;  %v6002_v51 = vld [vmem:[#allocation11 + $0x88] ss:$16 sps:$4 sm:$0xff]   ;;  %v6005_v52 = vld [vmem:[#allocation11 + $0xa4] ss:$16 sps:$4 sm:$0xff]  }
 0x3e4   :  { %4341 = vtanh.f32 %v1871_v42  ;;  %v5984_v42 = vld [vmem:[#allocation11 + $0x60] ss:$16 sps:$4 sm:$0xff]  }
 0x3e5   :  { %4343 = vpow2.f32 %v3988_v59  ;;  %v6011_v59 = vld [vmem:[#allocation11 + $0xa0] ss:$16 sps:$4 sm:$0xff]  }
 0x3eb   :  { %v4336_v60 = vpop.eup %4335 }
 0x3ec   :  { %v4338_v63 = vpop.eup %4337  ;;  %v1780_v1 = vmul.f32 %v4336_v60, %v4334_v62  ;;  %v6008_v62 = vld [vmem:[#allocation11 + $0xac] ss:$16 sps:$4 sm:$0xff]   ;;  %v6014_v60 = vld [vmem:[#allocation11 + $0xa8] ss:$16 sps:$4 sm:$0xff]  }
 0x3ed   :  { %v1881_v2 = vadd.f32 1.0, %v4338_v63  ;;  %v4340_v3 = vpop.eup %4339  ;;  %v6017_v63 = vld [vmem:[#allocation11 + $0xc4] ss:$16 sps:$4 sm:$0xff]  }
 0x3ee   :  { %v1897_v4 = vpack.c.bf16 %v1780_v1, %v1780_v1  ;;  %v1882_v5 = vadd.f32 1.0, %v4340_v3  ;;  %v4342_v11 = vpop.eup %4341  ;;  %v6020_v1 = vld [vmem:[#allocation11 + $0xcc] ss:$16 sps:$4 sm:$0xff]   ;;  %v6023_v3 = vld [vmem:[#allocation11 + $0xc0] ss:$16 sps:$4 sm:$0xff]  }
 0x3ef   :  { %4345 = vrcp.f32 %v1881_v2  ;;  %v4344_v12 = vpop.eup %4343 }
 0x3f0   :  { %1931 = vmatmul.mubr.bf16.vlgmr.msra.gmra.mrb[44].mxu0 %v1897_v4  ;;  %1972 = vmatmul.mubr.bf16.vlgmr.msra.gmra.mrb[44].mxu1 %v1897_v4  ;;  %4347 = vrcp.f32 %v1882_v5  ;;  %v1883_v40 = vadd.f32 1.0, %v4344_v12  ;;  %v6026_v4 = vld [vmem:[#allocation11 + $0xc8] ss:$16 sps:$4 sm:$0xff]   ;;  %v6032_v12 = vld [vmem:[#allocation11 + $0xec] ss:$16 sps:$4 sm:$0xff]  }
 0x3f1   :  { %1981 = vmatpush1.bf16.msra.mxu0 %v5945_v44  ;;  %2022 = vmatpush1.bf16.msra.mxu1 %v5948_v25 }
 0x3f2   :  { %1982 = vmatprep.subr.bf16.mxu0 %v5951_v35  ;;  %2023 = vmatprep.subr.bf16.mxu1 %v5954_v53  ;;  %4349 = vrcp.f32 %v1883_v40 }
 0x3f3   :  { %2012 = vmatprep.mubr.bf16.mxu0 %v7311_v7  ;;  %2053 = vmatprep.mubr.bf16.mxu1 %v7311_v7 }
 0x3f5   :  { %1983 = vmatpush1.bf16.msra.mxu0 %v5959_v24  ;;  %2024 = vmatpush1.bf16.msra.mxu1 %v5962_v8 }
 0x3f6   :  { %1984 = vmatprep.subr.bf16.mxu0 %v5965_v9  ;;  %2025 = vmatprep.subr.bf16.mxu1 %v5968_v10 }
 0x3f9   :  { %v4346_v13 = vpop.eup %4345  ;;  %1985 = vmatpush1.bf16.msra.mxu0 %v5971_v14  ;;  %2026 = vmatpush1.bf16.msra.mxu1 %v5974_v15 }
 0x3fa   :  { %v1892_v36 = vmul.f32 %v4346_v13, %v4342_v11  ;;  %1986 = vmatprep.subr.bf16.mxu0 %v5977_v37  ;;  %2027 = vmatprep.subr.bf16.mxu1 %v5980_v38  ;;  %v4348_v39 = vpop.eup %4347  ;;  %v6029_v11 = vld [vmem:[#allocation11 + $0xe4] ss:$16 sps:$4 sm:$0xff]  }
 0x3fb   :  { %v1891_v41 = vmul.f32 %v4348_v39, %v5774_v31  ;;  %v5999_v31 = vld [vmem:[#allocation11 + $0x80] ss:$16 sps:$4 sm:$0xff]   ;;  %v6038_v39 = vld [vmem:[#allocation11 + $0xe8] ss:$16 sps:$4 sm:$0xff]  }
 0x3fc   :  { %v4350_v2 = vpop.eup %4349 }
 0x3fd   :  { %1987 = vmatpush1.bf16.msra.mxu0 %v5984_v42  ;;  %2028 = vmatpush1.bf16.msra.mxu1 %v5987_v43  ;;  %v5990_v45 = vadd.f32 %v1892_v36, %v1891_v41  ;;  %v6035_v36 = vld [vmem:[#allocation11 + $0xe0] ss:$16 sps:$4 sm:$0xff]  }
 0x3fe   :  { %1988 = vmatprep.subr.bf16.mxu0 %v5992_v48  ;;  %2029 = vmatprep.subr.bf16.mxu1 %v5995_v49  ;;  %v7467_v41 = vld [vmem:[#allocation38_spill] sm:$0xff] }
 0x3ff   :  { %4351 = vtanh.f32 %v5990_v45 }
 0x401   :  { %1989 = vmatpush1.bf16.msra.mxu0 %v5999_v31  ;;  %2030 = vmatpush1.bf16.msra.mxu1 %v6002_v51 }
 0x402   :  { %1990 = vmatprep.subr.bf16.mxu0 %v6005_v52  ;;  %2031 = vmatprep.subr.bf16.mxu1 %v6008_v62 }
 0x405   :  { %1991 = vmatpush1.bf16.msra.mxu0 %v6011_v59  ;;  %2032 = vmatpush1.bf16.msra.mxu1 %v6014_v60 }
 0x406   :  { %1992 = vmatprep.subr.bf16.mxu0 %v6017_v63  ;;  %2033 = vmatprep.subr.bf16.mxu1 %v6020_v1 }
 0x409   :  { %1993 = vmatpush1.bf16.msra.mxu0 %v6023_v3  ;;  %2034 = vmatpush1.bf16.msra.mxu1 %v6026_v4  ;;  %v4352_v5 = vpop.eup %4351 }
 0x40a   :  { %1994 = vmatprep.subr.bf16.mxu0 %v6029_v11  ;;  %2035 = vmatprep.subr.bf16.mxu1 %v6032_v12  ;;  %v1895_v13 = vmul.f32 %v4352_v5, %v4350_v2  ;;  %v7468_v2 = vld [vmem:[#allocation39_spill] sm:$0xff]  ;;  %v7469_v5 = vld [vmem:[#allocation40_spill] sm:$0xff] }
 0x40c   :  { %v1896_v40 = vpack.c.bf16 %v1895_v13, %v1895_v13  ;;  %v7470_v13 = vld [vmem:[#allocation41_spill] sm:$0xff] }
 0x40d   :  { %1995 = vmatpush1.bf16.msra.mxu0 %v6035_v36  ;;  %2036 = vmatpush1.bf16.msra.mxu1 %v6038_v39 }
 0x40e   :  { %2095 = vmatprep.subr.bf16.mxu0 %v5795_v17  ;;  %2136 = vmatprep.subr.bf16.mxu1 %v5798_v56 }
 0x410   :  { %2013 = vmatmul.mubr.bf16.vlgmr.msra.gmra.mrb[48].mxu0 %v1896_v40  ;;  %2054 = vmatmul.mubr.bf16.vlgmr.msra.gmra.mrb[48].mxu1 %v1896_v40 }
 0x411   :  { %2096 = vmatpush1.bf16.msra.mxu0 %v5803_v47  ;;  %2137 = vmatpush1.bf16.msra.mxu1 %v5806_v23 }
 0x412   :  { %2097 = vmatprep.subr.bf16.mxu0 %v5809_v30  ;;  %2138 = vmatprep.subr.bf16.mxu1 %v5812_v54 }
 0x413   :  { %2127 = vmatprep.mubr.bf16.mxu0 %v7311_v7  ;;  %2168 = vmatprep.mubr.bf16.mxu1 %v7311_v7 }
 0x415   :  { %2098 = vmatpush1.bf16.msra.mxu0 %v5817_v26  ;;  %2139 = vmatpush1.bf16.msra.mxu1 %v5820_v58 }
 0x416   :  { %2099 = vmatprep.subr.bf16.mxu0 %v5823_v18  ;;  %2140 = vmatprep.subr.bf16.mxu1 %v5826_v55  ;;  %v7471_v55 = vld [vmem:[#allocation42_spill] sm:$0xff] }
 0x419   :  { %2100 = vmatpush1.bf16.msra.mxu0 %v5829_v57  ;;  %2141 = vmatpush1.bf16.msra.mxu1 %v5832_v0  ;;  %v7472_v57 = vld [vmem:[#allocation43_spill] sm:$0xff]  ;;  %v7473_v0 = vld [vmem:[#allocation44_spill] sm:$0xff] }
 0x41a   :  { %2101 = vmatprep.subr.bf16.mxu0 %v5835_v27  ;;  %2142 = vmatprep.subr.bf16.mxu1 %v5838_v20  ;;  %v7474_v27 = vld [vmem:[#allocation45_spill] sm:$0xff]  ;;  %v7475_v20 = vld [vmem:[#allocation46_spill] sm:$0xff] }
 0x41d   :  { %2102 = vmatpush1.bf16.msra.mxu0 %v5841_v33  ;;  %2143 = vmatpush1.bf16.msra.mxu1 %v5844_v34  ;;  %v7476_v33 = vld [vmem:[#allocation47_spill] sm:$0xff] }
 0x41e   :  { %2103 = vmatprep.subr.bf16.mxu0 %v7467_v41  ;;  %2144 = vmatprep.subr.bf16.mxu1 %v7468_v2 }
 0x421   :  { %2104 = vmatpush1.bf16.msra.mxu0 %v7469_v5  ;;  %2145 = vmatpush1.bf16.msra.mxu1 %v7470_v13 }
 0x422   :  { %2105 = vmatprep.subr.bf16.mxu0 %v7471_v55  ;;  %2146 = vmatprep.subr.bf16.mxu1 %v7472_v57  ;;  %v6075_v57 = vld [vmem:[#allocation12 + $0x4] ss:$16 sps:$4 sm:$0xff]  }
 0x423   :  { %7477 = vst [vmem:[#allocation86_spill] sm:$0xff] %v6075_v57 }
 0x425   :  { %2106 = vmatpush1.bf16.msra.mxu0 %v7473_v0  ;;  %2147 = vmatpush1.bf16.msra.mxu1 %v7474_v27  ;;  %v6078_v27 = vld [vmem:[#allocation12 + $0xc] ss:$16 sps:$4 sm:$0xff]  }
 0x426   :  { %2107 = vmatprep.subr.bf16.mxu0 %v7475_v20  ;;  %2148 = vmatprep.subr.bf16.mxu1 %v7476_v33  ;;  %7478 = vst [vmem:[#allocation87_spill] sm:$0xff] %v6078_v27 }
 0x429   :  { %2108 = vmatpush1.bf16.msra.mxu0 %v5877_v32  ;;  %2149 = vmatpush1.bf16.msra.mxu1 %v5880_v22  ;;  %v6081_v32 = vld [vmem:[#allocation12] ss:$16 sps:$4 sm:$0xff]  }
 0x42a   :  { %2109 = vmatprep.subr.bf16.mxu0 %v5883_v21  ;;  %2150 = vmatprep.subr.bf16.mxu1 %v5886_v19  ;;  %7479 = vst [vmem:[#allocation51_spill] sm:$0xff] %v6081_v32  ;;  %v6084_v21 = vld [vmem:[#allocation12 + $0x8] ss:$16 sps:$4 sm:$0xff]  }
 0x42b   :  { %7480 = vst [vmem:[#allocation52_spill] sm:$0xff] %v6084_v21 }
 0x42d   :  { %2110 = vmatpush1.bf16.msra.mxu0 %v5889_v29  ;;  %2151 = vmatpush1.bf16.msra.mxu1 %v5892_v16  ;;  %v6087_v29 = vld [vmem:[#allocation12 + $0x24] ss:$16 sps:$4 sm:$0xff]   ;;  %v6090_v16 = vld [vmem:[#allocation12 + $0x2c] ss:$16 sps:$4 sm:$0xff]  }
 0x42e   :  { %2207 = vmatprep.subr.bf16.mxu0 %v6075_v57  ;;  %2248 = vmatprep.subr.bf16.mxu1 %v6078_v27  ;;  %7481 = vst [vmem:[#allocation53_spill] sm:$0xff] %v6087_v29  ;;  %7482 = vst [vmem:[#allocation54_spill] sm:$0xff] %v6090_v16  ;;  %v6110_v27 = vld [vmem:[#allocation12 + $0x48] ss:$16 sps:$4 sm:$0xff]  }
 0x42f   :  { %7488 = vst [vmem:[#allocation60_spill] sm:$0xff] %v6110_v27 }
 0x430   :  { %2128 = vmatmul.mubr.bf16.vlgmr.msra.gmra.mrb[52].mxu0 %v1896_v40  ;;  %2169 = vmatmul.mubr.bf16.vlgmr.msra.gmra.mrb[52].mxu1 %v1896_v40  ;;  %v6095_v40 = vld [vmem:[#allocation12 + $0x20] ss:$16 sps:$4 sm:$0xff]  }
 0x431   :  { %2208 = vmatpush1.bf16.msra.mxu0 %v6081_v32  ;;  %2249 = vmatpush1.bf16.msra.mxu1 %v6084_v21  ;;  %7483 = vst [vmem:[#allocation55_spill] sm:$0xff] %v6095_v40  ;;  %v6098_v32 = vld [vmem:[#allocation12 + $0x28] ss:$16 sps:$4 sm:$0xff]   ;;  %v6101_v21 = vld [vmem:[#allocation12 + $0x44] ss:$16 sps:$4 sm:$0xff]  }
 0x432   :  { %2209 = vmatprep.subr.bf16.mxu0 %v6087_v29  ;;  %2250 = vmatprep.subr.bf16.mxu1 %v6090_v16  ;;  %7484 = vst [vmem:[#allocation56_spill] sm:$0xff] %v6098_v32  ;;  %7485 = vst [vmem:[#allocation57_spill] sm:$0xff] %v6101_v21  ;;  %v6104_v29 = vld [vmem:[#allocation12 + $0x4c] ss:$16 sps:$4 sm:$0xff]   ;;  %v6107_v16 = vld [vmem:[#allocation12 + $0x40] ss:$16 sps:$4 sm:$0xff]  }
 0x433   :  { %2239 = vmatprep.mubr.bf16.mxu0 %v7311_v7  ;;  %2280 = vmatprep.mubr.bf16.mxu1 %v7311_v7  ;;  %7486 = vst [vmem:[#allocation58_spill] sm:$0xff] %v6104_v29  ;;  %7487 = vst [vmem:[#allocation59_spill] sm:$0xff] %v6107_v16 }
 0x435   :  { %2210 = vmatpush1.bf16.msra.mxu0 %v6095_v40  ;;  %2251 = vmatpush1.bf16.msra.mxu1 %v6098_v32  ;;  %v6113_v40 = vld [vmem:[#allocation12 + $0x64] ss:$16 sps:$4 sm:$0xff]   ;;  %v6116_v32 = vld [vmem:[#allocation12 + $0x6c] ss:$16 sps:$4 sm:$0xff]  }
 0x436   :  { %2211 = vmatprep.subr.bf16.mxu0 %v6101_v21  ;;  %2252 = vmatprep.subr.bf16.mxu1 %v6104_v29  ;;  %7489 = vst [vmem:[#allocation61_spill] sm:$0xff] %v6113_v40  ;;  %7490 = vst [vmem:[#allocation62_spill] sm:$0xff] %v6116_v32  ;;  %v6119_v21 = vld [vmem:[#allocation12 + $0x60] ss:$16 sps:$4 sm:$0xff]   ;;  %v6122_v29 = vld [vmem:[#allocation12 + $0x68] ss:$16 sps:$4 sm:$0xff]  }
 0x437   :  { %7491 = vst [vmem:[#allocation63_spill] sm:$0xff] %v6119_v21  ;;  %7492 = vst [vmem:[#allocation64_spill] sm:$0xff] %v6122_v29 }
 0x439   :  { %2212 = vmatpush1.bf16.msra.mxu0 %v6107_v16  ;;  %2253 = vmatpush1.bf16.msra.mxu1 %v6110_v27  ;;  %v6125_v16 = vld [vmem:[#allocation12 + $0x84] ss:$16 sps:$4 sm:$0xff]   ;;  %v6128_v27 = vld [vmem:[#allocation12 + $0x8c] ss:$16 sps:$4 sm:$0xff]  }
 0x43a   :  { %2213 = vmatprep.subr.bf16.mxu0 %v6113_v40  ;;  %2254 = vmatprep.subr.bf16.mxu1 %v6116_v32  ;;  %7493 = vst [vmem:[#allocation65_spill] sm:$0xff] %v6125_v16  ;;  %7494 = vst [vmem:[#allocation66_spill] sm:$0xff] %v6128_v27  ;;  %v6131_v40 = vld [vmem:[#allocation12 + $0x80] ss:$16 sps:$4 sm:$0xff]   ;;  %v6134_v32 = vld [vmem:[#allocation12 + $0x88] ss:$16 sps:$4 sm:$0xff]  }
 0x43b   :  { %7495 = vst [vmem:[#allocation67_spill] sm:$0xff] %v6131_v40  ;;  %7496 = vst [vmem:[#allocation68_spill] sm:$0xff] %v6134_v32 }
 0x43d   :  { %2214 = vmatpush1.bf16.msra.mxu0 %v6119_v21  ;;  %2255 = vmatpush1.bf16.msra.mxu1 %v6122_v29  ;;  %v6137_v21 = vld [vmem:[#allocation12 + $0xa4] ss:$16 sps:$4 sm:$0xff]   ;;  %v6140_v29 = vld [vmem:[#allocation12 + $0xac] ss:$16 sps:$4 sm:$0xff]  }
 0x43e   :  { %2215 = vmatprep.subr.bf16.mxu0 %v6125_v16  ;;  %2256 = vmatprep.subr.bf16.mxu1 %v6128_v27  ;;  %7497 = vst [vmem:[#allocation69_spill] sm:$0xff] %v6137_v21  ;;  %7498 = vst [vmem:[#allocation70_spill] sm:$0xff] %v6140_v29  ;;  %v6143_v16 = vld [vmem:[#allocation12 + $0xa0] ss:$16 sps:$4 sm:$0xff]   ;;  %v6146_v27 = vld [vmem:[#allocation12 + $0xa8] ss:$16 sps:$4 sm:$0xff]  }
 0x43f   :  { %7499 = vst [vmem:[#allocation71_spill] sm:$0xff] %v6143_v16  ;;  %7500 = vst [vmem:[#allocation72_spill] sm:$0xff] %v6146_v27 }
 0x441   :  { %2216 = vmatpush1.bf16.msra.mxu0 %v6131_v40  ;;  %2257 = vmatpush1.bf16.msra.mxu1 %v6134_v32  ;;  %v6149_v40 = vld [vmem:[#allocation12 + $0xc4] ss:$16 sps:$4 sm:$0xff]   ;;  %v6152_v32 = vld [vmem:[#allocation12 + $0xcc] ss:$16 sps:$4 sm:$0xff]  }
 0x442   :  { %2217 = vmatprep.subr.bf16.mxu0 %v6137_v21  ;;  %2258 = vmatprep.subr.bf16.mxu1 %v6140_v29  ;;  %7501 = vst [vmem:[#allocation73_spill] sm:$0xff] %v6149_v40  ;;  %7502 = vst [vmem:[#allocation74_spill] sm:$0xff] %v6152_v32  ;;  %v6155_v21 = vld [vmem:[#allocation12 + $0xc0] ss:$16 sps:$4 sm:$0xff]   ;;  %v6158_v29 = vld [vmem:[#allocation12 + $0xc8] ss:$16 sps:$4 sm:$0xff]  }
 0x443   :  { %7503 = vst [vmem:[#allocation75_spill] sm:$0xff] %v6155_v21  ;;  %7504 = vst [vmem:[#allocation76_spill] sm:$0xff] %v6158_v29 }
 0x445   :  { %2218 = vmatpush1.bf16.msra.mxu0 %v6143_v16  ;;  %2259 = vmatpush1.bf16.msra.mxu1 %v6146_v27  ;;  %v6161_v16 = vld [vmem:[#allocation12 + $0xe4] ss:$16 sps:$4 sm:$0xff]   ;;  %v6164_v27 = vld [vmem:[#allocation12 + $0xec] ss:$16 sps:$4 sm:$0xff]  }
 0x446   :  { %2219 = vmatprep.subr.bf16.mxu0 %v6149_v40  ;;  %2260 = vmatprep.subr.bf16.mxu1 %v6152_v32  ;;  %7505 = vst [vmem:[#allocation77_spill] sm:$0xff] %v6161_v16  ;;  %7506 = vst [vmem:[#allocation78_spill] sm:$0xff] %v6164_v27  ;;  %v6167_v40 = vld [vmem:[#allocation12 + $0xe0] ss:$16 sps:$4 sm:$0xff]   ;;  %v6170_v32 = vld [vmem:[#allocation12 + $0xe8] ss:$16 sps:$4 sm:$0xff]  }
 0x447   :  { %7507 = vst [vmem:[#allocation79_spill] sm:$0xff] %v6167_v40  ;;  %7508 = vst [vmem:[#allocation80_spill] sm:$0xff] %v6170_v32 }
 0x449   :  { %2220 = vmatpush1.bf16.msra.mxu0 %v6155_v21  ;;  %2261 = vmatpush1.bf16.msra.mxu1 %v6158_v29  ;;  %v6173_v21 = vld [vmem:[#allocation11 + $0x4] ss:$16 sps:$4 sm:$0xff]   ;;  %v6176_v29 = vld [vmem:[#allocation11 + $0xc] ss:$16 sps:$4 sm:$0xff]  }
 0x44a   :  { %2221 = vmatprep.subr.bf16.mxu0 %v6161_v16  ;;  %2262 = vmatprep.subr.bf16.mxu1 %v6164_v27  ;;  %7509 = vst [vmem:[#allocation88_spill] sm:$0xff] %v6173_v21  ;;  %7510 = vst [vmem:[#allocation89_spill] sm:$0xff] %v6176_v29 }
 0x44d   :  { %2222 = vmatpush1.bf16.msra.mxu0 %v6167_v40  ;;  %2263 = vmatpush1.bf16.msra.mxu1 %v6170_v32 }
 0x44e   :  { %2289 = vmatprep.subr.bf16.mxu0 %v6173_v21  ;;  %2330 = vmatprep.subr.bf16.mxu1 %v6176_v29 }
 0x4c3   :  { %v1932_v16 = vpop.f32.mrb[44].mxu0  ;;  %v1973_v57 = vpop.f32.mrb[44].mxu1 }
 0x4c4   :  { %v1934_v19 = vpop.f32.mrb[45].mxu0  ;;  %v1975_v27 = vpop.f32.mrb[45].mxu1 }
 0x4c5   :  { %v1936_v22 = vpop.f32.mrb[46].mxu0  ;;  %v1977_v33 = vpop.f32.mrb[46].mxu1 }
 0x4c6   :  { %v1937_v20 = vpop.f32.mrb[47].mxu0  ;;  %v1978_v40 = vpop.f32.mrb[47].mxu1 }
 0x4e3   :  { %v2014_v0 = vpop.f32.mrb[48].mxu0  ;;  %v2055_v55 = vpop.f32.mrb[48].mxu1 }
 0x4e4   :  { %v2015_v13 = vadd.f32 %v2014_v0, %v1932_v16  ;;  %v2056_v32 = vadd.f32 %v2055_v55, %v1973_v57  ;;  %v2016_v5 = vpop.f32.mrb[49].mxu0  ;;  %v2057_v2 = vpop.f32.mrb[49].mxu1 }
 0x4e5   :  { %v2017_v41 = vadd.f32 %v2016_v5, %v1934_v19  ;;  %v2058_v21 = vadd.f32 %v2057_v2, %v1975_v27  ;;  %v2018_v34 = vpop.f32.mrb[50].mxu0  ;;  %v2059_v18 = vpop.f32.mrb[50].mxu1 }
 0x4e6   :  { %v2062_v29 = vadd.f32 %v2015_v13, %v5733_v6  ;;  %v2019_v58 = vpop.f32.mrb[51].mxu0  ;;  %v2060_v26 = vpop.f32.mrb[51].mxu1  ;;  %v2064_v20 = vadd.f32 %v2056_v32, %v5742_v61  ;;  %v7512_v13 = vld [vmem:[#allocation93_spill] sm:$0xff] }
 0x4e7   :  { %v2063_v54 = vadd.f32 %v2017_v41, %v5736_v28  ;;  %v2065_v55 = vadd.f32 %v2058_v21, %v5746_v50  ;;  %v7511_v21 = vld [vmem:[#allocation92_spill] sm:$0xff] }
 0x4e8   :  { %v3989_v22 = vmul.f32 -1.442695, %v2062_v29  ;;  %v3991_v57 = vmul.f32 -1.442695, %v2064_v20  ;;  %v7513_v20 = vld [vmem:[#allocation94_spill] sm:$0xff] }
 0x4e9   :  { %v3990_v33 = vmul.f32 -1.442695, %v2063_v54 }
 0x4ea   :  { %4353 = vpow2.f32 %v3989_v22 }
 0x4eb   :  { %4355 = vpow2.f32 %v3990_v33 }
 0x4ec   :  { %4357 = vtanh.f32 %v2065_v55 }
 0x4ed   :  { %4359 = vpow2.f32 %v3991_v57  ;;  %v7514_v57 = vld [vmem:[#allocation95_spill] sm:$0xff] }
 0x4f4   :  { %v4354_v0 = vpop.eup %4353 }
 0x4f5   :  { %v2075_v19 = vadd.f32 1.0, %v4354_v0  ;;  %v4356_v27 = vpop.eup %4355 }
 0x4f6   :  { %v2076_v18 = vadd.f32 1.0, %v4356_v27  ;;  %v4358_v26 = vpop.eup %4357 }
 0x4f7   :  { %4361 = vrcp.f32 %v2075_v19  ;;  %v4360_v58 = vpop.eup %4359 }
 0x4f8   :  { %4363 = vrcp.f32 %v2076_v18  ;;  %v2077_v16 = vadd.f32 1.0, %v4360_v58 }
 0x4fa   :  { %4365 = vrcp.f32 %v2077_v16 }
 0x501   :  { %v4362_v34 = vpop.eup %4361 }
 0x502   :  { %v2086_v29 = vmul.f32 %v4362_v34, %v4358_v26  ;;  %v4364_v54 = vpop.eup %4363 }
 0x503   :  { %v2129_v41 = vpop.f32.mrb[52].mxu0  ;;  %v2170_v2 = vpop.f32.mrb[52].mxu1  ;;  %v2085_v32 = vmul.f32 %v4364_v54, %v5942_v46 }
 0x504   :  { %v2177_v5 = vadd.f32 %v2129_v41, %v7511_v21  ;;  %v2179_v40 = vadd.f32 %v2170_v2, %v7512_v13  ;;  %v2131_v22 = vpop.f32.mrb[53].mxu0  ;;  %v2172_v33 = vpop.f32.mrb[53].mxu1 }
 0x505   :  { %v2178_v55 = vadd.f32 %v2131_v22, %v7513_v20  ;;  %v2180_v0 = vadd.f32 %v2172_v33, %v7514_v57  ;;  %v2133_v19 = vpop.f32.mrb[54].mxu0  ;;  %v2174_v27 = vpop.f32.mrb[54].mxu1  ;;  %v6188_v18 = vadd.f32 %v2086_v29, %v2085_v32 }
 0x506   :  { %v3992_v26 = vmul.f32 -1.442695, %v2177_v5  ;;  %v2134_v58 = vpop.f32.mrb[55].mxu0  ;;  %v2175_v34 = vpop.f32.mrb[55].mxu1  ;;  %v3994_v54 = vmul.f32 -1.442695, %v2179_v40 }
 0x507   :  { %v3993_v50 = vmul.f32 -1.442695, %v2178_v55  ;;  %4367 = vtanh.f32 %v6188_v18  ;;  %v4366_v46 = vpop.eup %4365  ;;  %v7516_v58 = vld [vmem:[#allocation28_spill] sm:$0xff]  ;;  %v7517_v34 = vld [vmem:[#allocation29_spill] sm:$0xff] }
 0x508   :  { %4369 = vpow2.f32 %v3992_v26  ;;  %v7515_v26 = vld [vmem:[#allocation27_spill] sm:$0xff] }
 0x509   :  { %4371 = vpow2.f32 %v3993_v50 }
 0x50a   :  { %4373 = vtanh.f32 %v2180_v0 }
 0x50b   :  { %4375 = vpow2.f32 %v3994_v54  ;;  %v7524_v54 = vld [vmem:[#allocation36_spill] sm:$0xff] }
 0x511   :  { %v4368_v41 = vpop.eup %4367 }
 0x512   :  { %v4370_v2 = vpop.eup %4369  ;;  %v2089_v21 = vmul.f32 %v4368_v41, %v4366_v46  ;;  %v7520_v46 = vld [vmem:[#allocation32_spill] sm:$0xff]  ;;  %v7525_v41 = vld [vmem:[#allocation37_spill] sm:$0xff] }
 0x513   :  { %v2190_v13 = vadd.f32 1.0, %v4370_v2  ;;  %v4372_v22 = vpop.eup %4371  ;;  %v7526_v2 = vld [vmem:[#allocation38_spill] sm:$0xff] }
 0x514   :  { %v2206_v29 = vpack.c.bf16 %v2089_v21, %v2089_v21  ;;  %v2191_v32 = vadd.f32 1.0, %v4372_v22  ;;  %v4374_v50 = vpop.eup %4373  ;;  %v7527_v21 = vld [vmem:[#allocation39_spill] sm:$0xff]  ;;  %v7529_v22 = vld [vmem:[#allocation41_spill] sm:$0xff] }
 0x515   :  { %4377 = vrcp.f32 %v2190_v13  ;;  %v4376_v16 = vpop.eup %4375  ;;  %v7528_v13 = vld [vmem:[#allocation40_spill] sm:$0xff] }
 0x516   :  { %2240 = vmatmul.mubr.bf16.vlgmr.msra.gmra.mrb[56].mxu0 %v2206_v29  ;;  %2281 = vmatmul.mubr.bf16.vlgmr.msra.gmra.mrb[56].mxu1 %v2206_v29  ;;  %4379 = vrcp.f32 %v2191_v32  ;;  %v2192_v20 = vadd.f32 1.0, %v4376_v16  ;;  %v7530_v29 = vld [vmem:[#allocation42_spill] sm:$0xff]  ;;  %v7531_v32 = vld [vmem:[#allocation43_spill] sm:$0xff]  ;;  %v7533_v16 = vld [vmem:[#allocation45_spill] sm:$0xff] }
 0x517   :  { %2290 = vmatpush1.bf16.msra.mxu0 %v5945_v44  ;;  %2331 = vmatpush1.bf16.msra.mxu1 %v5948_v25 }
 0x518   :  { %2291 = vmatprep.subr.bf16.mxu0 %v5951_v35  ;;  %2332 = vmatprep.subr.bf16.mxu1 %v5954_v53  ;;  %4381 = vrcp.f32 %v2192_v20  ;;  %v7537_v20 = vld [vmem:[#allocation49_spill] sm:$0xff] }
 0x519   :  { %2321 = vmatprep.mubr.bf16.mxu0 %v7311_v7  ;;  %2362 = vmatprep.mubr.bf16.mxu1 %v7311_v7 }
 0x51b   :  { %2292 = vmatpush1.bf16.msra.mxu0 %v5959_v24  ;;  %2333 = vmatpush1.bf16.msra.mxu1 %v5962_v8 }
 0x51c   :  { %2293 = vmatprep.subr.bf16.mxu0 %v5965_v9  ;;  %2334 = vmatprep.subr.bf16.mxu1 %v5968_v10 }
 0x51f   :  { %v4378_v5 = vpop.eup %4377  ;;  %2294 = vmatpush1.bf16.msra.mxu0 %v5971_v14  ;;  %2335 = vmatpush1.bf16.msra.mxu1 %v5974_v15 }
 0x520   :  { %v2201_v40 = vmul.f32 %v4378_v5, %v4374_v50  ;;  %2295 = vmatprep.subr.bf16.mxu0 %v5977_v37  ;;  %2336 = vmatprep.subr.bf16.mxu1 %v5980_v38  ;;  %v4380_v33 = vpop.eup %4379  ;;  %v7532_v50 = vld [vmem:[#allocation44_spill] sm:$0xff]  ;;  %v7534_v5 = vld [vmem:[#allocation46_spill] sm:$0xff] }
 0x521   :  { %v2200_v55 = vmul.f32 %v4380_v33, %v5990_v45  ;;  %v7536_v33 = vld [vmem:[#allocation48_spill] sm:$0xff] }
 0x522   :  { %v4382_v45 = vpop.eup %4381 }
 0x523   :  { %2296 = vmatpush1.bf16.msra.mxu0 %v5984_v42  ;;  %2337 = vmatpush1.bf16.msra.mxu1 %v5987_v43  ;;  %v6208_v57 = vadd.f32 %v2201_v40, %v2200_v55  ;;  %v7535_v40 = vld [vmem:[#allocation47_spill] sm:$0xff]  ;;  %v7538_v55 = vld [vmem:[#allocation50_spill] sm:$0xff] }
 0x524   :  { %2297 = vmatprep.subr.bf16.mxu0 %v5992_v48  ;;  %2338 = vmatprep.subr.bf16.mxu1 %v5995_v49 }
 0x525   :  { %4383 = vtanh.f32 %v6208_v57 }
 0x527   :  { %2298 = vmatpush1.bf16.msra.mxu0 %v5999_v31  ;;  %2339 = vmatpush1.bf16.msra.mxu1 %v6002_v51 }
 0x528   :  { %2299 = vmatprep.subr.bf16.mxu0 %v6005_v52  ;;  %2340 = vmatprep.subr.bf16.mxu1 %v6008_v62 }
 0x52b   :  { %2300 = vmatpush1.bf16.msra.mxu0 %v6011_v59  ;;  %2341 = vmatpush1.bf16.msra.mxu1 %v6014_v60 }
 0x52c   :  { %2301 = vmatprep.subr.bf16.mxu0 %v6017_v63  ;;  %2342 = vmatprep.subr.bf16.mxu1 %v6020_v1 }
 0x52f   :  { %2302 = vmatpush1.bf16.msra.mxu0 %v6023_v3  ;;  %2343 = vmatpush1.bf16.msra.mxu1 %v6026_v4  ;;  %v4384_v0 = vpop.eup %4383 }
 0x530   :  { %2303 = vmatprep.subr.bf16.mxu0 %v6029_v11  ;;  %2344 = vmatprep.subr.bf16.mxu1 %v6032_v12  ;;  %v2204_v19 = vmul.f32 %v4384_v0, %v4382_v45  ;;  %v7539_v45 = vld [vmem:[#allocation81_spill] sm:$0xff]  ;;  %v7540_v0 = vld [vmem:[#allocation84_spill] sm:$0xff] }
 0x532   :  { %v2205_v27 = vpack.c.bf16 %v2204_v19, %v2204_v19  ;;  %v7541_v19 = vld [vmem:[#allocation85_spill] sm:$0xff] }
 0x533   :  { %2304 = vmatpush1.bf16.msra.mxu0 %v6035_v36  ;;  %2345 = vmatpush1.bf16.msra.mxu1 %v6038_v39 }
 0x534   :  { %2404 = vmatprep.subr.bf16.mxu0 %v5795_v17  ;;  %2445 = vmatprep.subr.bf16.mxu1 %v5798_v56  ;;  %v7518_v17 = vld [vmem:[#allocation30_spill] sm:$0xff]  ;;  %v7519_v56 = vld [vmem:[#allocation31_spill] sm:$0xff] }
 0x536   :  { %2322 = vmatmul.mubr.bf16.vlgmr.msra.gmra.mrb[60].mxu0 %v2205_v27  ;;  %2363 = vmatmul.mubr.bf16.vlgmr.msra.gmra.mrb[60].mxu1 %v2205_v27 }
 0x537   :  { %2405 = vmatpush1.bf16.msra.mxu0 %v5803_v47  ;;  %2446 = vmatpush1.bf16.msra.mxu1 %v5806_v23  ;;  %v7521_v47 = vld [vmem:[#allocation33_spill] sm:$0xff]  ;;  %v7522_v23 = vld [vmem:[#allocation34_spill] sm:$0xff] }
 0x538   :  { %2406 = vmatprep.subr.bf16.mxu0 %v5809_v30  ;;  %2447 = vmatprep.subr.bf16.mxu1 %v7515_v26  ;;  %v7523_v30 = vld [vmem:[#allocation35_spill] sm:$0xff]  ;;  %v7542_v26 = vld [vmem:[#allocation86_spill] sm:$0xff] }
 0x539   :  { %2436 = vmatprep.mubr.bf16.mxu0 %v7311_v7  ;;  %2477 = vmatprep.mubr.bf16.mxu1 %v7311_v7 }
 0x53b   :  { %2407 = vmatpush1.bf16.msra.mxu0 %v7516_v58  ;;  %2448 = vmatpush1.bf16.msra.mxu1 %v7517_v34  ;;  %v7543_v58 = vld [vmem:[#allocation87_spill] sm:$0xff] }
 0x53c   :  { %2408 = vmatprep.subr.bf16.mxu0 %v7518_v17  ;;  %2449 = vmatprep.subr.bf16.mxu1 %v7519_v56  ;;  %v7544_v34 = vld [vmem:[#allocation51_spill] sm:$0xff]  ;;  %v7545_v17 = vld [vmem:[#allocation52_spill] sm:$0xff]  ;;  %v7546_v56 = vld [vmem:[#allocation53_spill] sm:$0xff] }
 0x53f   :  { %2409 = vmatpush1.bf16.msra.mxu0 %v7520_v46  ;;  %2450 = vmatpush1.bf16.msra.mxu1 %v7521_v47  ;;  %v7547_v46 = vld [vmem:[#allocation54_spill] sm:$0xff]  ;;  %v7548_v47 = vld [vmem:[#allocation55_spill] sm:$0xff] }
 0x540   :  { %2410 = vmatprep.subr.bf16.mxu0 %v7522_v23  ;;  %2451 = vmatprep.subr.bf16.mxu1 %v7523_v30  ;;  %v7549_v23 = vld [vmem:[#allocation56_spill] sm:$0xff]  ;;  %v7550_v30 = vld [vmem:[#allocation57_spill] sm:$0xff] }
 0x543   :  { %2411 = vmatpush1.bf16.msra.mxu0 %v7524_v54  ;;  %2452 = vmatpush1.bf16.msra.mxu1 %v7525_v41  ;;  %v7551_v54 = vld [vmem:[#allocation58_spill] sm:$0xff]  ;;  %v7553_v41 = vld [vmem:[#allocation60_spill] sm:$0xff] }
 0x544   :  { %2412 = vmatprep.subr.bf16.mxu0 %v7526_v2  ;;  %2453 = vmatprep.subr.bf16.mxu1 %v7527_v21  ;;  %v7554_v2 = vld [vmem:[#allocation61_spill] sm:$0xff]  ;;  %v7555_v21 = vld [vmem:[#allocation62_spill] sm:$0xff] }
 0x547   :  { %2413 = vmatpush1.bf16.msra.mxu0 %v7528_v13  ;;  %2454 = vmatpush1.bf16.msra.mxu1 %v7529_v22  ;;  %v7556_v13 = vld [vmem:[#allocation63_spill] sm:$0xff]  ;;  %v7557_v22 = vld [vmem:[#allocation64_spill] sm:$0xff] }
 0x548   :  { %2414 = vmatprep.subr.bf16.mxu0 %v7530_v29  ;;  %2455 = vmatprep.subr.bf16.mxu1 %v7531_v32  ;;  %v7558_v29 = vld [vmem:[#allocation65_spill] sm:$0xff]  ;;  %v7559_v32 = vld [vmem:[#allocation66_spill] sm:$0xff] }
 0x54b   :  { %2415 = vmatpush1.bf16.msra.mxu0 %v7532_v50  ;;  %2456 = vmatpush1.bf16.msra.mxu1 %v7533_v16  ;;  %v7560_v50 = vld [vmem:[#allocation67_spill] sm:$0xff]  ;;  %v7561_v16 = vld [vmem:[#allocation68_spill] sm:$0xff] }
 0x54c   :  { %2416 = vmatprep.subr.bf16.mxu0 %v7534_v5  ;;  %2457 = vmatprep.subr.bf16.mxu1 %v7535_v40  ;;  %v7562_v5 = vld [vmem:[#allocation69_spill] sm:$0xff]  ;;  %v7563_v40 = vld [vmem:[#allocation70_spill] sm:$0xff] }
 0x54f   :  { %2417 = vmatpush1.bf16.msra.mxu0 %v7536_v33  ;;  %2458 = vmatpush1.bf16.msra.mxu1 %v7537_v20  ;;  %v7564_v33 = vld [vmem:[#allocation71_spill] sm:$0xff]  ;;  %v7565_v20 = vld [vmem:[#allocation72_spill] sm:$0xff] }
 0x550   :  { %2418 = vmatprep.subr.bf16.mxu0 %v7538_v55  ;;  %2459 = vmatprep.subr.bf16.mxu1 %v7539_v45  ;;  %v7566_v55 = vld [vmem:[#allocation73_spill] sm:$0xff]  ;;  %v7567_v45 = vld [vmem:[#allocation74_spill] sm:$0xff] }
 0x553   :  { %2419 = vmatpush1.bf16.msra.mxu0 %v7540_v0  ;;  %2460 = vmatpush1.bf16.msra.mxu1 %v7541_v19  ;;  %v7568_v0 = vld [vmem:[#allocation75_spill] sm:$0xff]  ;;  %v7569_v19 = vld [vmem:[#allocation76_spill] sm:$0xff] }
 0x554   :  { %2516 = vmatprep.subr.bf16.mxu0 %v7542_v26  ;;  %2557 = vmatprep.subr.bf16.mxu1 %v7543_v58 }
 0x556   :  { %2437 = vmatmul.mubr.bf16.vlgmr.msra.gmra.mrb[64].mxu0 %v2205_v27  ;;  %2478 = vmatmul.mubr.bf16.vlgmr.msra.gmra.mrb[64].mxu1 %v2205_v27  ;;  %v7552_v27 = vld [vmem:[#allocation59_spill] sm:$0xff] }
 0x557   :  { %2517 = vmatpush1.bf16.msra.mxu0 %v7544_v34  ;;  %2558 = vmatpush1.bf16.msra.mxu1 %v7545_v17 }
 0x558   :  { %2518 = vmatprep.subr.bf16.mxu0 %v7546_v56  ;;  %2559 = vmatprep.subr.bf16.mxu1 %v7547_v46 }
 0x559   :  { %2548 = vmatprep.mubr.bf16.mxu0 %v7311_v7  ;;  %2589 = vmatprep.mubr.bf16.mxu1 %v7311_v7 }
 0x55b   :  { %2519 = vmatpush1.bf16.msra.mxu0 %v7548_v47  ;;  %2560 = vmatpush1.bf16.msra.mxu1 %v7549_v23 }
 0x55c   :  { %2520 = vmatprep.subr.bf16.mxu0 %v7550_v30  ;;  %2561 = vmatprep.subr.bf16.mxu1 %v7551_v54 }
 0x55f   :  { %2521 = vmatpush1.bf16.msra.mxu0 %v7552_v27  ;;  %2562 = vmatpush1.bf16.msra.mxu1 %v7553_v41 }
 0x560   :  { %2522 = vmatprep.subr.bf16.mxu0 %v7554_v2  ;;  %2563 = vmatprep.subr.bf16.mxu1 %v7555_v21 }
 0x563   :  { %2523 = vmatpush1.bf16.msra.mxu0 %v7556_v13  ;;  %2564 = vmatpush1.bf16.msra.mxu1 %v7557_v22 }
 0x564   :  { %2524 = vmatprep.subr.bf16.mxu0 %v7558_v29  ;;  %2565 = vmatprep.subr.bf16.mxu1 %v7559_v32  ;;  %v7570_v32 = vld [vmem:[#allocation77_spill] sm:$0xff] }
 0x567   :  { %2525 = vmatpush1.bf16.msra.mxu0 %v7560_v50  ;;  %2566 = vmatpush1.bf16.msra.mxu1 %v7561_v16  ;;  %v7571_v50 = vld [vmem:[#allocation78_spill] sm:$0xff]  ;;  %v7572_v16 = vld [vmem:[#allocation79_spill] sm:$0xff] }
 0x568   :  { %2526 = vmatprep.subr.bf16.mxu0 %v7562_v5  ;;  %2567 = vmatprep.subr.bf16.mxu1 %v7563_v40  ;;  %v7573_v5 = vld [vmem:[#allocation80_spill] sm:$0xff] }
 0x569   :  { %v7574_v40 = vld [vmem:[#allocation88_spill] sm:$0xff] }
 0x56b   :  { %2527 = vmatpush1.bf16.msra.mxu0 %v7564_v33  ;;  %2568 = vmatpush1.bf16.msra.mxu1 %v7565_v20  ;;  %v7575_v33 = vld [vmem:[#allocation89_spill] sm:$0xff] }
 0x56c   :  { %2528 = vmatprep.subr.bf16.mxu0 %v7566_v55  ;;  %2569 = vmatprep.subr.bf16.mxu1 %v7567_v45 }
 0x56f   :  { %2529 = vmatpush1.bf16.msra.mxu0 %v7568_v0  ;;  %2570 = vmatpush1.bf16.msra.mxu1 %v7569_v19 }
 0x570   :  { %2530 = vmatprep.subr.bf16.mxu0 %v7570_v32  ;;  %2571 = vmatprep.subr.bf16.mxu1 %v7571_v50 }
 0x573   :  { %2531 = vmatpush1.bf16.msra.mxu0 %v7572_v16  ;;  %2572 = vmatpush1.bf16.msra.mxu1 %v7573_v5 }
 0x574   :  { %2598 = vmatprep.subr.bf16.mxu0 %v7574_v40  ;;  %2639 = vmatprep.subr.bf16.mxu1 %v7575_v33 }
 0x5e9   :  { %v2241_v20 = vpop.f32.mrb[56].mxu0  ;;  %v2282_v55 = vpop.f32.mrb[56].mxu1 }
 0x5ea   :  { %v2243_v29 = vpop.f32.mrb[57].mxu0  ;;  %v2284_v45 = vpop.f32.mrb[57].mxu1 }
 0x5eb   :  { %v2245_v22 = vpop.f32.mrb[58].mxu0  ;;  %v2286_v0 = vpop.f32.mrb[58].mxu1 }
 0x5ec   :  { %v2246_v13 = vpop.f32.mrb[59].mxu0  ;;  %v2287_v19 = vpop.f32.mrb[59].mxu1 }
 0x5ed   :  { %v7578_v19 = vld [vmem:[#allocation97_spill] sm:$0xff] }
 0x609   :  { %v2323_v21 = vpop.f32.mrb[60].mxu0  ;;  %v2364_v32 = vpop.f32.mrb[60].mxu1 }
 0x60a   :  { %v2324_v2 = vadd.f32 %v2323_v21, %v2241_v20  ;;  %v2365_v50 = vadd.f32 %v2364_v32, %v2282_v55  ;;  %v2325_v41 = vpop.f32.mrb[61].mxu0  ;;  %v2366_v16 = vpop.f32.mrb[61].mxu1  ;;  %v7576_v21 = vld [vmem:[#allocation26_spill] sm:$0xff] }
 0x60b   :  { %v2326_v27 = vadd.f32 %v2325_v41, %v2243_v29  ;;  %v2367_v5 = vadd.f32 %v2366_v16, %v2284_v45  ;;  %v2327_v54 = vpop.f32.mrb[62].mxu0  ;;  %v2368_v40 = vpop.f32.mrb[62].mxu1 }
 0x60c   :  { %v2371_v33 = vadd.f32 %v2324_v2, %v5733_v6  ;;  %v2328_v30 = vpop.f32.mrb[63].mxu0  ;;  %v2369_v23 = vpop.f32.mrb[63].mxu1  ;;  %v2373_v13 = vadd.f32 %v2365_v50, %v5742_v61 }
 0x60d   :  { %v2372_v47 = vadd.f32 %v2326_v27, %v5736_v28  ;;  %v2374_v32 = vadd.f32 %v2367_v5, %v7576_v21  ;;  %v7577_v5 = vld [vmem:[#allocation96_spill] sm:$0xff] }
 0x60e   :  { %v3995_v22 = vmul.f32 -1.442695, %v2371_v33  ;;  %v3997_v20 = vmul.f32 -1.442695, %v2373_v13 }
 0x60f   :  { %v3996_v0 = vmul.f32 -1.442695, %v2372_v47 }
 0x610   :  { %4385 = vpow2.f32 %v3995_v22 }
 0x611   :  { %4387 = vpow2.f32 %v3996_v0 }
 0x612   :  { %4389 = vtanh.f32 %v2374_v32  ;;  %v7579_v32 = vld [vmem:[#allocation98_spill] sm:$0xff] }
 0x613   :  { %4391 = vpow2.f32 %v3997_v20 }
 0x61a   :  { %v4386_v55 = vpop.eup %4385 }
 0x61b   :  { %v2384_v41 = vadd.f32 1.0, %v4386_v55  ;;  %v4388_v54 = vpop.eup %4387  ;;  %v7580_v55 = vld [vmem:[#allocation99_spill] sm:$0xff] }
 0x61c   :  { %v2385_v2 = vadd.f32 1.0, %v4388_v54  ;;  %v4390_v23 = vpop.eup %4389 }
 0x61d   :  { %4393 = vrcp.f32 %v2384_v41  ;;  %v4392_v30 = vpop.eup %4391 }
 0x61e   :  { %4395 = vrcp.f32 %v2385_v2  ;;  %v2386_v16 = vadd.f32 1.0, %v4392_v30 }
 0x620   :  { %4397 = vrcp.f32 %v2386_v16 }
 0x627   :  { %v4394_v27 = vpop.eup %4393 }
 0x628   :  { %v2395_v29 = vmul.f32 %v4394_v27, %v4390_v23  ;;  %v4396_v47 = vpop.eup %4395 }
 0x629   :  { %v2438_v40 = vpop.f32.mrb[64].mxu0  ;;  %v2479_v33 = vpop.f32.mrb[64].mxu1  ;;  %v2394_v50 = vmul.f32 %v4396_v47, %v6188_v18 }
 0x62a   :  { %v2486_v45 = vadd.f32 %v2438_v40, %v7577_v5  ;;  %v2488_v22 = vadd.f32 %v2479_v33, %v7578_v19  ;;  %v2440_v0 = vpop.f32.mrb[65].mxu0  ;;  %v2481_v13 = vpop.f32.mrb[65].mxu1 }
 0x62b   :  { %v2487_v20 = vadd.f32 %v2440_v0, %v7579_v32  ;;  %v2489_v41 = vadd.f32 %v2481_v13, %v7580_v55  ;;  %v2442_v54 = vpop.f32.mrb[66].mxu0  ;;  %v2483_v2 = vpop.f32.mrb[66].mxu1  ;;  %v6306_v21 = vadd.f32 %v2395_v29, %v2394_v50  ;;  %v6420_v13 = vld [vmem:[#allocation8 + $0xa8] ss:$16 sps:$4 sm:$0xff]   ;;  %v6423_v32 = vld [vmem:[#allocation8 + $0xc4] ss:$16 sps:$4 sm:$0xff]  }
 0x62c   :  { %v3998_v23 = vmul.f32 -1.442695, %v2486_v45  ;;  %v2443_v30 = vpop.f32.mrb[67].mxu0  ;;  %v2484_v27 = vpop.f32.mrb[67].mxu1  ;;  %v4000_v47 = vmul.f32 -1.442695, %v2488_v22 }
 0x62d   :  { %v3999_v61 = vmul.f32 -1.442695, %v2487_v20  ;;  %4399 = vtanh.f32 %v6306_v21  ;;  %v4398_v18 = vpop.eup %4397  ;;  %v6414_v45 = vld [vmem:[#allocation8 + $0xac] ss:$16 sps:$4 sm:$0xff]   ;;  %v6417_v22 = vld [vmem:[#allocation8 + $0xa0] ss:$16 sps:$4 sm:$0xff]  }
 0x62e   :  { %4401 = vpow2.f32 %v3998_v23  ;;  %7588 = vst [vmem:[#allocation28_spill] sm:$0xff] %v6414_v45  ;;  %7589 = vst [vmem:[#allocation29_spill] sm:$0xff] %v6417_v22  ;;  %v6426_v20 = vld [vmem:[#allocation8 + $0xcc] ss:$16 sps:$4 sm:$0xff]   ;;  %v6429_v55 = vld [vmem:[#allocation8 + $0xc0] ss:$16 sps:$4 sm:$0xff]  }
 0x62f   :  { %4403 = vpow2.f32 %v3999_v61  ;;  %7590 = vst [vmem:[#allocation30_spill] sm:$0xff] %v6420_v13  ;;  %7591 = vst [vmem:[#allocation31_spill] sm:$0xff] %v6423_v32  ;;  %v6435_v54 = vld [vmem:[#allocation8 + $0xe4] ss:$16 sps:$4 sm:$0xff]   ;;  %v6438_v2 = vld [vmem:[#allocation8 + $0xec] ss:$16 sps:$4 sm:$0xff]  }
 0x630   :  { %4405 = vtanh.f32 %v2489_v41  ;;  %7592 = vst [vmem:[#allocation32_spill] sm:$0xff] %v6426_v20  ;;  %7593 = vst [vmem:[#allocation33_spill] sm:$0xff] %v6429_v55  ;;  %v6432_v41 = vld [vmem:[#allocation8 + $0xc8] ss:$16 sps:$4 sm:$0xff]   ;;  %v6441_v23 = vld [vmem:[#allocation8 + $0xe0] ss:$16 sps:$4 sm:$0xff]  }
 0x631   :  { %4407 = vpow2.f32 %v4000_v47  ;;  %7594 = vst [vmem:[#allocation34_spill] sm:$0xff] %v6432_v41  ;;  %7595 = vst [vmem:[#allocation35_spill] sm:$0xff] %v6435_v54  ;;  %v6444_v30 = vld [vmem:[#allocation8 + $0xe8] ss:$16 sps:$4 sm:$0xff]  }
 0x632   :  { %7596 = vst [vmem:[#allocation36_spill] sm:$0xff] %v6438_v2  ;;  %7597 = vst [vmem:[#allocation37_spill] sm:$0xff] %v6441_v23  ;;  %v7599_v27 = vld [vmem:[#allocation55_spill] sm:$0xff] }
 0x633   :  { %7598 = vst [vmem:[#allocation38_spill] sm:$0xff] %v6444_v30  ;;  %v7603_v47 = vld [vmem:[#allocation59_spill] sm:$0xff] }
 0x637   :  { %v4400_v40 = vpop.eup %4399 }
 0x638   :  { %v4402_v33 = vpop.eup %4401  ;;  %v2398_v5 = vmul.f32 %v4400_v40, %v4398_v18  ;;  %v7602_v18 = vld [vmem:[#allocation58_spill] sm:$0xff]  ;;  %v7608_v40 = vld [vmem:[#allocation64_spill] sm:$0xff] }
 0x639   :  { %v2499_v19 = vadd.f32 1.0, %v4402_v33  ;;  %v4404_v0 = vpop.eup %4403  ;;  %v7609_v33 = vld [vmem:[#allocation65_spill] sm:$0xff] }
 0x63a   :  { %v2515_v29 = vpack.c.bf16 %v2398_v5, %v2398_v5  ;;  %v2500_v50 = vadd.f32 1.0, %v4404_v0  ;;  %v4406_v61 = vpop.eup %4405  ;;  %v7610_v5 = vld [vmem:[#allocation66_spill] sm:$0xff]  ;;  %v7612_v0 = vld [vmem:[#allocation68_spill] sm:$0xff] }
 0x63b   :  { %4409 = vrcp.f32 %v2499_v19  ;;  %v7611_v19 = vld [vmem:[#allocation67_spill] sm:$0xff] }
 0x63c   :  { %2549 = vmatmul.mubr.bf16.vlgmr.msra.gmra.mrb[68].mxu0 %v2515_v29  ;;  %2590 = vmatmul.mubr.bf16.vlgmr.msra.gmra.mrb[68].mxu1 %v2515_v29  ;;  %4411 = vrcp.f32 %v2500_v50  ;;  %v7613_v29 = vld [vmem:[#allocation69_spill] sm:$0xff]  ;;  %v7614_v50 = vld [vmem:[#allocation70_spill] sm:$0xff] }
 0x63d   :  { %2599 = vmatpush1.bf16.msra.mxu0 %v5945_v44  ;;  %2640 = vmatpush1.bf16.msra.mxu1 %v5948_v25  ;;  %v4408_v44 = vpop.eup %4407 }
 0x63e   :  { %2600 = vmatprep.subr.bf16.mxu0 %v5951_v35  ;;  %2641 = vmatprep.subr.bf16.mxu1 %v5954_v53  ;;  %v2501_v53 = vadd.f32 1.0, %v4408_v44  ;;  %v7616_v44 = vld [vmem:[#allocation72_spill] sm:$0xff] }
 0x63f   :  { %2630 = vmatprep.mubr.bf16.mxu0 %v7311_v7  ;;  %2671 = vmatprep.mubr.bf16.mxu1 %v7311_v7 }
 0x640   :  { %4413 = vrcp.f32 %v2501_v53  ;;  %v7620_v53 = vld [vmem:[#allocation76_spill] sm:$0xff] }
 0x641   :  { %2601 = vmatpush1.bf16.msra.mxu0 %v5959_v24  ;;  %2642 = vmatpush1.bf16.msra.mxu1 %v5962_v8 }
 0x642   :  { %2602 = vmatprep.subr.bf16.mxu0 %v5965_v9  ;;  %2643 = vmatprep.subr.bf16.mxu1 %v5968_v10 }
 0x645   :  { %v4410_v16 = vpop.eup %4409  ;;  %2603 = vmatpush1.bf16.msra.mxu0 %v5971_v14  ;;  %2644 = vmatpush1.bf16.msra.mxu1 %v5974_v15 }
 0x646   :  { %v2510_v25 = vmul.f32 %v4410_v16, %v4406_v61  ;;  %2604 = vmatprep.subr.bf16.mxu0 %v5977_v37  ;;  %2645 = vmatprep.subr.bf16.mxu1 %v5980_v38  ;;  %v4412_v35 = vpop.eup %4411  ;;  %v6347_v37 = vld [vmem:[#allocation8 + $0x4] ss:$16 sps:$4 sm:$0xff]   ;;  %v6350_v38 = vld [vmem:[#allocation8 + $0xc] ss:$16 sps:$4 sm:$0xff]  }
 0x647   :  { %v2509_v24 = vmul.f32 %v4412_v35, %v6208_v57  ;;  %v6411_v57 = vld [vmem:[#allocation8 + $0xa4] ss:$16 sps:$4 sm:$0xff]   ;;  %v7615_v61 = vld [vmem:[#allocation71_spill] sm:$0xff]  ;;  %v7617_v16 = vld [vmem:[#allocation73_spill] sm:$0xff] }
 0x648   :  { %7587 = vst [vmem:[#allocation27_spill] sm:$0xff] %v6411_v57  ;;  %v7619_v35 = vld [vmem:[#allocation75_spill] sm:$0xff] }
 0x649   :  { %2605 = vmatpush1.bf16.msra.mxu0 %v5984_v42  ;;  %2646 = vmatpush1.bf16.msra.mxu1 %v5987_v43  ;;  %v6326_v8 = vadd.f32 %v2510_v25, %v2509_v24  ;;  %v6355_v42 = vld [vmem:[#allocation8] ss:$16 sps:$4 sm:$0xff]   ;;  %v6358_v43 = vld [vmem:[#allocation8 + $0x8] ss:$16 sps:$4 sm:$0xff]  }
 0x64a   :  { %2606 = vmatprep.subr.bf16.mxu0 %v5992_v48  ;;  %2647 = vmatprep.subr.bf16.mxu1 %v5995_v49  ;;  %v4414_v9 = vpop.eup %4413  ;;  %v6361_v48 = vld [vmem:[#allocation8 + $0x24] ss:$16 sps:$4 sm:$0xff]   ;;  %v6364_v49 = vld [vmem:[#allocation8 + $0x2c] ss:$16 sps:$4 sm:$0xff]  }
 0x64b   :  { %4415 = vtanh.f32 %v6326_v8  ;;  %v7618_v25 = vld [vmem:[#allocation74_spill] sm:$0xff]  ;;  %v7621_v24 = vld [vmem:[#allocation77_spill] sm:$0xff] }
 0x64d   :  { %2607 = vmatpush1.bf16.msra.mxu0 %v5999_v31  ;;  %2648 = vmatpush1.bf16.msra.mxu1 %v6002_v51  ;;  %v6369_v31 = vld [vmem:[#allocation8 + $0x20] ss:$16 sps:$4 sm:$0xff]   ;;  %v6372_v51 = vld [vmem:[#allocation8 + $0x28] ss:$16 sps:$4 sm:$0xff]  }
 0x64e   :  { %2608 = vmatprep.subr.bf16.mxu0 %v6005_v52  ;;  %2649 = vmatprep.subr.bf16.mxu1 %v6008_v62  ;;  %v6375_v52 = vld [vmem:[#allocation8 + $0x44] ss:$16 sps:$4 sm:$0xff]   ;;  %v6378_v62 = vld [vmem:[#allocation8 + $0x4c] ss:$16 sps:$4 sm:$0xff]  }
 0x651   :  { %2609 = vmatpush1.bf16.msra.mxu0 %v6011_v59  ;;  %2650 = vmatpush1.bf16.msra.mxu1 %v6014_v60  ;;  %v6381_v59 = vld [vmem:[#allocation8 + $0x40] ss:$16 sps:$4 sm:$0xff]   ;;  %v6384_v60 = vld [vmem:[#allocation8 + $0x48] ss:$16 sps:$4 sm:$0xff]  }
 0x652   :  { %2610 = vmatprep.subr.bf16.mxu0 %v6017_v63  ;;  %2651 = vmatprep.subr.bf16.mxu1 %v6020_v1  ;;  %v6387_v63 = vld [vmem:[#allocation8 + $0x64] ss:$16 sps:$4 sm:$0xff]   ;;  %v6390_v1 = vld [vmem:[#allocation8 + $0x6c] ss:$16 sps:$4 sm:$0xff]  }
 0x655   :  { %2611 = vmatpush1.bf16.msra.mxu0 %v6023_v3  ;;  %2652 = vmatpush1.bf16.msra.mxu1 %v6026_v4  ;;  %v4416_v10 = vpop.eup %4415  ;;  %v6393_v3 = vld [vmem:[#allocation8 + $0x60] ss:$16 sps:$4 sm:$0xff]   ;;  %v6396_v4 = vld [vmem:[#allocation8 + $0x68] ss:$16 sps:$4 sm:$0xff]  }
 0x656   :  { %2612 = vmatprep.subr.bf16.mxu0 %v6029_v11  ;;  %2653 = vmatprep.subr.bf16.mxu1 %v6032_v12  ;;  %v2513_v14 = vmul.f32 %v4416_v10, %v4414_v9  ;;  %7581 = vst [vmem:[#allocation90_spill] sm:$0xff] %v6393_v3  ;;  %7582 = vst [vmem:[#allocation91_spill] sm:$0xff] %v6396_v4  ;;  %v6399_v11 = vld [vmem:[#allocation8 + $0x84] ss:$16 sps:$4 sm:$0xff]   ;;  %v6402_v12 = vld [vmem:[#allocation8 + $0x8c] ss:$16 sps:$4 sm:$0xff]  }
 0x657   :  { %7583 = vst [vmem:[#allocation92_spill] sm:$0xff] %v6399_v11  ;;  %7584 = vst [vmem:[#allocation93_spill] sm:$0xff] %v6402_v12  ;;  %v7622_v9 = vld [vmem:[#allocation78_spill] sm:$0xff]  ;;  %v7623_v10 = vld [vmem:[#allocation79_spill] sm:$0xff] }
 0x658   :  { %v6345_v15 = vpack.c.bf16 %v2513_v14, %v2513_v14  ;;  %v7624_v14 = vld [vmem:[#allocation80_spill] sm:$0xff] }
 0x659   :  { %2613 = vmatpush1.bf16.msra.mxu0 %v6035_v36  ;;  %2654 = vmatpush1.bf16.msra.mxu1 %v6038_v39  ;;  %v6405_v36 = vld [vmem:[#allocation8 + $0x80] ss:$16 sps:$4 sm:$0xff]   ;;  %v6408_v39 = vld [vmem:[#allocation8 + $0x88] ss:$16 sps:$4 sm:$0xff]  }
 0x65a   :  { %2713 = vmatprep.subr.bf16.mxu0 %v6347_v37  ;;  %2754 = vmatprep.subr.bf16.mxu1 %v6350_v38  ;;  %7585 = vst [vmem:[#allocation94_spill] sm:$0xff] %v6405_v36  ;;  %7586 = vst [vmem:[#allocation95_spill] sm:$0xff] %v6408_v39 }
 0x65c   :  { %2631 = vmatmul.mubr.bf16.vlgmr.msra.gmra.mrb[72].mxu0 %v6345_v15  ;;  %2672 = vmatmul.mubr.bf16.vlgmr.msra.gmra.mrb[72].mxu1 %v6345_v15 }
 0x65d   :  { %2714 = vmatpush1.bf16.msra.mxu0 %v6355_v42  ;;  %2755 = vmatpush1.bf16.msra.mxu1 %v6358_v43 }
 0x65e   :  { %2715 = vmatprep.subr.bf16.mxu0 %v6361_v48  ;;  %2756 = vmatprep.subr.bf16.mxu1 %v6364_v49 }
 0x65f   :  { %2745 = vmatprep.mubr.bf16.mxu0 %v7311_v7  ;;  %2786 = vmatprep.mubr.bf16.mxu1 %v7311_v7 }
 0x661   :  { %2716 = vmatpush1.bf16.msra.mxu0 %v6369_v31  ;;  %2757 = vmatpush1.bf16.msra.mxu1 %v6372_v51 }
 0x662   :  { %2717 = vmatprep.subr.bf16.mxu0 %v6375_v52  ;;  %2758 = vmatprep.subr.bf16.mxu1 %v6378_v62 }
 0x665   :  { %2718 = vmatpush1.bf16.msra.mxu0 %v6381_v59  ;;  %2759 = vmatpush1.bf16.msra.mxu1 %v6384_v60 }
 0x666   :  { %2719 = vmatprep.subr.bf16.mxu0 %v6387_v63  ;;  %2760 = vmatprep.subr.bf16.mxu1 %v6390_v1 }
 0x669   :  { %2720 = vmatpush1.bf16.msra.mxu0 %v6393_v3  ;;  %2761 = vmatpush1.bf16.msra.mxu1 %v6396_v4 }
 0x66a   :  { %2721 = vmatprep.subr.bf16.mxu0 %v6399_v11  ;;  %2762 = vmatprep.subr.bf16.mxu1 %v6402_v12 }
 0x66d   :  { %2722 = vmatpush1.bf16.msra.mxu0 %v6405_v36  ;;  %2763 = vmatpush1.bf16.msra.mxu1 %v6408_v39 }
 0x66e   :  { %2723 = vmatprep.subr.bf16.mxu0 %v6411_v57  ;;  %2764 = vmatprep.subr.bf16.mxu1 %v6414_v45 }
 0x671   :  { %2724 = vmatpush1.bf16.msra.mxu0 %v6417_v22  ;;  %2765 = vmatpush1.bf16.msra.mxu1 %v6420_v13 }
 0x672   :  { %2725 = vmatprep.subr.bf16.mxu0 %v6423_v32  ;;  %2766 = vmatprep.subr.bf16.mxu1 %v6426_v20 }
 0x675   :  { %2726 = vmatpush1.bf16.msra.mxu0 %v6429_v55  ;;  %2767 = vmatpush1.bf16.msra.mxu1 %v6432_v41 }
 0x676   :  { %2727 = vmatprep.subr.bf16.mxu0 %v6435_v54  ;;  %2768 = vmatprep.subr.bf16.mxu1 %v6438_v2 }
 0x679   :  { %2728 = vmatpush1.bf16.msra.mxu0 %v6441_v23  ;;  %2769 = vmatpush1.bf16.msra.mxu1 %v6444_v30 }
 0x67a   :  { %2825 = vmatprep.subr.bf16.mxu0 %v7542_v26  ;;  %2866 = vmatprep.subr.bf16.mxu1 %v7543_v58  ;;  %v7600_v26 = vld [vmem:[#allocation56_spill] sm:$0xff]  ;;  %v7601_v58 = vld [vmem:[#allocation57_spill] sm:$0xff] }
 0x67c   :  { %2746 = vmatmul.mubr.bf16.vlgmr.msra.gmra.mrb[76].mxu0 %v6345_v15  ;;  %2787 = vmatmul.mubr.bf16.vlgmr.msra.gmra.mrb[76].mxu1 %v6345_v15  ;;  %v7625_v15 = vld [vmem:[#allocation88_spill] sm:$0xff] }
 0x67d   :  { %2826 = vmatpush1.bf16.msra.mxu0 %v7544_v34  ;;  %2867 = vmatpush1.bf16.msra.mxu1 %v7545_v17  ;;  %v7604_v34 = vld [vmem:[#allocation60_spill] sm:$0xff]  ;;  %v7605_v17 = vld [vmem:[#allocation61_spill] sm:$0xff] }
 0x67e   :  { %2827 = vmatprep.subr.bf16.mxu0 %v7546_v56  ;;  %2868 = vmatprep.subr.bf16.mxu1 %v7547_v46  ;;  %v7606_v56 = vld [vmem:[#allocation62_spill] sm:$0xff]  ;;  %v7607_v46 = vld [vmem:[#allocation63_spill] sm:$0xff] }
 0x67f   :  { %2857 = vmatprep.mubr.bf16.mxu0 %v7311_v7  ;;  %2898 = vmatprep.mubr.bf16.mxu1 %v7311_v7 }
 0x681   :  { %2828 = vmatpush1.bf16.msra.mxu0 %v7599_v27  ;;  %2869 = vmatpush1.bf16.msra.mxu1 %v7600_v26  ;;  %v7626_v27 = vld [vmem:[#allocation89_spill] sm:$0xff] }
 0x682   :  { %2829 = vmatprep.subr.bf16.mxu0 %v7601_v58  ;;  %2870 = vmatprep.subr.bf16.mxu1 %v7602_v18 }
 0x685   :  { %2830 = vmatpush1.bf16.msra.mxu0 %v7603_v47  ;;  %2871 = vmatpush1.bf16.msra.mxu1 %v7604_v34 }
 0x686   :  { %2831 = vmatprep.subr.bf16.mxu0 %v7605_v17  ;;  %2872 = vmatprep.subr.bf16.mxu1 %v7606_v56 }
 0x689   :  { %2832 = vmatpush1.bf16.msra.mxu0 %v7607_v46  ;;  %2873 = vmatpush1.bf16.msra.mxu1 %v7608_v40 }
 0x68a   :  { %2833 = vmatprep.subr.bf16.mxu0 %v7609_v33  ;;  %2874 = vmatprep.subr.bf16.mxu1 %v7610_v5 }
 0x68d   :  { %2834 = vmatpush1.bf16.msra.mxu0 %v7611_v19  ;;  %2875 = vmatpush1.bf16.msra.mxu1 %v7612_v0 }
 0x68e   :  { %2835 = vmatprep.subr.bf16.mxu0 %v7613_v29  ;;  %2876 = vmatprep.subr.bf16.mxu1 %v7614_v50 }
 0x691   :  { %2836 = vmatpush1.bf16.msra.mxu0 %v7615_v61  ;;  %2877 = vmatpush1.bf16.msra.mxu1 %v7616_v44 }
 0x692   :  { %2837 = vmatprep.subr.bf16.mxu0 %v7617_v16  ;;  %2878 = vmatprep.subr.bf16.mxu1 %v7618_v25 }
 0x695   :  { %2838 = vmatpush1.bf16.msra.mxu0 %v7619_v35  ;;  %2879 = vmatpush1.bf16.msra.mxu1 %v7620_v53 }
 0x696   :  { %2839 = vmatprep.subr.bf16.mxu0 %v7621_v24  ;;  %2880 = vmatprep.subr.bf16.mxu1 %v7622_v9 }
 0x699   :  { %2840 = vmatpush1.bf16.msra.mxu0 %v7623_v10  ;;  %2881 = vmatpush1.bf16.msra.mxu1 %v7624_v14  ;;  %v7627_v14 = vld [vmem:[#allocation25_spill] sm:$0xff] }
 0x69a   :  { %2907 = vmatprep.subr.bf16.mxu0 %v7625_v15  ;;  %2948 = vmatprep.subr.bf16.mxu1 %v7626_v27  ;;  %v7628_v27 = vld [vmem:[#allocation26_spill] sm:$0xff] }
 0x70f   :  { %v2550_v26 = vpop.f32.mrb[68].mxu0  ;;  %v2591_v58 = vpop.f32.mrb[68].mxu1 }
 0x710   :  { %v2552_v18 = vpop.f32.mrb[69].mxu0  ;;  %v2593_v47 = vpop.f32.mrb[69].mxu1 }
 0x711   :  { %v2554_v34 = vpop.f32.mrb[70].mxu0  ;;  %v2595_v17 = vpop.f32.mrb[70].mxu1 }
 0x712   :  { %v2555_v56 = vpop.f32.mrb[71].mxu0  ;;  %v2596_v46 = vpop.f32.mrb[71].mxu1 }
 0x72f   :  { %v2632_v40 = vpop.f32.mrb[72].mxu0  ;;  %v2673_v33 = vpop.f32.mrb[72].mxu1 }
 0x730   :  { %v2633_v5 = vadd.f32 %v2632_v40, %v2550_v26  ;;  %v2674_v19 = vadd.f32 %v2673_v33, %v2591_v58  ;;  %v2634_v0 = vpop.f32.mrb[73].mxu0  ;;  %v2675_v29 = vpop.f32.mrb[73].mxu1 }
 0x731   :  { %v2635_v50 = vadd.f32 %v2634_v0, %v2552_v18  ;;  %v2676_v61 = vadd.f32 %v2675_v29, %v2593_v47  ;;  %v2636_v44 = vpop.f32.mrb[74].mxu0  ;;  %v2677_v16 = vpop.f32.mrb[74].mxu1 }
 0x732   :  { %v2680_v25 = vadd.f32 %v2633_v5, %v5733_v6  ;;  %v2637_v35 = vpop.f32.mrb[75].mxu0  ;;  %v2678_v53 = vpop.f32.mrb[75].mxu1  ;;  %v2682_v15 = vadd.f32 %v2674_v19, %v7627_v14  ;;  %v7630_v16 = vld [vmem:[#allocation101_spill] sm:$0xff] }
 0x733   :  { %v2681_v24 = vadd.f32 %v2635_v50, %v5736_v28  ;;  %v2683_v26 = vadd.f32 %v2676_v61, %v7628_v27  ;;  %v7629_v61 = vld [vmem:[#allocation100_spill] sm:$0xff] }
 0x734   :  { %v4001_v9 = vmul.f32 -1.442695, %v2680_v25  ;;  %v4003_v58 = vmul.f32 -1.442695, %v2682_v15 }
 0x735   :  { %v4002_v10 = vmul.f32 -1.442695, %v2681_v24  ;;  %v7631_v24 = vld [vmem:[#allocation102_spill] sm:$0xff] }
 0x736   :  { %4417 = vpow2.f32 %v4001_v9 }
 0x737   :  { %4419 = vpow2.f32 %v4002_v10  ;;  %v7632_v10 = vld [vmem:[#allocation103_spill] sm:$0xff] }
 0x738   :  { %4421 = vtanh.f32 %v2683_v26 }
 0x739   :  { %4423 = vpow2.f32 %v4003_v58 }
 0x740   :  { %v4418_v34 = vpop.eup %4417 }
 0x741   :  { %v2693_v18 = vadd.f32 1.0, %v4418_v34  ;;  %v4420_v47 = vpop.eup %4419 }
 0x742   :  { %v2694_v17 = vadd.f32 1.0, %v4420_v47  ;;  %v4422_v56 = vpop.eup %4421 }
 0x743   :  { %4425 = vrcp.f32 %v2693_v18  ;;  %v4424_v46 = vpop.eup %4423 }
 0x744   :  { %4427 = vrcp.f32 %v2694_v17  ;;  %v2695_v0 = vadd.f32 1.0, %v4424_v46 }
 0x746   :  { %4429 = vrcp.f32 %v2695_v0  ;;  %v6497_v0 = vld [vmem:[#allocation11] ss:$16 sps:$4 sm:$0xff]  }
 0x74d   :  { %v4426_v40 = vpop.eup %4425 }
 0x74e   :  { %v2704_v33 = vmul.f32 %v4426_v40, %v4422_v56  ;;  %v4428_v5 = vpop.eup %4427 }
 0x74f   :  { %v2747_v29 = vpop.f32.mrb[76].mxu0  ;;  %v2788_v50 = vpop.f32.mrb[76].mxu1  ;;  %v2703_v19 = vmul.f32 %v4428_v5, %v6306_v21 }
 0x750   :  { %v2795_v44 = vadd.f32 %v2747_v29, %v7629_v61  ;;  %v2797_v25 = vadd.f32 %v2788_v50, %v7630_v16  ;;  %v2749_v35 = vpop.f32.mrb[77].mxu0  ;;  %v2790_v53 = vpop.f32.mrb[77].mxu1  ;;  %v6503_v16 = vld [vmem:[#allocation11 + $0x24] ss:$16 sps:$4 sm:$0xff]  }
 0x751   :  { %v2796_v9 = vadd.f32 %v2749_v35, %v7631_v24  ;;  %v2798_v15 = vadd.f32 %v2790_v53, %v7632_v10  ;;  %v2751_v26 = vpop.f32.mrb[78].mxu0  ;;  %v2792_v58 = vpop.f32.mrb[78].mxu1  ;;  %v6494_v34 = vadd.f32 %v2704_v33, %v2703_v19  ;;  %v6511_v35 = vld [vmem:[#allocation11 + $0x20] ss:$16 sps:$4 sm:$0xff]   ;;  %v6514_v53 = vld [vmem:[#allocation11 + $0x28] ss:$16 sps:$4 sm:$0xff]  }
 0x752   :  { %v4004_v18 = vmul.f32 -1.442695, %v2795_v44  ;;  %v2752_v47 = vpop.f32.mrb[79].mxu0  ;;  %v2793_v17 = vpop.f32.mrb[79].mxu1  ;;  %v4006_v46 = vmul.f32 -1.442695, %v2797_v25 }
 0x753   :  { %v4005_v56 = vmul.f32 -1.442695, %v2796_v9  ;;  %4431 = vtanh.f32 %v6494_v34  ;;  %v4430_v21 = vpop.eup %4429  ;;  %v6500_v44 = vld [vmem:[#allocation11 + $0x8] ss:$16 sps:$4 sm:$0xff]   ;;  %v6506_v25 = vld [vmem:[#allocation11 + $0x2c] ss:$16 sps:$4 sm:$0xff]  }
 0x754   :  { %4433 = vpow2.f32 %v4004_v18  ;;  %v6517_v24 = vld [vmem:[#allocation11 + $0x44] ss:$16 sps:$4 sm:$0xff]   ;;  %v6520_v9 = vld [vmem:[#allocation11 + $0x4c] ss:$16 sps:$4 sm:$0xff]   ;;  %v6523_v58 = vld [vmem:[#allocation11 + $0x40] ss:$16 sps:$4 sm:$0xff]  }
 0x755   :  { %4435 = vpow2.f32 %v4005_v56  ;;  %v6526_v18 = vld [vmem:[#allocation11 + $0x48] ss:$16 sps:$4 sm:$0xff]   ;;  %v6529_v17 = vld [vmem:[#allocation11 + $0x64] ss:$16 sps:$4 sm:$0xff]   ;;  %v6532_v56 = vld [vmem:[#allocation11 + $0x6c] ss:$16 sps:$4 sm:$0xff]  }
 0x756   :  { %4437 = vtanh.f32 %v2798_v15 }
 0x757   :  { %4439 = vpow2.f32 %v4006_v46 }
 0x75d   :  { %v4432_v40 = vpop.eup %4431 }
 0x75e   :  { %v4434_v5 = vpop.eup %4433  ;;  %v2707_v29 = vmul.f32 %v4432_v40, %v4430_v21 }
 0x75f   :  { %v2808_v50 = vadd.f32 1.0, %v4434_v5  ;;  %v4436_v61 = vpop.eup %4435  ;;  %v6536_v5 = vld [vmem:[#allocation11 + $0x60] ss:$16 sps:$4 sm:$0xff]  }
 0x760   :  { %v2824_v33 = vpack.c.bf16 %v2707_v29, %v2707_v29  ;;  %v2809_v19 = vadd.f32 1.0, %v4436_v61  ;;  %v4438_v10 = vpop.eup %4437  ;;  %v6539_v29 = vld [vmem:[#allocation11 + $0x68] ss:$16 sps:$4 sm:$0xff]   ;;  %v6544_v61 = vld [vmem:[#allocation11 + $0x84] ss:$16 sps:$4 sm:$0xff]  }
 0x761   :  { %4441 = vrcp.f32 %v2808_v50  ;;  %v4440_v15 = vpop.eup %4439 }
 0x762   :  { %2858 = vmatmul.mubr.bf16.vlgmr.msra.gmra.mrb[80].mxu0 %v2824_v33  ;;  %2899 = vmatmul.mubr.bf16.vlgmr.msra.gmra.mrb[80].mxu1 %v2824_v33  ;;  %4443 = vrcp.f32 %v2809_v19  ;;  %v2810_v46 = vadd.f32 1.0, %v4440_v15  ;;  %v6547_v33 = vld [vmem:[#allocation11 + $0x8c] ss:$16 sps:$4 sm:$0xff]   ;;  %v6554_v19 = vld [vmem:[#allocation11 + $0x88] ss:$16 sps:$4 sm:$0xff]  }
 0x763   :  { %2908 = vmatpush1.bf16.msra.mxu0 %v6497_v0  ;;  %2949 = vmatpush1.bf16.msra.mxu1 %v6500_v44  ;;  %7634 = vst [vmem:[#allocation40_spill] sm:$0xff] %v6554_v19  ;;  %v6560_v15 = vld [vmem:[#allocation11 + $0xac] ss:$16 sps:$4 sm:$0xff]  }
 0x764   :  { %2909 = vmatprep.subr.bf16.mxu0 %v6503_v16  ;;  %2950 = vmatprep.subr.bf16.mxu1 %v6506_v25  ;;  %4445 = vrcp.f32 %v2810_v46  ;;  %7636 = vst [vmem:[#allocation42_spill] sm:$0xff] %v6560_v15  ;;  %v6572_v46 = vld [vmem:[#allocation11 + $0xcc] ss:$16 sps:$4 sm:$0xff]  }
 0x765   :  { %2939 = vmatprep.mubr.bf16.mxu0 %v7311_v7  ;;  %2980 = vmatprep.mubr.bf16.mxu1 %v7311_v7  ;;  %7640 = vst [vmem:[#allocation46_spill] sm:$0xff] %v6572_v46 }
 0x767   :  { %2910 = vmatpush1.bf16.msra.mxu0 %v6511_v35  ;;  %2951 = vmatpush1.bf16.msra.mxu1 %v6514_v53 }
 0x768   :  { %2911 = vmatprep.subr.bf16.mxu0 %v6517_v24  ;;  %2952 = vmatprep.subr.bf16.mxu1 %v6520_v9 }
 0x76b   :  { %v4442_v26 = vpop.eup %4441  ;;  %2912 = vmatpush1.bf16.msra.mxu0 %v6523_v58  ;;  %2953 = vmatpush1.bf16.msra.mxu1 %v6526_v18 }
 0x76c   :  { %v2819_v47 = vmul.f32 %v4442_v26, %v4438_v10  ;;  %2913 = vmatprep.subr.bf16.mxu0 %v6529_v17  ;;  %2954 = vmatprep.subr.bf16.mxu1 %v6532_v56  ;;  %v4444_v21 = vpop.eup %4443  ;;  %v6557_v10 = vld [vmem:[#allocation11 + $0xa4] ss:$16 sps:$4 sm:$0xff]   ;;  %v6563_v26 = vld [vmem:[#allocation11 + $0xa0] ss:$16 sps:$4 sm:$0xff]  }
 0x76d   :  { %v2818_v40 = vmul.f32 %v4444_v21, %v6326_v8  ;;  %v6551_v8 = vld [vmem:[#allocation11 + $0x80] ss:$16 sps:$4 sm:$0xff]   ;;  %7635 = vst [vmem:[#allocation41_spill] sm:$0xff] %v6557_v10  ;;  %7637 = vst [vmem:[#allocation43_spill] sm:$0xff] %v6563_v26  ;;  %v6569_v21 = vld [vmem:[#allocation11 + $0xc4] ss:$16 sps:$4 sm:$0xff]  }
 0x76e   :  { %7633 = vst [vmem:[#allocation39_spill] sm:$0xff] %v6551_v8  ;;  %7639 = vst [vmem:[#allocation45_spill] sm:$0xff] %v6569_v21 }
 0x76f   :  { %2914 = vmatpush1.bf16.msra.mxu0 %v6536_v5  ;;  %2955 = vmatpush1.bf16.msra.mxu1 %v6539_v29  ;;  %v6542_v50 = vadd.f32 %v2819_v47, %v2818_v40  ;;  %v6566_v47 = vld [vmem:[#allocation11 + $0xa8] ss:$16 sps:$4 sm:$0xff]   ;;  %v4446_v40 = vpop.eup %4445 }
 0x770   :  { %2915 = vmatprep.subr.bf16.mxu0 %v6544_v61  ;;  %2956 = vmatprep.subr.bf16.mxu1 %v6547_v33  ;;  %7638 = vst [vmem:[#allocation44_spill] sm:$0xff] %v6566_v47 }
 0x771   :  { %4447 = vtanh.f32 %v6542_v50 }
 0x773   :  { %2916 = vmatpush1.bf16.msra.mxu0 %v6551_v8  ;;  %2957 = vmatpush1.bf16.msra.mxu1 %v6554_v19  ;;  %v6581_v19 = vld [vmem:[#allocation11 + $0xe4] ss:$16 sps:$4 sm:$0xff]   ;;  %v6590_v8 = vld [vmem:[#allocation11 + $0xe8] ss:$16 sps:$4 sm:$0xff]  }
 0x774   :  { %2917 = vmatprep.subr.bf16.mxu0 %v6557_v10  ;;  %2958 = vmatprep.subr.bf16.mxu1 %v6560_v15  ;;  %v6575_v10 = vld [vmem:[#allocation11 + $0xc0] ss:$16 sps:$4 sm:$0xff]   ;;  %v6578_v15 = vld [vmem:[#allocation11 + $0xc8] ss:$16 sps:$4 sm:$0xff]  }
 0x775   :  { %7641 = vst [vmem:[#allocation47_spill] sm:$0xff] %v6575_v10 }
 0x777   :  { %2918 = vmatpush1.bf16.msra.mxu0 %v6563_v26  ;;  %2959 = vmatpush1.bf16.msra.mxu1 %v6566_v47  ;;  %v6584_v47 = vld [vmem:[#allocation11 + $0xec] ss:$16 sps:$4 sm:$0xff]  }
 0x778   :  { %2919 = vmatprep.subr.bf16.mxu0 %v6569_v21  ;;  %2960 = vmatprep.subr.bf16.mxu1 %v6572_v46  ;;  %v6587_v46 = vld [vmem:[#allocation11 + $0xe0] ss:$16 sps:$4 sm:$0xff]  }
 0x77b   :  { %2920 = vmatpush1.bf16.msra.mxu0 %v6575_v10  ;;  %2961 = vmatpush1.bf16.msra.mxu1 %v6578_v15  ;;  %v4448_v26 = vpop.eup %4447 }
 0x77c   :  { %2921 = vmatprep.subr.bf16.mxu0 %v6581_v19  ;;  %2962 = vmatprep.subr.bf16.mxu1 %v6584_v47  ;;  %v2822_v21 = vmul.f32 %v4448_v26, %v4446_v40  ;;  %v6627_v26 = vld [vmem:[#allocation12 + $0x4] ss:$16 sps:$4 sm:$0xff]   ;;  %v6633_v40 = vld [vmem:[#allocation12] ss:$16 sps:$4 sm:$0xff]  }
 0x77d   :  { %7642 = vst [vmem:[#allocation48_spill] sm:$0xff] %v6627_v26  ;;  %7644 = vst [vmem:[#allocation50_spill] sm:$0xff] %v6633_v40 }
 0x77e   :  { %v2823_v10 = vpack.c.bf16 %v2822_v21, %v2822_v21  ;;  %v6630_v21 = vld [vmem:[#allocation12 + $0xc] ss:$16 sps:$4 sm:$0xff]  }
 0x77f   :  { %2922 = vmatpush1.bf16.msra.mxu0 %v6587_v46  ;;  %2963 = vmatpush1.bf16.msra.mxu1 %v6590_v8  ;;  %7643 = vst [vmem:[#allocation49_spill] sm:$0xff] %v6630_v21 }
 0x780   :  { %3022 = vmatprep.subr.bf16.mxu0 %v6347_v37  ;;  %3063 = vmatprep.subr.bf16.mxu1 %v6350_v38 }
 0x782   :  { %2940 = vmatmul.mubr.bf16.vlgmr.msra.gmra.mrb[84].mxu0 %v2823_v10  ;;  %2981 = vmatmul.mubr.bf16.vlgmr.msra.gmra.mrb[84].mxu1 %v2823_v10 }
 0x783   :  { %3023 = vmatpush1.bf16.msra.mxu0 %v6355_v42  ;;  %3064 = vmatpush1.bf16.msra.mxu1 %v6358_v43 }
 0x784   :  { %3024 = vmatprep.subr.bf16.mxu0 %v6361_v48  ;;  %3065 = vmatprep.subr.bf16.mxu1 %v6364_v49 }
 0x785   :  { %3054 = vmatprep.mubr.bf16.mxu0 %v7311_v7  ;;  %3095 = vmatprep.mubr.bf16.mxu1 %v7311_v7 }
 0x787   :  { %3025 = vmatpush1.bf16.msra.mxu0 %v6369_v31  ;;  %3066 = vmatpush1.bf16.msra.mxu1 %v6372_v51 }
 0x788   :  { %3026 = vmatprep.subr.bf16.mxu0 %v6375_v52  ;;  %3067 = vmatprep.subr.bf16.mxu1 %v6378_v62 }
 0x78b   :  { %3027 = vmatpush1.bf16.msra.mxu0 %v6381_v59  ;;  %3068 = vmatpush1.bf16.msra.mxu1 %v6384_v60 }
 0x78c   :  { %3028 = vmatprep.subr.bf16.mxu0 %v6387_v63  ;;  %3069 = vmatprep.subr.bf16.mxu1 %v6390_v1 }
 0x78f   :  { %3029 = vmatpush1.bf16.msra.mxu0 %v6393_v3  ;;  %3070 = vmatpush1.bf16.msra.mxu1 %v6396_v4 }
 0x790   :  { %3030 = vmatprep.subr.bf16.mxu0 %v6399_v11  ;;  %3071 = vmatprep.subr.bf16.mxu1 %v6402_v12 }
 0x793   :  { %3031 = vmatpush1.bf16.msra.mxu0 %v6405_v36  ;;  %3072 = vmatpush1.bf16.msra.mxu1 %v6408_v39 }
 0x794   :  { %3032 = vmatprep.subr.bf16.mxu0 %v6411_v57  ;;  %3073 = vmatprep.subr.bf16.mxu1 %v6414_v45 }
 0x797   :  { %3033 = vmatpush1.bf16.msra.mxu0 %v6417_v22  ;;  %3074 = vmatpush1.bf16.msra.mxu1 %v6420_v13 }
 0x798   :  { %3034 = vmatprep.subr.bf16.mxu0 %v6423_v32  ;;  %3075 = vmatprep.subr.bf16.mxu1 %v6426_v20 }
 0x79b   :  { %3035 = vmatpush1.bf16.msra.mxu0 %v6429_v55  ;;  %3076 = vmatpush1.bf16.msra.mxu1 %v6432_v41 }
 0x79c   :  { %3036 = vmatprep.subr.bf16.mxu0 %v6435_v54  ;;  %3077 = vmatprep.subr.bf16.mxu1 %v6438_v2  ;;  %v6636_v54 = vld [vmem:[#allocation12 + $0x8] ss:$16 sps:$4 sm:$0xff]  }
 0x79d   :  { %7645 = vst [vmem:[#allocation81_spill] sm:$0xff] %v6636_v54 }
 0x79f   :  { %3037 = vmatpush1.bf16.msra.mxu0 %v6441_v23  ;;  %3078 = vmatpush1.bf16.msra.mxu1 %v6444_v30  ;;  %v6639_v23 = vld [vmem:[#allocation12 + $0x24] ss:$16 sps:$4 sm:$0xff]   ;;  %v6642_v30 = vld [vmem:[#allocation12 + $0x2c] ss:$16 sps:$4 sm:$0xff]  }
 0x7a0   :  { %3134 = vmatprep.subr.bf16.mxu0 %v6627_v26  ;;  %3175 = vmatprep.subr.bf16.mxu1 %v6630_v21  ;;  %7646 = vst [vmem:[#allocation84_spill] sm:$0xff] %v6639_v23  ;;  %7647 = vst [vmem:[#allocation85_spill] sm:$0xff] %v6642_v30  ;;  %v6662_v21 = vld [vmem:[#allocation12 + $0x48] ss:$16 sps:$4 sm:$0xff]  }
 0x7a1   :  { %7653 = vst [vmem:[#allocation54_spill] sm:$0xff] %v6662_v21 }
 0x7a2   :  { %3055 = vmatmul.mubr.bf16.vlgmr.msra.gmra.mrb[88].mxu0 %v2823_v10  ;;  %3096 = vmatmul.mubr.bf16.vlgmr.msra.gmra.mrb[88].mxu1 %v2823_v10  ;;  %v6647_v10 = vld [vmem:[#allocation12 + $0x20] ss:$16 sps:$4 sm:$0xff]  }
 0x7a3   :  { %3135 = vmatpush1.bf16.msra.mxu0 %v6633_v40  ;;  %3176 = vmatpush1.bf16.msra.mxu1 %v6636_v54  ;;  %7648 = vst [vmem:[#allocation86_spill] sm:$0xff] %v6647_v10  ;;  %v6650_v40 = vld [vmem:[#allocation12 + $0x28] ss:$16 sps:$4 sm:$0xff]   ;;  %v6653_v54 = vld [vmem:[#allocation12 + $0x44] ss:$16 sps:$4 sm:$0xff]  }
 0x7a4   :  { %3136 = vmatprep.subr.bf16.mxu0 %v6639_v23  ;;  %3177 = vmatprep.subr.bf16.mxu1 %v6642_v30  ;;  %7649 = vst [vmem:[#allocation87_spill] sm:$0xff] %v6650_v40  ;;  %7650 = vst [vmem:[#allocation51_spill] sm:$0xff] %v6653_v54  ;;  %v6656_v23 = vld [vmem:[#allocation12 + $0x4c] ss:$16 sps:$4 sm:$0xff]   ;;  %v6659_v30 = vld [vmem:[#allocation12 + $0x40] ss:$16 sps:$4 sm:$0xff]  }
 0x7a5   :  { %3166 = vmatprep.mubr.bf16.mxu0 %v7311_v7  ;;  %3207 = vmatprep.mubr.bf16.mxu1 %v7311_v7  ;;  %7651 = vst [vmem:[#allocation52_spill] sm:$0xff] %v6656_v23  ;;  %7652 = vst [vmem:[#allocation53_spill] sm:$0xff] %v6659_v30 }
 0x7a7   :  { %3137 = vmatpush1.bf16.msra.mxu0 %v6647_v10  ;;  %3178 = vmatpush1.bf16.msra.mxu1 %v6650_v40  ;;  %v6665_v10 = vld [vmem:[#allocation12 + $0x64] ss:$16 sps:$4 sm:$0xff]   ;;  %v6668_v40 = vld [vmem:[#allocation12 + $0x6c] ss:$16 sps:$4 sm:$0xff]  }
 0x7a8   :  { %3138 = vmatprep.subr.bf16.mxu0 %v6653_v54  ;;  %3179 = vmatprep.subr.bf16.mxu1 %v6656_v23  ;;  %7654 = vst [vmem:[#allocation96_spill] sm:$0xff] %v6665_v10  ;;  %7655 = vst [vmem:[#allocation97_spill] sm:$0xff] %v6668_v40  ;;  %v6671_v54 = vld [vmem:[#allocation12 + $0x60] ss:$16 sps:$4 sm:$0xff]   ;;  %v6674_v23 = vld [vmem:[#allocation12 + $0x68] ss:$16 sps:$4 sm:$0xff]  }
 0x7a9   :  { %7656 = vst [vmem:[#allocation98_spill] sm:$0xff] %v6671_v54  ;;  %7657 = vst [vmem:[#allocation99_spill] sm:$0xff] %v6674_v23 }
 0x7ab   :  { %3139 = vmatpush1.bf16.msra.mxu0 %v6659_v30  ;;  %3180 = vmatpush1.bf16.msra.mxu1 %v6662_v21  ;;  %v6677_v30 = vld [vmem:[#allocation12 + $0x84] ss:$16 sps:$4 sm:$0xff]   ;;  %v6680_v21 = vld [vmem:[#allocation12 + $0x8c] ss:$16 sps:$4 sm:$0xff]  }
 0x7ac   :  { %3140 = vmatprep.subr.bf16.mxu0 %v6665_v10  ;;  %3181 = vmatprep.subr.bf16.mxu1 %v6668_v40  ;;  %7658 = vst [vmem:[#allocation55_spill] sm:$0xff] %v6677_v30  ;;  %7659 = vst [vmem:[#allocation56_spill] sm:$0xff] %v6680_v21  ;;  %v6683_v10 = vld [vmem:[#allocation12 + $0x80] ss:$16 sps:$4 sm:$0xff]   ;;  %v6686_v40 = vld [vmem:[#allocation12 + $0x88] ss:$16 sps:$4 sm:$0xff]  }
 0x7ad   :  { %7660 = vst [vmem:[#allocation57_spill] sm:$0xff] %v6683_v10  ;;  %7661 = vst [vmem:[#allocation58_spill] sm:$0xff] %v6686_v40 }
 0x7af   :  { %3141 = vmatpush1.bf16.msra.mxu0 %v6671_v54  ;;  %3182 = vmatpush1.bf16.msra.mxu1 %v6674_v23  ;;  %v6689_v54 = vld [vmem:[#allocation12 + $0xa4] ss:$16 sps:$4 sm:$0xff]   ;;  %v6692_v23 = vld [vmem:[#allocation12 + $0xac] ss:$16 sps:$4 sm:$0xff]  }
 0x7b0   :  { %3142 = vmatprep.subr.bf16.mxu0 %v6677_v30  ;;  %3183 = vmatprep.subr.bf16.mxu1 %v6680_v21  ;;  %7662 = vst [vmem:[#allocation59_spill] sm:$0xff] %v6689_v54  ;;  %7663 = vst [vmem:[#allocation60_spill] sm:$0xff] %v6692_v23  ;;  %v6695_v30 = vld [vmem:[#allocation12 + $0xa0] ss:$16 sps:$4 sm:$0xff]   ;;  %v6698_v21 = vld [vmem:[#allocation12 + $0xa8] ss:$16 sps:$4 sm:$0xff]  }
 0x7b1   :  { %7664 = vst [vmem:[#allocation61_spill] sm:$0xff] %v6695_v30  ;;  %7665 = vst [vmem:[#allocation62_spill] sm:$0xff] %v6698_v21 }
 0x7b3   :  { %3143 = vmatpush1.bf16.msra.mxu0 %v6683_v10  ;;  %3184 = vmatpush1.bf16.msra.mxu1 %v6686_v40  ;;  %v6701_v10 = vld [vmem:[#allocation12 + $0xc4] ss:$16 sps:$4 sm:$0xff]   ;;  %v6704_v40 = vld [vmem:[#allocation12 + $0xcc] ss:$16 sps:$4 sm:$0xff]  }
 0x7b4   :  { %3144 = vmatprep.subr.bf16.mxu0 %v6689_v54  ;;  %3185 = vmatprep.subr.bf16.mxu1 %v6692_v23  ;;  %7666 = vst [vmem:[#allocation63_spill] sm:$0xff] %v6701_v10  ;;  %7667 = vst [vmem:[#allocation64_spill] sm:$0xff] %v6704_v40  ;;  %v6707_v54 = vld [vmem:[#allocation12 + $0xc0] ss:$16 sps:$4 sm:$0xff]   ;;  %v6710_v23 = vld [vmem:[#allocation12 + $0xc8] ss:$16 sps:$4 sm:$0xff]  }
 0x7b5   :  { %7668 = vst [vmem:[#allocation65_spill] sm:$0xff] %v6707_v54  ;;  %7669 = vst [vmem:[#allocation66_spill] sm:$0xff] %v6710_v23 }
 0x7b7   :  { %3145 = vmatpush1.bf16.msra.mxu0 %v6695_v30  ;;  %3186 = vmatpush1.bf16.msra.mxu1 %v6698_v21  ;;  %v6713_v30 = vld [vmem:[#allocation12 + $0xe4] ss:$16 sps:$4 sm:$0xff]   ;;  %v6716_v21 = vld [vmem:[#allocation12 + $0xec] ss:$16 sps:$4 sm:$0xff]  }
 0x7b8   :  { %3146 = vmatprep.subr.bf16.mxu0 %v6701_v10  ;;  %3187 = vmatprep.subr.bf16.mxu1 %v6704_v40  ;;  %7670 = vst [vmem:[#allocation67_spill] sm:$0xff] %v6713_v30  ;;  %7671 = vst [vmem:[#allocation68_spill] sm:$0xff] %v6716_v21  ;;  %v6719_v10 = vld [vmem:[#allocation12 + $0xe0] ss:$16 sps:$4 sm:$0xff]   ;;  %v6722_v40 = vld [vmem:[#allocation12 + $0xe8] ss:$16 sps:$4 sm:$0xff]  }
 0x7b9   :  { %7672 = vst [vmem:[#allocation69_spill] sm:$0xff] %v6719_v10  ;;  %7673 = vst [vmem:[#allocation70_spill] sm:$0xff] %v6722_v40 }
 0x7bb   :  { %3147 = vmatpush1.bf16.msra.mxu0 %v6707_v54  ;;  %3188 = vmatpush1.bf16.msra.mxu1 %v6710_v23  ;;  %v6725_v54 = vld [vmem:[#allocation11 + $0x4] ss:$16 sps:$4 sm:$0xff]   ;;  %v6728_v23 = vld [vmem:[#allocation11 + $0xc] ss:$16 sps:$4 sm:$0xff]  }
 0x7bc   :  { %3148 = vmatprep.subr.bf16.mxu0 %v6713_v30  ;;  %3189 = vmatprep.subr.bf16.mxu1 %v6716_v21  ;;  %7674 = vst [vmem:[#allocation71_spill] sm:$0xff] %v6725_v54  ;;  %7675 = vst [vmem:[#allocation72_spill] sm:$0xff] %v6728_v23 }
 0x7bf   :  { %3149 = vmatpush1.bf16.msra.mxu0 %v6719_v10  ;;  %3190 = vmatpush1.bf16.msra.mxu1 %v6722_v40 }
 0x7c0   :  { %3216 = vmatprep.subr.bf16.mxu0 %v6725_v54  ;;  %3257 = vmatprep.subr.bf16.mxu1 %v6728_v23 }
 0x835   :  { %v2859_v30 = vpop.f32.mrb[80].mxu0  ;;  %v2900_v26 = vpop.f32.mrb[80].mxu1 }
 0x836   :  { %v2861_v2 = vpop.f32.mrb[81].mxu0  ;;  %v2902_v21 = vpop.f32.mrb[81].mxu1 }
 0x837   :  { %v2863_v41 = vpop.f32.mrb[82].mxu0  ;;  %v2904_v55 = vpop.f32.mrb[82].mxu1 }
 0x838   :  { %v2864_v20 = vpop.f32.mrb[83].mxu0  ;;  %v2905_v10 = vpop.f32.mrb[83].mxu1 }
 0x855   :  { %v2941_v32 = vpop.f32.mrb[84].mxu0  ;;  %v2982_v13 = vpop.f32.mrb[84].mxu1 }
 0x856   :  { %v2942_v22 = vadd.f32 %v2941_v32, %v2859_v30  ;;  %v2983_v40 = vadd.f32 %v2982_v13, %v2900_v26  ;;  %v2943_v45 = vpop.f32.mrb[85].mxu0  ;;  %v2984_v57 = vpop.f32.mrb[85].mxu1 }
 0x857   :  { %v2944_v39 = vadd.f32 %v2943_v45, %v2861_v2  ;;  %v2985_v54 = vadd.f32 %v2984_v57, %v2902_v21  ;;  %v2945_v36 = vpop.f32.mrb[86].mxu0  ;;  %v2986_v12 = vpop.f32.mrb[86].mxu1 }
 0x858   :  { %v2989_v23 = vadd.f32 %v2942_v22, %v5733_v6  ;;  %v2946_v11 = vpop.f32.mrb[87].mxu0  ;;  %v2987_v4 = vpop.f32.mrb[87].mxu1  ;;  %v2991_v20 = vadd.f32 %v2983_v40, %v7627_v14  ;;  %v7677_v40 = vld [vmem:[#allocation105_spill] sm:$0xff] }
 0x859   :  { %v2990_v3 = vadd.f32 %v2944_v39, %v5736_v28  ;;  %v2992_v13 = vadd.f32 %v2985_v54, %v7628_v27  ;;  %v7676_v54 = vld [vmem:[#allocation104_spill] sm:$0xff] }
 0x85a   :  { %v4007_v41 = vmul.f32 -1.442695, %v2989_v23  ;;  %v4009_v32 = vmul.f32 -1.442695, %v2991_v20  ;;  %v7678_v20 = vld [vmem:[#allocation106_spill] sm:$0xff] }
 0x85b   :  { %v4008_v55 = vmul.f32 -1.442695, %v2990_v3 }
 0x85c   :  { %4449 = vpow2.f32 %v4007_v41 }
 0x85d   :  { %4451 = vpow2.f32 %v4008_v55 }
 0x85e   :  { %4453 = vtanh.f32 %v2992_v13 }
 0x85f   :  { %4455 = vpow2.f32 %v4009_v32  ;;  %v7679_v32 = vld [vmem:[#allocation107_spill] sm:$0xff] }
 0x866   :  { %v4450_v30 = vpop.eup %4449 }
 0x867   :  { %v3002_v45 = vadd.f32 1.0, %v4450_v30  ;;  %v4452_v36 = vpop.eup %4451 }
 0x868   :  { %v3003_v12 = vadd.f32 1.0, %v4452_v36  ;;  %v4454_v4 = vpop.eup %4453 }
 0x869   :  { %4457 = vrcp.f32 %v3002_v45  ;;  %v4456_v11 = vpop.eup %4455 }
 0x86a   :  { %4459 = vrcp.f32 %v3003_v12  ;;  %v3004_v22 = vadd.f32 1.0, %v4456_v11 }
 0x86c   :  { %4461 = vrcp.f32 %v3004_v22 }
 0x873   :  { %v4458_v39 = vpop.eup %4457 }
 0x874   :  { %v3013_v57 = vmul.f32 %v4458_v39, %v4454_v4  ;;  %v4460_v3 = vpop.eup %4459 }
 0x875   :  { %v3056_v2 = vpop.f32.mrb[88].mxu0  ;;  %v3097_v23 = vpop.f32.mrb[88].mxu1  ;;  %v3012_v26 = vmul.f32 %v4460_v3, %v6494_v34 }
 0x876   :  { %v3104_v21 = vadd.f32 %v3056_v2, %v7676_v54  ;;  %v3106_v10 = vadd.f32 %v3097_v23, %v7677_v40  ;;  %v3058_v41 = vpop.f32.mrb[89].mxu0  ;;  %v3099_v55 = vpop.f32.mrb[89].mxu1 }
 0x877   :  { %v3105_v13 = vadd.f32 %v3058_v41, %v7678_v20  ;;  %v3107_v30 = vadd.f32 %v3099_v55, %v7679_v32  ;;  %v3060_v45 = vpop.f32.mrb[90].mxu0  ;;  %v3101_v36 = vpop.f32.mrb[90].mxu1  ;;  %v6740_v12 = vadd.f32 %v3013_v57, %v3012_v26 }
 0x878   :  { %v4010_v4 = vmul.f32 -1.442695, %v3104_v21  ;;  %v3061_v11 = vpop.f32.mrb[91].mxu0  ;;  %v3102_v39 = vpop.f32.mrb[91].mxu1  ;;  %v4012_v3 = vmul.f32 -1.442695, %v3106_v10 }
 0x879   :  { %v4011_v27 = vmul.f32 -1.442695, %v3105_v13  ;;  %4463 = vtanh.f32 %v6740_v12  ;;  %v4462_v34 = vpop.eup %4461  ;;  %v7681_v45 = vld [vmem:[#allocation40_spill] sm:$0xff]  ;;  %v7682_v36 = vld [vmem:[#allocation41_spill] sm:$0xff] }
 0x87a   :  { %4465 = vpow2.f32 %v4010_v4  ;;  %v7684_v4 = vld [vmem:[#allocation43_spill] sm:$0xff]  ;;  %v7685_v11 = vld [vmem:[#allocation44_spill] sm:$0xff]  ;;  %v7686_v39 = vld [vmem:[#allocation45_spill] sm:$0xff] }
 0x87b   :  { %4467 = vpow2.f32 %v4011_v27 }
 0x87c   :  { %4469 = vtanh.f32 %v3107_v30  ;;  %v7680_v30 = vld [vmem:[#allocation39_spill] sm:$0xff] }
 0x87d   :  { %4471 = vpow2.f32 %v4012_v3 }
 0x883   :  { %v4464_v2 = vpop.eup %4463 }
 0x884   :  { %v4466_v23 = vpop.eup %4465  ;;  %v3016_v54 = vmul.f32 %v4464_v2, %v4462_v34  ;;  %v7687_v34 = vld [vmem:[#allocation46_spill] sm:$0xff]  ;;  %v7688_v2 = vld [vmem:[#allocation47_spill] sm:$0xff] }
 0x885   :  { %v3117_v40 = vadd.f32 1.0, %v4466_v23  ;;  %v4468_v41 = vpop.eup %4467 }
 0x886   :  { %v3133_v57 = vpack.c.bf16 %v3016_v54, %v3016_v54  ;;  %v3118_v26 = vadd.f32 1.0, %v4468_v41  ;;  %v4470_v27 = vpop.eup %4469  ;;  %v7703_v41 = vld [vmem:[#allocation35_spill] sm:$0xff] }
 0x887   :  { %4473 = vrcp.f32 %v3117_v40  ;;  %v4472_v22 = vpop.eup %4471 }
 0x888   :  { %3167 = vmatmul.mubr.bf16.vlgmr.msra.gmra.mrb[92].mxu0 %v3133_v57  ;;  %3208 = vmatmul.mubr.bf16.vlgmr.msra.gmra.mrb[92].mxu1 %v3133_v57  ;;  %4475 = vrcp.f32 %v3118_v26  ;;  %v3119_v20 = vadd.f32 1.0, %v4472_v22  ;;  %v7704_v57 = vld [vmem:[#allocation36_spill] sm:$0xff]  ;;  %v7705_v26 = vld [vmem:[#allocation37_spill] sm:$0xff] }
 0x889   :  { %3217 = vmatpush1.bf16.msra.mxu0 %v6497_v0  ;;  %3258 = vmatpush1.bf16.msra.mxu1 %v6500_v44  ;;  %v7707_v22 = vld [vmem:[#allocation48_spill] sm:$0xff] }
 0x88a   :  { %3218 = vmatprep.subr.bf16.mxu0 %v6503_v16  ;;  %3259 = vmatprep.subr.bf16.mxu1 %v6506_v25  ;;  %4477 = vrcp.f32 %v3119_v20  ;;  %v7711_v20 = vld [vmem:[#allocation84_spill] sm:$0xff] }
 0x88b   :  { %3248 = vmatprep.mubr.bf16.mxu0 %v7311_v7  ;;  %3289 = vmatprep.mubr.bf16.mxu1 %v7311_v7 }
 0x88d   :  { %3219 = vmatpush1.bf16.msra.mxu0 %v6511_v35  ;;  %3260 = vmatpush1.bf16.msra.mxu1 %v6514_v53 }
 0x88e   :  { %3220 = vmatprep.subr.bf16.mxu0 %v6517_v24  ;;  %3261 = vmatprep.subr.bf16.mxu1 %v6520_v9 }
 0x891   :  { %v4474_v21 = vpop.eup %4473  ;;  %3221 = vmatpush1.bf16.msra.mxu0 %v6523_v58  ;;  %3262 = vmatpush1.bf16.msra.mxu1 %v6526_v18 }
 0x892   :  { %v3128_v10 = vmul.f32 %v4474_v21, %v4470_v27  ;;  %3222 = vmatprep.subr.bf16.mxu0 %v6529_v17  ;;  %3263 = vmatprep.subr.bf16.mxu1 %v6532_v56  ;;  %v4476_v55 = vpop.eup %4475  ;;  %v7706_v27 = vld [vmem:[#allocation38_spill] sm:$0xff]  ;;  %v7708_v21 = vld [vmem:[#allocation49_spill] sm:$0xff] }
 0x893   :  { %v3127_v13 = vmul.f32 %v4476_v55, %v6542_v50  ;;  %v7683_v50 = vld [vmem:[#allocation42_spill] sm:$0xff]  ;;  %v7710_v55 = vld [vmem:[#allocation81_spill] sm:$0xff] }
 0x894   :  { %v4478_v3 = vpop.eup %4477 }
 0x895   :  { %3223 = vmatpush1.bf16.msra.mxu0 %v6536_v5  ;;  %3264 = vmatpush1.bf16.msra.mxu1 %v6539_v29  ;;  %v6760_v32 = vadd.f32 %v3128_v10, %v3127_v13  ;;  %v7709_v10 = vld [vmem:[#allocation50_spill] sm:$0xff]  ;;  %v7712_v13 = vld [vmem:[#allocation85_spill] sm:$0xff] }
 0x896   :  { %3224 = vmatprep.subr.bf16.mxu0 %v6544_v61  ;;  %3265 = vmatprep.subr.bf16.mxu1 %v6547_v33 }
 0x897   :  { %4479 = vtanh.f32 %v6760_v32 }
 0x899   :  { %3225 = vmatpush1.bf16.msra.mxu0 %v7680_v30  ;;  %3266 = vmatpush1.bf16.msra.mxu1 %v7681_v45 }
 0x89a   :  { %3226 = vmatprep.subr.bf16.mxu0 %v7682_v36  ;;  %3267 = vmatprep.subr.bf16.mxu1 %v7683_v50 }
 0x89d   :  { %3227 = vmatpush1.bf16.msra.mxu0 %v7684_v4  ;;  %3268 = vmatpush1.bf16.msra.mxu1 %v7685_v11 }
 0x89e   :  { %3228 = vmatprep.subr.bf16.mxu0 %v7686_v39  ;;  %3269 = vmatprep.subr.bf16.mxu1 %v7687_v34 }
 0x8a1   :  { %3229 = vmatpush1.bf16.msra.mxu0 %v7688_v2  ;;  %3270 = vmatpush1.bf16.msra.mxu1 %v6578_v15  ;;  %v4480_v23 = vpop.eup %4479 }
 0x8a2   :  { %3230 = vmatprep.subr.bf16.mxu0 %v6581_v19  ;;  %3271 = vmatprep.subr.bf16.mxu1 %v6584_v47  ;;  %v3131_v54 = vmul.f32 %v4480_v23, %v4478_v3  ;;  %v7713_v3 = vld [vmem:[#allocation86_spill] sm:$0xff]  ;;  %v7714_v23 = vld [vmem:[#allocation87_spill] sm:$0xff] }
 0x8a4   :  { %v3132_v40 = vpack.c.bf16 %v3131_v54, %v3131_v54  ;;  %v7715_v54 = vld [vmem:[#allocation51_spill] sm:$0xff] }
 0x8a5   :  { %3231 = vmatpush1.bf16.msra.mxu0 %v6587_v46  ;;  %3272 = vmatpush1.bf16.msra.mxu1 %v6590_v8 }
 0x8a6   :  { %3331 = vmatprep.subr.bf16.mxu0 %v6347_v37  ;;  %3372 = vmatprep.subr.bf16.mxu1 %v6350_v38  ;;  %v7689_v37 = vld [vmem:[#allocation90_spill] sm:$0xff]  ;;  %v7690_v38 = vld [vmem:[#allocation91_spill] sm:$0xff] }
 0x8a8   :  { %3249 = vmatmul.mubr.bf16.vlgmr.msra.gmra.mrb[96].mxu0 %v3132_v40  ;;  %3290 = vmatmul.mubr.bf16.vlgmr.msra.gmra.mrb[96].mxu1 %v3132_v40 }
 0x8a9   :  { %3332 = vmatpush1.bf16.msra.mxu0 %v6355_v42  ;;  %3373 = vmatpush1.bf16.msra.mxu1 %v6358_v43  ;;  %v7691_v42 = vld [vmem:[#allocation92_spill] sm:$0xff]  ;;  %v7692_v43 = vld [vmem:[#allocation93_spill] sm:$0xff] }
 0x8aa   :  { %3333 = vmatprep.subr.bf16.mxu0 %v6361_v48  ;;  %3374 = vmatprep.subr.bf16.mxu1 %v6364_v49  ;;  %v7693_v48 = vld [vmem:[#allocation94_spill] sm:$0xff]  ;;  %v7694_v49 = vld [vmem:[#allocation95_spill] sm:$0xff] }
 0x8ab   :  { %3363 = vmatprep.mubr.bf16.mxu0 %v7311_v7  ;;  %3404 = vmatprep.mubr.bf16.mxu1 %v7311_v7 }
 0x8ad   :  { %3334 = vmatpush1.bf16.msra.mxu0 %v6369_v31  ;;  %3375 = vmatpush1.bf16.msra.mxu1 %v6372_v51  ;;  %v7695_v31 = vld [vmem:[#allocation27_spill] sm:$0xff]  ;;  %v7696_v51 = vld [vmem:[#allocation28_spill] sm:$0xff] }
 0x8ae   :  { %3335 = vmatprep.subr.bf16.mxu0 %v6375_v52  ;;  %3376 = vmatprep.subr.bf16.mxu1 %v6378_v62  ;;  %v7697_v52 = vld [vmem:[#allocation29_spill] sm:$0xff]  ;;  %v7698_v62 = vld [vmem:[#allocation30_spill] sm:$0xff] }
 0x8b1   :  { %3336 = vmatpush1.bf16.msra.mxu0 %v6381_v59  ;;  %3377 = vmatpush1.bf16.msra.mxu1 %v6384_v60  ;;  %v7699_v59 = vld [vmem:[#allocation31_spill] sm:$0xff]  ;;  %v7700_v60 = vld [vmem:[#allocation32_spill] sm:$0xff] }
 0x8b2   :  { %3337 = vmatprep.subr.bf16.mxu0 %v6387_v63  ;;  %3378 = vmatprep.subr.bf16.mxu1 %v6390_v1  ;;  %v7701_v63 = vld [vmem:[#allocation33_spill] sm:$0xff]  ;;  %v7702_v1 = vld [vmem:[#allocation34_spill] sm:$0xff] }
 0x8b5   :  { %3338 = vmatpush1.bf16.msra.mxu0 %v7689_v37  ;;  %3379 = vmatpush1.bf16.msra.mxu1 %v7690_v38  ;;  %v7716_v37 = vld [vmem:[#allocation52_spill] sm:$0xff]  ;;  %v7718_v38 = vld [vmem:[#allocation54_spill] sm:$0xff] }
 0x8b6   :  { %3339 = vmatprep.subr.bf16.mxu0 %v7691_v42  ;;  %3380 = vmatprep.subr.bf16.mxu1 %v7692_v43  ;;  %v7719_v42 = vld [vmem:[#allocation96_spill] sm:$0xff]  ;;  %v7720_v43 = vld [vmem:[#allocation97_spill] sm:$0xff] }
 0x8b9   :  { %3340 = vmatpush1.bf16.msra.mxu0 %v7693_v48  ;;  %3381 = vmatpush1.bf16.msra.mxu1 %v7694_v49  ;;  %v7721_v48 = vld [vmem:[#allocation98_spill] sm:$0xff]  ;;  %v7722_v49 = vld [vmem:[#allocation99_spill] sm:$0xff] }
 0x8ba   :  { %3341 = vmatprep.subr.bf16.mxu0 %v7695_v31  ;;  %3382 = vmatprep.subr.bf16.mxu1 %v7696_v51  ;;  %v7723_v31 = vld [vmem:[#allocation55_spill] sm:$0xff]  ;;  %v7724_v51 = vld [vmem:[#allocation56_spill] sm:$0xff] }
 0x8bd   :  { %3342 = vmatpush1.bf16.msra.mxu0 %v7697_v52  ;;  %3383 = vmatpush1.bf16.msra.mxu1 %v7698_v62  ;;  %v7725_v52 = vld [vmem:[#allocation57_spill] sm:$0xff]  ;;  %v7726_v62 = vld [vmem:[#allocation58_spill] sm:$0xff] }
 0x8be   :  { %3343 = vmatprep.subr.bf16.mxu0 %v7699_v59  ;;  %3384 = vmatprep.subr.bf16.mxu1 %v7700_v60  ;;  %v7727_v59 = vld [vmem:[#allocation59_spill] sm:$0xff]  ;;  %v7728_v60 = vld [vmem:[#allocation60_spill] sm:$0xff] }
 0x8c1   :  { %3344 = vmatpush1.bf16.msra.mxu0 %v7701_v63  ;;  %3385 = vmatpush1.bf16.msra.mxu1 %v7702_v1  ;;  %v7729_v63 = vld [vmem:[#allocation61_spill] sm:$0xff]  ;;  %v7730_v1 = vld [vmem:[#allocation62_spill] sm:$0xff] }
 0x8c2   :  { %3345 = vmatprep.subr.bf16.mxu0 %v7703_v41  ;;  %3386 = vmatprep.subr.bf16.mxu1 %v7704_v57  ;;  %v7731_v41 = vld [vmem:[#allocation63_spill] sm:$0xff]  ;;  %v7732_v57 = vld [vmem:[#allocation64_spill] sm:$0xff] }
 0x8c5   :  { %3346 = vmatpush1.bf16.msra.mxu0 %v7705_v26  ;;  %3387 = vmatpush1.bf16.msra.mxu1 %v7706_v27  ;;  %v7733_v26 = vld [vmem:[#allocation65_spill] sm:$0xff]  ;;  %v7734_v27 = vld [vmem:[#allocation66_spill] sm:$0xff] }
 0x8c6   :  { %3443 = vmatprep.subr.bf16.mxu0 %v7707_v22  ;;  %3484 = vmatprep.subr.bf16.mxu1 %v7708_v21  ;;  %v7735_v22 = vld [vmem:[#allocation67_spill] sm:$0xff]  ;;  %v7736_v21 = vld [vmem:[#allocation68_spill] sm:$0xff] }
 0x8c8   :  { %3364 = vmatmul.mubr.bf16.vlgmr.msra.gmra.mrb[100].mxu0 %v3132_v40  ;;  %3405 = vmatmul.mubr.bf16.vlgmr.msra.gmra.mrb[100].mxu1 %v3132_v40  ;;  %v7717_v40 = vld [vmem:[#allocation53_spill] sm:$0xff] }
 0x8c9   :  { %3444 = vmatpush1.bf16.msra.mxu0 %v7709_v10  ;;  %3485 = vmatpush1.bf16.msra.mxu1 %v7710_v55  ;;  %v7737_v10 = vld [vmem:[#allocation69_spill] sm:$0xff]  ;;  %v7738_v55 = vld [vmem:[#allocation70_spill] sm:$0xff] }
 0x8ca   :  { %3445 = vmatprep.subr.bf16.mxu0 %v7711_v20  ;;  %3486 = vmatprep.subr.bf16.mxu1 %v7712_v13  ;;  %v7739_v20 = vld [vmem:[#allocation71_spill] sm:$0xff]  ;;  %v7740_v13 = vld [vmem:[#allocation72_spill] sm:$0xff] }
 0x8cb   :  { %3475 = vmatprep.mubr.bf16.mxu0 %v7311_v7  ;;  %3516 = vmatprep.mubr.bf16.mxu1 %v7311_v7 }
 0x8cd   :  { %3446 = vmatpush1.bf16.msra.mxu0 %v7713_v3  ;;  %3487 = vmatpush1.bf16.msra.mxu1 %v7714_v23 }
 0x8ce   :  { %3447 = vmatprep.subr.bf16.mxu0 %v7715_v54  ;;  %3488 = vmatprep.subr.bf16.mxu1 %v7716_v37 }
 0x8d1   :  { %3448 = vmatpush1.bf16.msra.mxu0 %v7717_v40  ;;  %3489 = vmatpush1.bf16.msra.mxu1 %v7718_v38 }
 0x8d2   :  { %3449 = vmatprep.subr.bf16.mxu0 %v7719_v42  ;;  %3490 = vmatprep.subr.bf16.mxu1 %v7720_v43 }
 0x8d5   :  { %3450 = vmatpush1.bf16.msra.mxu0 %v7721_v48  ;;  %3491 = vmatpush1.bf16.msra.mxu1 %v7722_v49 }
 0x8d6   :  { %3451 = vmatprep.subr.bf16.mxu0 %v7723_v31  ;;  %3492 = vmatprep.subr.bf16.mxu1 %v7724_v51 }
 0x8d9   :  { %3452 = vmatpush1.bf16.msra.mxu0 %v7725_v52  ;;  %3493 = vmatpush1.bf16.msra.mxu1 %v7726_v62 }
 0x8da   :  { %3453 = vmatprep.subr.bf16.mxu0 %v7727_v59  ;;  %3494 = vmatprep.subr.bf16.mxu1 %v7728_v60 }
 0x8dd   :  { %3454 = vmatpush1.bf16.msra.mxu0 %v7729_v63  ;;  %3495 = vmatpush1.bf16.msra.mxu1 %v7730_v1 }
 0x8de   :  { %3455 = vmatprep.subr.bf16.mxu0 %v7731_v41  ;;  %3496 = vmatprep.subr.bf16.mxu1 %v7732_v57 }
 0x8e1   :  { %3456 = vmatpush1.bf16.msra.mxu0 %v7733_v26  ;;  %3497 = vmatpush1.bf16.msra.mxu1 %v7734_v27 }
 0x8e2   :  { %3457 = vmatprep.subr.bf16.mxu0 %v7735_v22  ;;  %3498 = vmatprep.subr.bf16.mxu1 %v7736_v21 }
 0x8e5   :  { %3458 = vmatpush1.bf16.msra.mxu0 %v7737_v10  ;;  %3499 = vmatpush1.bf16.msra.mxu1 %v7738_v55  ;;  %v7741_v55 = vld [vmem:[#allocation26_spill] sm:$0xff] }
 0x8e6   :  { %3525 = vmatprep.subr.bf16.mxu0 %v7739_v20  ;;  %3566 = vmatprep.subr.bf16.mxu1 %v7740_v13 }
 0x95b   :  { %v3168_v3 = vpop.f32.mrb[92].mxu0  ;;  %v3209_v23 = vpop.f32.mrb[92].mxu1 }
 0x95c   :  { %v3170_v54 = vpop.f32.mrb[93].mxu0  ;;  %v3211_v37 = vpop.f32.mrb[93].mxu1 }
 0x95d   :  { %v3172_v40 = vpop.f32.mrb[94].mxu0  ;;  %v3213_v38 = vpop.f32.mrb[94].mxu1 }
 0x95e   :  { %v3173_v42 = vpop.f32.mrb[95].mxu0  ;;  %v3214_v43 = vpop.f32.mrb[95].mxu1 }
 0x97b   :  { %v3250_v48 = vpop.f32.mrb[96].mxu0  ;;  %v3291_v49 = vpop.f32.mrb[96].mxu1 }
 0x97c   :  { %v3251_v31 = vadd.f32 %v3250_v48, %v3168_v3  ;;  %v3292_v51 = vadd.f32 %v3291_v49, %v3209_v23  ;;  %v3252_v52 = vpop.f32.mrb[97].mxu0  ;;  %v3293_v62 = vpop.f32.mrb[97].mxu1 }
 0x97d   :  { %v3253_v59 = vadd.f32 %v3252_v52, %v3170_v54  ;;  %v3294_v60 = vadd.f32 %v3293_v62, %v3211_v37  ;;  %v3254_v63 = vpop.f32.mrb[98].mxu0  ;;  %v3295_v1 = vpop.f32.mrb[98].mxu1  ;;  %v7742_v62 = vld [vmem:[#allocation108_spill] sm:$0xff] }
 0x97e   :  { %v3298_v41 = vadd.f32 %v3251_v31, %v5733_v6  ;;  %v3255_v57 = vpop.f32.mrb[99].mxu0  ;;  %v3296_v26 = vpop.f32.mrb[99].mxu1  ;;  %v3300_v10 = vadd.f32 %v3292_v51, %v7627_v14 }
 0x97f   :  { %v3299_v27 = vadd.f32 %v3253_v59, %v5736_v28  ;;  %v3301_v20 = vadd.f32 %v3294_v60, %v7741_v55  ;;  %v7743_v60 = vld [vmem:[#allocation109_spill] sm:$0xff]  ;;  %v7744_v57 = vld [vmem:[#allocation110_spill] sm:$0xff] }
 0x980   :  { %v4013_v22 = vmul.f32 -1.442695, %v3298_v41  ;;  %v4015_v13 = vmul.f32 -1.442695, %v3300_v10 }
 0x981   :  { %v4014_v21 = vmul.f32 -1.442695, %v3299_v27  ;;  %v7745_v27 = vld [vmem:[#allocation111_spill] sm:$0xff] }
 0x982   :  { %4481 = vpow2.f32 %v4013_v22 }
 0x983   :  { %4483 = vpow2.f32 %v4014_v21 }
 0x984   :  { %4485 = vtanh.f32 %v3301_v20 }
 0x985   :  { %4487 = vpow2.f32 %v4015_v13 }
 0x98c   :  { %v4482_v3 = vpop.eup %4481 }
 0x98d   :  { %v3311_v23 = vadd.f32 1.0, %v4482_v3  ;;  %v4484_v54 = vpop.eup %4483 }
 0x98e   :  { %v3312_v37 = vadd.f32 1.0, %v4484_v54  ;;  %v4486_v40 = vpop.eup %4485 }
 0x98f   :  { %4489 = vrcp.f32 %v3311_v23  ;;  %v4488_v38 = vpop.eup %4487 }
 0x990   :  { %4491 = vrcp.f32 %v3312_v37  ;;  %v3313_v49 = vadd.f32 1.0, %v4488_v38 }
 0x992   :  { %4493 = vrcp.f32 %v3313_v49 }
 0x999   :  { %v4490_v42 = vpop.eup %4489 }
 0x99a   :  { %v3322_v43 = vmul.f32 %v4490_v42, %v4486_v40  ;;  %v4492_v48 = vpop.eup %4491 }
 0x99b   :  { %v3365_v31 = vpop.f32.mrb[100].mxu0  ;;  %v3406_v52 = vpop.f32.mrb[100].mxu1  ;;  %v3321_v51 = vmul.f32 %v4492_v48, %v6740_v12 }
 0x99c   :  { %v3413_v59 = vadd.f32 %v3365_v31, %v7742_v62  ;;  %v3415_v63 = vadd.f32 %v3406_v52, %v7743_v60  ;;  %v3367_v1 = vpop.f32.mrb[101].mxu0  ;;  %v3408_v41 = vpop.f32.mrb[101].mxu1 }
 0x99d   :  { %v3414_v26 = vadd.f32 %v3367_v1, %v7744_v57  ;;  %v3416_v22 = vadd.f32 %v3408_v41, %v7745_v27  ;;  %v3369_v21 = vpop.f32.mrb[102].mxu0  ;;  %v3410_v10 = vpop.f32.mrb[102].mxu1  ;;  %v6858_v20 = vadd.f32 %v3322_v43, %v3321_v51 }
 0x99e   :  { %v4016_v13 = vmul.f32 -1.442695, %v3413_v59  ;;  %v3370_v3 = vpop.f32.mrb[103].mxu0  ;;  %v3411_v23 = vpop.f32.mrb[103].mxu1  ;;  %v4018_v37 = vmul.f32 -1.442695, %v3415_v63 }
 0x99f   :  { %v4017_v54 = vmul.f32 -1.442695, %v3414_v26  ;;  %4495 = vtanh.f32 %v6858_v20  ;;  %v4494_v12 = vpop.eup %4493 }
 0x9a0   :  { %4497 = vpow2.f32 %v4016_v13 }
 0x9a1   :  { %4499 = vpow2.f32 %v4017_v54 }
 0x9a2   :  { %4501 = vtanh.f32 %v3416_v22 }
 0x9a3   :  { %4503 = vpow2.f32 %v4018_v37 }
 0x9a9   :  { %v4496_v40 = vpop.eup %4495 }
 0x9aa   :  { %v4498_v38 = vpop.eup %4497  ;;  %v3325_v42 = vmul.f32 %v4496_v40, %v4494_v12 }
 0x9ab   :  { %v3426_v48 = vadd.f32 1.0, %v4498_v38  ;;  %v4500_v31 = vpop.eup %4499 }
 0x9ac   :  { %v3442_v43 = vpack.c.bf16 %v3325_v42, %v3325_v42  ;;  %v3427_v52 = vadd.f32 1.0, %v4500_v31  ;;  %v4502_v49 = vpop.eup %4501 }
 0x9ad   :  { %4505 = vrcp.f32 %v3426_v48 }
 0x9ae   :  { %3476 = vmatmul.mubr.bf16.vlgmr.msra.gmra.mrb[104].mxu0 %v3442_v43  ;;  %3517 = vmatmul.mubr.bf16.vlgmr.msra.gmra.mrb[104].mxu1 %v3442_v43  ;;  %4507 = vrcp.f32 %v3427_v52 }
 0x9af   :  { %3526 = vmatpush1.bf16.msra.mxu0 %v6497_v0  ;;  %3567 = vmatpush1.bf16.msra.mxu1 %v6500_v44  ;;  %v4504_v0 = vpop.eup %4503 }
 0x9b0   :  { %3527 = vmatprep.subr.bf16.mxu0 %v6503_v16  ;;  %3568 = vmatprep.subr.bf16.mxu1 %v6506_v25  ;;  %v3428_v25 = vadd.f32 1.0, %v4504_v0 }
 0x9b1   :  { %3557 = vmatprep.mubr.bf16.mxu0 %v7311_v7  ;;  %3598 = vmatprep.mubr.bf16.mxu1 %v7311_v7 }
 0x9b2   :  { %4509 = vrcp.f32 %v3428_v25 }
 0x9b3   :  { %3528 = vmatpush1.bf16.msra.mxu0 %v6511_v35  ;;  %3569 = vmatpush1.bf16.msra.mxu1 %v6514_v53 }
 0x9b4   :  { %3529 = vmatprep.subr.bf16.mxu0 %v6517_v24  ;;  %3570 = vmatprep.subr.bf16.mxu1 %v6520_v9 }
 0x9b7   :  { %v4506_v51 = vpop.eup %4505  ;;  %3530 = vmatpush1.bf16.msra.mxu0 %v6523_v58  ;;  %3571 = vmatpush1.bf16.msra.mxu1 %v6526_v18 }
 0x9b8   :  { %v3437_v44 = vmul.f32 %v4506_v51, %v4502_v49  ;;  %3531 = vmatprep.subr.bf16.mxu0 %v6529_v17  ;;  %3572 = vmatprep.subr.bf16.mxu1 %v6532_v56  ;;  %v4508_v16 = vpop.eup %4507  ;;  %v4251_v17 = vld [vmem:[%s7004_s9 + $0x4] ss:$8 sps:$4 sm:$0xff]   ;;  %v4249_v56 = vld [vmem:[%s7004_s9] ss:$8 sps:$4 sm:$0xff]  }
 0x9b9   :  { %v3436_v35 = vmul.f32 %v4508_v16, %v6760_v32  ;;  %v4269_v32 = vld [vmem:[%s7004_s9 + $0x64] ss:$8 sps:$4 sm:$0xff]  }
 0x9bb   :  { %3532 = vmatpush1.bf16.msra.mxu0 %v6536_v5  ;;  %3573 = vmatpush1.bf16.msra.mxu1 %v6539_v29  ;;  %v3438_v53 = vadd.f32 %v3437_v44, %v3436_v35  ;;  %v4254_v5 = vld [vmem:[%s7004_s9 + $0x14] ss:$8 sps:$4 sm:$0xff]   ;;  %v4252_v29 = vld [vmem:[%s7004_s9 + $0x10] ss:$8 sps:$4 sm:$0xff]  }
 0x9bc   :  { %3533 = vmatprep.subr.bf16.mxu0 %v6544_v61  ;;  %3574 = vmatprep.subr.bf16.mxu1 %v6547_v33  ;;  %v4510_v24 = vpop.eup %4509  ;;  %v4255_v61 = vld [vmem:[%s7004_s9 + $0x20] ss:$8 sps:$4 sm:$0xff]   ;;  %v4260_v33 = vld [vmem:[%s7004_s9 + $0x34] ss:$8 sps:$4 sm:$0xff]  }
 0x9bd   :  { %4511 = vtanh.f32 %v3438_v53  ;;  %3790 = vst [vmem:[#allocation18] sm:$0xff] %v3438_v53 }
 0x9bf   :  { %3534 = vmatpush1.bf16.msra.mxu0 %v7680_v30  ;;  %3575 = vmatpush1.bf16.msra.mxu1 %v7681_v45  ;;  %v4267_v30 = vld [vmem:[%s7004_s9 + $0x60] ss:$8 sps:$4 sm:$0xff]   ;;  %v4272_v45 = vld [vmem:[%s7004_s9 + $0x74] ss:$8 sps:$4 sm:$0xff]  }
 0x9c0   :  { %3535 = vmatprep.subr.bf16.mxu0 %v7682_v36  ;;  %3576 = vmatprep.subr.bf16.mxu1 %v7683_v50  ;;  %v4270_v36 = vld [vmem:[%s7004_s9 + $0x70] ss:$8 sps:$4 sm:$0xff]  }
 0x9c3   :  { %3536 = vmatpush1.bf16.msra.mxu0 %v7684_v4  ;;  %3577 = vmatpush1.bf16.msra.mxu1 %v7685_v11 }
 0x9c4   :  { %3537 = vmatprep.subr.bf16.mxu0 %v7686_v39  ;;  %3578 = vmatprep.subr.bf16.mxu1 %v7687_v34 }
 0x9c7   :  { %3538 = vmatpush1.bf16.msra.mxu0 %v7688_v2  ;;  %3579 = vmatpush1.bf16.msra.mxu1 %v6578_v15  ;;  %v4512_v9 = vpop.eup %4511  ;;  %v4261_v15 = vld [vmem:[%s7004_s9 + $0x40] ss:$8 sps:$4 sm:$0xff]  }
 0x9c8   :  { %3539 = vmatprep.subr.bf16.mxu0 %v6581_v19  ;;  %3580 = vmatprep.subr.bf16.mxu1 %v6584_v47  ;;  %v3440_v58 = vmul.f32 %v4512_v9, %v4510_v24  ;;  %v4263_v19 = vld [vmem:[%s7004_s9 + $0x44] ss:$8 sps:$4 sm:$0xff]   ;;  %v4264_v47 = vld [vmem:[%s7004_s9 + $0x50] ss:$8 sps:$4 sm:$0xff]  }
 0x9ca   :  { %v3441_v18 = vpack.c.bf16 %v3440_v58, %v3440_v58  ;;  %3787 = vst [vmem:[#allocation16] sm:$0xff] %v3440_v58 }
 0x9cb   :  { %3540 = vmatpush1.bf16.msra.mxu0 %v6587_v46  ;;  %3581 = vmatpush1.bf16.msra.mxu1 %v6590_v8  ;;  %v4258_v8 = vld [vmem:[%s7004_s9 + $0x30] ss:$8 sps:$4 sm:$0xff]   ;;  %v4266_v46 = vld [vmem:[%s7004_s9 + $0x54] ss:$8 sps:$4 sm:$0xff]  }
 0x9cc   :  { %3744 = vmatprep.subr.bf16.mxu0 %v4251_v17 }
 0x9ce   :  { %3558 = vmatmul.mubr.bf16.vlgmr.msra.gmra.mrb[108].mxu0 %v3441_v18  ;;  %3599 = vmatmul.mubr.bf16.vlgmr.msra.gmra.mrb[108].mxu1 %v3441_v18 }
 0x9cf   :  { %3776 = vmatprep.mubr.bf16.mxu0 %v7311_v7  ;;  %3745 = vmatpush1.bf16.msra.mxu0 %v4249_v56  ;;  %v4257_v7 = vld [vmem:[%s7004_s9 + $0x24] ss:$8 sps:$4 sm:$0xff]   ;;  %s4965_s9 = smov [#allocation16]  }
 0x9d0   :  { %3746 = vmatprep.subr.bf16.mxu0 %v4254_v5  ;;  %s3808_s24 = sshll.u32 %s4965_s9, 4  ;;  %s3809_s24 = int_to_ptr.vmem [resolvable:$true] %s3808_s24 }
 0x9d1   :  { %s4875_s25 = scalar_lea.vmem %s3809_s24, 256  ;;  %p4880_p1 = scmp.lt.s32.totalorder %s3809_s24, %s3809_s24 }
 0x9d2   :  { %p4876_p0 = scmp.ne.s32.totalorder %s3809_s24, %s4875_s25  ;;  %p4881_p2 = scmp.lt.s32.totalorder %s4875_s25, %s4875_s25 }
 0x9d3   :  { %3747 = vmatpush1.bf16.msra.mxu0 %v4252_v29 }
 0x9d4   :  { %3748 = vmatprep.subr.bf16.mxu0 %v4257_v7  ;;  %p4882_p3 = por %p4881_p2, %p4880_p1 }
 0x9d6   :  { %p4883_p4 = pnand %p4882_p3, %p4876_p0 }
 0x9d7   :  { %3749 = vmatpush1.bf16.msra.mxu0 %v4255_v61 }
 0x9d8   :  { %3750 = vmatprep.subr.bf16.mxu0 %v4260_v33 }
 0x9db   :  { %3751 = vmatpush1.bf16.msra.mxu0 %v4258_v8 }
 0x9dc   :  { %3752 = vmatprep.subr.bf16.mxu0 %v4263_v19 }
 0x9df   :  { %3753 = vmatpush1.bf16.msra.mxu0 %v4261_v15 }
 0x9e0   :  { %3754 = vmatprep.subr.bf16.mxu0 %v4266_v46 }
 0x9e3   :  { %3755 = vmatpush1.bf16.msra.mxu0 %v4264_v47 }
 0x9e4   :  { %3756 = vmatprep.subr.bf16.mxu0 %v4269_v32 }
 0x9e7   :  { %3757 = vmatpush1.bf16.msra.mxu0 %v4267_v30 }
 0x9e8   :  { %3758 = vmatprep.subr.bf16.mxu0 %v4272_v45 }
 0x9eb   :  { %3759 = vmatpush1.bf16.msra.mxu0 %v4270_v36 }
 0xa81   :  { %v3477_v50 = vpop.f32.mrb[104].mxu0  ;;  %v3518_v4 = vpop.f32.mrb[104].mxu1 }
 0xa82   :  { %v3479_v11 = vpop.f32.mrb[105].mxu0  ;;  %v3520_v39 = vpop.f32.mrb[105].mxu1 }
 0xa83   :  { %v3481_v34 = vpop.f32.mrb[106].mxu0  ;;  %v3522_v2 = vpop.f32.mrb[106].mxu1 }
 0xa84   :  { %v3482_v62 = vpop.f32.mrb[107].mxu0  ;;  %v3523_v59 = vpop.f32.mrb[107].mxu1 }
 0xaa1   :  { %v3559_v60 = vpop.f32.mrb[108].mxu0  ;;  %v3600_v63 = vpop.f32.mrb[108].mxu1 }
 0xaa2   :  { %v3560_v1 = vadd.f32 %v3559_v60, %v3477_v50  ;;  %v3601_v41 = vadd.f32 %v3600_v63, %v3518_v4  ;;  %v3561_v57 = vpop.f32.mrb[109].mxu0  ;;  %v3602_v26 = vpop.f32.mrb[109].mxu1 }
 0xaa3   :  { %v3562_v27 = vadd.f32 %v3561_v57, %v3479_v11  ;;  %v3603_v22 = vadd.f32 %v3602_v26, %v3520_v39  ;;  %v3563_v21 = vpop.f32.mrb[110].mxu0  ;;  %v3604_v10 = vpop.f32.mrb[110].mxu1 }
 0xaa4   :  { %v3607_v13 = vadd.f32 %v3560_v1, %v5733_v6  ;;  %v3564_v3 = vpop.f32.mrb[111].mxu0  ;;  %v3605_v23 = vpop.f32.mrb[111].mxu1  ;;  %v3609_v40 = vadd.f32 %v3601_v41, %v7627_v14 }
 0xaa5   :  { %v3608_v54 = vadd.f32 %v3562_v27, %v5736_v28  ;;  %v3610_v38 = vadd.f32 %v3603_v22, %v7741_v55 }
 0xaa6   :  { %v4019_v12 = vmul.f32 -1.442695, %v3607_v13  ;;  %v4021_v42 = vmul.f32 -1.442695, %v3609_v40 }
 0xaa7   :  { %v4020_v37 = vmul.f32 -1.442695, %v3608_v54 }
 0xaa8   :  { %4513 = vpow2.f32 %v4019_v12 }
 0xaa9   :  { %4515 = vpow2.f32 %v4020_v37 }
 0xaaa   :  { %4517 = vtanh.f32 %v3610_v38 }
 0xaab   :  { %4519 = vpow2.f32 %v4021_v42 }
 0xab2   :  { %v4514_v48 = vpop.eup %4513 }
 0xab3   :  { %v3620_v31 = vadd.f32 1.0, %v4514_v48  ;;  %v4516_v43 = vpop.eup %4515 }
 0xab4   :  { %v3621_v6 = vadd.f32 1.0, %v4516_v43  ;;  %v4518_v52 = vpop.eup %4517 }
 0xab5   :  { %4521 = vrcp.f32 %v3620_v31  ;;  %v4520_v49 = vpop.eup %4519 }
 0xab6   :  { %4523 = vrcp.f32 %v3621_v6  ;;  %v3622_v44 = vadd.f32 1.0, %v4520_v49 }
 0xab8   :  { %4525 = vrcp.f32 %v3622_v44 }
 0xabf   :  { %v4522_v28 = vpop.eup %4521 }
 0xac0   :  { %v3631_v0 = vmul.f32 %v4522_v28, %v4518_v52  ;;  %v4524_v51 = vpop.eup %4523 }
 0xac1   :  { %v3630_v16 = vmul.f32 %v4524_v51, %v6858_v20 }
 0xac2   :  { %v4526_v55 = vpop.eup %4525 }
 0xac3   :  { %v3632_v14 = vadd.f32 %v3631_v0, %v3630_v16 }
 0xac5   :  { %4527 = vtanh.f32 %v3632_v14  ;;  %3792 = vst [vmem:[#allocation18 + $0x8] sm:$0xff] %v3632_v14 }
 0xacf   :  { %v4528_v25 = vpop.eup %4527 }
 0xad0   :  { %v3634_v35 = vmul.f32 %v4528_v25, %v4526_v55 }
 0xad2   :  { %v3635_v53 = vpack.c.bf16 %v3634_v35, %v3634_v35  ;;  %3789 = vst [vmem:[#allocation16 + $0x8] sm:$0xff] %v3634_v35 }
 0xad4   :  { %3777 = vmatmul.mubr.bf16.vlgmr.msra.gmra.mrb[112].mxu0 %v3635_v53 }
 0xad5   :  { %4886 = shalt.err (!%p4883_p4)
}
 0xad6   :  { %s4887_s27 = scalar_lea.hbm %s7007_s12, 256 }
 0xad7   :  { %p4888_p5 = scmp.ne.s32.totalorder %s7007_s12, %s4887_s27  ;;  %p4891_p6 = scmp.lt.u32.totalorder %s4887_s27, %s7007_s12 }
 0xad9   :  { %p4893_p7 = pnand %p4891_p6, %p4888_p5 }
 0xadb   :  { %4896 = shalt.err (!%p4893_p7)
}
 0xadc   :  { %3814 = dma.vmem_to_hbm [thread:$0]  %s3809_s24, 256, %s7007_s12, [#allocation17], %s4955_s20, %s4955_s20, %s4956_s21  }
 0xadd   :  { %s4966_s15 = smov [#allocation18]  }
 0xade   :  { %s3820_s16 = sshll.u32 %s4966_s15, 4  ;;  %s3821_s16 = int_to_ptr.vmem [resolvable:$true] %s3820_s16 }
 0xadf   :  { %s4897_s30 = scalar_lea.vmem %s3821_s16, 256  ;;  %p4902_p9 = scmp.lt.s32.totalorder %s3821_s16, %s3821_s16 }
 0xae0   :  { %p4898_p8 = scmp.ne.s32.totalorder %s3821_s16, %s4897_s30  ;;  %p4903_p10 = scmp.lt.s32.totalorder %s4897_s30, %s4897_s30 }
 0xae2   :  { %p4904_p11 = por %p4903_p10, %p4902_p9 }
 0xae4   :  { %p4905_p12 = pnand %p4904_p11, %p4898_p8 }
 0xae6   :  { %4908 = shalt.err (!%p4905_p12)
}
 0xae7   :  { %s4909_s0 = scalar_lea.hbm %s7008_s13, 256 }
 0xae8   :  { %p4910_p13 = scmp.ne.s32.totalorder %s7008_s13, %s4909_s0  ;;  %p4913_p0 = scmp.lt.u32.totalorder %s4909_s0, %s7008_s13 }
 0xaea   :  { %p4915_p1 = pnand %p4913_p0, %p4910_p13 }
 0xaec   :  { %4918 = shalt.err (!%p4915_p1)
}
 0xaed   :  { %3826 = dma.vmem_to_hbm [thread:$0]  %s3821_s16, 256, %s7008_s13, [#allocation17], %s4955_s20, %s4955_s20, %s4956_s21   ;;  %v7746_v24 = vld [vmem:[#allocation82_spill] sm:$0xff]  ;;  %v7747_v58 = vld [vmem:[#allocation83_spill] sm:$0xff] }
 0xaee   :  { %v3652_v20 = vld [vmem:[%s7005_s10] sm:$0x3]  ;;  %s4967_s9 = smov [#allocation15]  }
 0xaef   :  { %v3657_v9 = vrot.slane %v3652_v20, %v7746_v24  ;;  %v3661_v18 = vrot.slane %v3652_v20, %v7747_v58  ;;  %s3799_s24 = sshll.u32 %s4967_s9, 4  ;;  %s3800_s24 = int_to_ptr.vmem [resolvable:$true] %s3799_s24 }
 0xaf0   :  { %s4919_s13 = scalar_lea.vmem %s3800_s24, 256  ;;  %p4924_p3 = scmp.lt.s32.totalorder %s3800_s24, %s3800_s24 }
 0xaf1   :  { %p4920_p2 = scmp.ne.s32.totalorder %s3800_s24, %s4919_s13  ;;  %p4925_p4 = scmp.lt.s32.totalorder %s4919_s13, %s4919_s13 }
 0xaf3   :  { %p4926_p5 = por %p4925_p4, %p4924_p3 }
 0xaf5   :  { %p4927_p6 = pnand %p4926_p5, %p4920_p2 }
 0xba7   :  { %v3778_v17 = vpop.f32.mrb[112].mxu0 }
 0xba8   :  { %v3779_v56 = vadd.f32 %v3778_v17, %v3657_v9  ;;  %v3780_v5 = vpop.f32.mrb[113].mxu0 }
 0xba9   :  { %v3781_v29 = vadd.f32 %v3780_v5, %v3661_v18  ;;  %v3782_v7 = vpop.f32.mrb[114].mxu0 }
 0xbaa   :  { %3785 = vst [vmem:[#allocation15] sm:$0xff] %v3779_v56  ;;  %v3783_v61 = vpop.f32.mrb[115].mxu0 }
 0xbab   :  { %3786 = vst [vmem:[#allocation15 + $0x8] sm:$0xff] %v3781_v29 }
 0xbac   :  { %4930 = shalt.err (!%p4927_p6)
}
 0xbad   :  { %s4931_s21 = scalar_lea.hbm %s7006_s11, 256 }
 0xbae   :  { %p4932_p7 = scmp.ne.s32.totalorder %s7006_s11, %s4931_s21  ;;  %p4935_p8 = scmp.lt.u32.totalorder %s4931_s21, %s7006_s11 }
 0xbb0   :  { %p4937_p9 = pnand %p4935_p8, %p4932_p7 }
 0xbb2   :  { %4940 = shalt.err (!%p4937_p9)
}
 0xbb3   :  { %3802 = dma.vmem_to_hbm [thread:$0]  %s3800_s24, 256, %s7006_s11, [#allocation5]  }
 0xbb4   :  { %4949 = dma.done.wait [#allocation5], 256  }
 0xbb5   :  { %4950 = vsyncadd [#allocation5], 4294967040 }
 0xbb6   :  { %4951 = dma.done.wait [#allocation17], 512  }
 0xbb7   :  { %4952 = vsyncadd [#allocation17], 4294966784 }
 0xbb8   :  { %3836 = vsyncpa [#allocation4], 1 }
 0xbb9   :  { %3837 = vsyncpa [#allocation7], 1 }
 0xbba   :  { %3838 = vsyncpa [#allocation10], 1 }
 0xbbb   :  { %3839 = vsyncpa [#allocation13], 1 }
 0xbbc   :  { %3840 = vsyncpa [#allocation5], 1 }
 0xbbd   :  { %3841 = vsyncpa [#allocation17], 1 }

</bundles_post_ra>
